<compile_context>
chip_gen: v6e
topology: v6e:2x2x1
jax: 0.10.0
libtpu: 0.0.40
codegen_flags: <defaults>
</compile_context>

<pallas_src>
import functools

import jax
import jax.numpy as jnp
from jax.experimental import pallas as pl
from jax.experimental.pallas import tpu as pltpu


def _round_up(x, m):
    return (x + m - 1) // m * m


def _chamfer_kernel(x_ref, yt_ref, o_acc_ref, o_com_ref,
                    accmin_ref, commin_ref, xb_ref,
                    *, row_block, col_block):
    """Fused bidirectional nearest-neighbor-distance kernel.

    x_ref:      (1, TN, D)   src tile, points on the sublane axis
    yt_ref:     (1, D, TM)   tar tile, coordinate-major, points on the lane axis
    o_acc_ref:  (1, TN, 1)   min Euclidean dist src->tar for this src tile
    o_com_ref:  (1, NJ, TM)  min Euclidean dist tar->src, full width, resident per b
    accmin_ref: (TN, 128)    per-lane running min of d2 (carried across j)
    commin_ref: (NJ, 8, TM)  per-sublane running min of d2 (carried across i)
    xb_ref:     (D, TN, 128) src coords lane-broadcast once per (b, i)
    """
    i = pl.program_id(1)
    j = pl.program_id(2)
    ni = pl.num_programs(1)
    nj = pl.num_programs(2)

    tn = x_ref.shape[1]
    ndim = x_ref.shape[2]
    tm = yt_ref.shape[2]
    n_rb = tn // row_block
    n_cc = tm // col_block

    # ---- once per (b, i): hoist lane-broadcast of src coords, reset acc min --
    @pl.when(j == 0)
    def _():
        x = x_ref[0]                                           # (TN, D)
        for k in range(ndim):
            xb_ref[k] = jnp.broadcast_to(x[:, k:k + 1], (tn, 128))
        accmin_ref[...] = jnp.full((tn, 128), jnp.inf, jnp.float32)

    # ---- once per (b, j): reset the tar->src accumulator plane ---------------
    @pl.when(i == 0)
    def _():
        commin_ref[j] = jnp.full((8, tm), jnp.inf, jnp.float32)

    # ---- fused pairwise-d2 + both min folds, chunked so temps stay in vregs --
    # Each chunk works on (row_block, col_block) = (128, 128) = 16 vregs; the
    # diff/square/accumulate and the two jnp.minimum folds happen immediately,
    # so no (TN, TM) temporary ever hits VMEM.
    for rb in range(n_rb):
        r0 = rb * row_block
        acc = accmin_ref[r0:r0 + row_block, :]                 # (R, 128) register carry
        for cc in range(n_cc):
            c0 = cc * col_block
            d2 = None
            for k in range(ndim):
                xk = xb_ref[k, r0:r0 + row_block, :]           # (R, 128) plain load
                yk = yt_ref[0, k:k + 1, c0:c0 + col_block]     # (1, C) sublane-bcast
                diff = xk - yk
                d2 = diff * diff if d2 is None else d2 + diff * diff
            # accuracy direction (src -> tar): per-lane running min in registers.
            acc = jnp.minimum(acc, d2)
            # completeness direction (tar -> src): fold sublane groups, then a
            # single-vreg read-modify-write of the persistent accumulator.
            col = d2[0:8, :]
            for r in range(1, row_block // 8):
                col = jnp.minimum(col, d2[r * 8:(r + 1) * 8, :])
            commin_ref[j, :, c0:c0 + col_block] = jnp.minimum(
                commin_ref[j, :, c0:c0 + col_block], col)
        accmin_ref[r0:r0 + row_block, :] = acc

    # ---- finalize src->tar on the last tar tile: one XLU reduce + sqrt per (b,i)
    @pl.when(j == nj - 1)
    def _():
        o_acc_ref[0] = jnp.sqrt(jnp.min(accmin_ref[...], axis=-1, keepdims=True))

    # ---- finalize tar->src on the last src tile: fill row j of the resident
    # output block; it is DMA'd back to HBM once per batch (no stale writebacks).
    @pl.when(i == ni - 1)
    def _():
        o_com_ref[0, pl.ds(j, 1), :] = jnp.sqrt(
            jnp.min(commin_ref[j], axis=0, keepdims=True))


def _chamfer_nn(src, tar, *, tn_max=512, tm_max=2048, sentinel=1e8):
    """Returns (accuracy[B,N], complete[B,M]) nearest-neighbor distances."""
    B, N, D = src.shape
    B2, M, D2 = tar.shape
    assert B == B2 and D == D2, "batch / coordinate dims must match"

    src = src.astype(jnp.float32)
    tar = tar.astype(jnp.float32)

    tn = min(tn_max, _round_up(N, 128))
    tm = min(tm_max, _round_up(M, 128))
    n_pad = _round_up(N, tn)
    m_pad = _round_up(M, tm)
    ni = n_pad // tn
    nj = m_pad // tm

    # Pad with a far-away sentinel: padded points never become anyone's nearest
    # neighbor; padded query rows are sliced off below.
    if n_pad != N:
        src_p = jnp.concatenate(
            [src, jnp.full((B, n_pad - N, D), sentinel, jnp.float32)], axis=1)
    else:
        src_p = src
    if m_pad != M:
        tar_p = jnp.concatenate(
            [tar, jnp.full((B, m_pad - M, D), sentinel, jnp.float32)], axis=1)
    else:
        tar_p = tar

    tar_t = jnp.transpose(tar_p, (0, 2, 1))   # (B, D, m_pad) lane-dense points

    row_block = min(128, tn)   # tn is always a multiple of 128
    col_block = 128            # matches the 128-lane accmin accumulator width

    kernel = functools.partial(_chamfer_kernel,
                               row_block=row_block, col_block=col_block)

    grid = (B, ni, nj)

    acc, com = pl.pallas_call(
        kernel,
        out_shape=(
            jax.ShapeDtypeStruct((B, n_pad, 1), jnp.float32),
            jax.ShapeDtypeStruct((B, nj, tm), jnp.float32),
        ),
        grid_spec=pltpu.PrefetchScalarGridSpec(
            num_scalar_prefetch=0,
            grid=grid,
            in_specs=[
                pl.BlockSpec((1, tn, D), lambda b, i, j: (b, i, 0)),
                pl.BlockSpec((1, D, tm), lambda b, i, j: (b, 0, j)),
            ],
            out_specs=[
                # accuracy block changes with i -> written back once per (b, i)
                pl.BlockSpec((1, tn, 1), lambda b, i, j: (b, i, 0)),
                # completeness block is full-width and resident for the whole
                # (i, j) sweep -> written back once per b.
                pl.BlockSpec((1, nj, tm), lambda b, i, j: (b, 0, 0)),
            ],
            scratch_shapes=[
                pltpu.VMEM((tn, 128), jnp.float32),        # accmin
                pltpu.VMEM((nj, 8, tm), jnp.float32),      # commin
                pltpu.VMEM((D, tn, 128), jnp.float32),     # hoisted src broadcasts
            ],
        ),
        compiler_params=pltpu.CompilerParams(
            # b independent; i carries the tar->src accumulator, j carries the
            # src->tar accumulator -> both must stay sequential.
            dimension_semantics=("parallel", "arbitrary", "arbitrary"),
            # Re-derived for the fused kernel: accumulators + resident output
            # are small; 32 MiB leaves huge headroom on every generation
            # (including v7x's 64 MiB physical VMEM).
            vmem_limit_bytes=32 * 1024 * 1024,
        ),
    )(src_p, tar_t)

    accuracy = acc[:, :N, 0]                    # (B, N)
    complete = com.reshape(B, m_pad)[:, :M]     # (B, M)
    return accuracy, complete


REDUCTIONS = {
    "mean": jnp.mean,
    "sum": jnp.sum,
    "max": jnp.max,
    "min": jnp.min,
    "none": lambda t: t,
}


class ChamferDistKDTree:
    """JAX/Pallas re-implementation of deformer.metrics.ChamferDistKDTree."""

    def __init__(self, reduction="mean", njobs=1):
        # njobs (CPU KDTree worker count) has no TPU meaning; accepted + ignored.
        self.set_reduction_method(reduction)

    def set_reduction_method(self, reduction):
        if reduction not in REDUCTIONS:
            raise ValueError(
                f"reduction method ({reduction}) not in list of accepted "
                f"values: {list(REDUCTIONS.keys())}"
            )
        self.reduce = REDUCTIONS[reduction]

    @functools.partial(jax.jit, static_argnums=(0, 3))
    def forward(self, src, tar, target_accuracy=False):
        accuracy, complete = _chamfer_nn(src, tar)        # (B, N), (B, M)
        chamfer = 0.5 * (self.reduce(accuracy) + self.reduce(complete))
        if not target_accuracy:
            return chamfer
        # Same return order as the PyTorch module: (chamfer, complete, accuracy).
        return chamfer, self.reduce(complete), self.reduce(accuracy)

    __call__ = forward


if __name__ == "__main__":
    key = jax.random.PRNGKey(0)
    k_src, k_tar = jax.random.split(key)

    def ref_min_dist(x, y):
        d2 = jnp.sum((x[:, :, None, :] - y[:, None, :, :]) ** 2, axis=-1)
        return jnp.sqrt(jnp.min(d2, axis=-1))

    # 1) Module-level check; N/M are NOT tile multiples -> exercises padding +
    #    the fused chunk loops (3x3 chunks per step).
    B, N, M, D = 2, 300, 260, 3
    src = jax.random.normal(k_src, (B, N, D), dtype=jnp.float32)
    tar = jax.random.normal(k_tar, (B, M, D), dtype=jnp.float32)

    module = ChamferDistKDTree(reduction="mean")
    chamfer, complete, accuracy = module(src, tar, True)
    jax.block_until_ready((chamfer, complete, accuracy))

    ref_acc = ref_min_dist(src, tar)
    ref_com = ref_min_dist(tar, src)
    ref_chamfer = 0.5 * (ref_acc.mean() + ref_com.mean())
    assert jnp.allclose(chamfer, ref_chamfer, atol=1e-5, rtol=1e-5), (chamfer, ref_chamfer)
    assert jnp.allclose(accuracy, ref_acc.mean(), atol=1e-5, rtol=1e-5)
    assert jnp.allclose(complete, ref_com.mean(), atol=1e-5, rtol=1e-5)

    # 2) Multi-tile check: small tiles force grid=(2, 3, 2) and exercise both
    #    running-min accumulators, the hoisted broadcast refresh at j == 0, and
    #    the resident full-width completeness output block.
    N2, M2 = 384, 256
    src2 = jax.random.normal(jax.random.PRNGKey(1), (B, N2, D), dtype=jnp.float32)
    tar2 = jax.random.normal(jax.random.PRNGKey(2), (B, M2, D), dtype=jnp.float32)
    acc2, com2 = _chamfer_nn(src2, tar2, tn_max=128, tm_max=128)
    jax.block_until_ready((acc2, com2))
    assert jnp.allclose(acc2, ref_min_dist(src2, tar2), atol=1e-5, rtol=1e-5)
    assert jnp.allclose(com2, ref_min_dist(tar2, src2), atol=1e-5, rtol=1e-5)

    print("KERNEL_OK")
</pallas_src>

<mosaic_0001>
module attributes {stable_mosaic.version = 11 : i64} {
  func.func @_chamfer_kernel(%arg0: i32, %arg1: i32, %arg2: i32, %arg3: memref<1x384x3xf32, #tpu.memory_space<vmem>>, %arg4: memref<1x3x384xf32, #tpu.memory_space<vmem>>, %arg5: memref<1x384x1xf32, #tpu.memory_space<vmem>>, %arg6: memref<1x1x384xf32, #tpu.memory_space<vmem>>, %arg7: memref<384x128xf32, #tpu.memory_space<vmem>>, %arg8: memref<1x8x384xf32, #tpu.memory_space<vmem>>, %arg9: memref<3x384x128xf32, #tpu.memory_space<vmem>>) attributes {dimension_semantics = [#tpu.dimension_semantics<parallel>, #tpu.dimension_semantics<arbitrary>, #tpu.dimension_semantics<arbitrary>], iteration_bounds = array<i64: 2, 1, 1>, scalar_prefetch = 0 : i64, scratch_operands = 3 : i64, tpu.core_type = #tpu.core_type<tc>, window_params = [{transform_indices = @transform_0, window_bounds = array<i64: 1, 384, 3>}, {transform_indices = @transform_1, window_bounds = array<i64: 1, 3, 384>}, {transform_indices = @transform_2, window_bounds = array<i64: 1, 384, 1>}, {transform_indices = @transform_3, window_bounds = array<i64: 1, 1, 384>}]} {
    %c0_i32 = arith.constant 0 : i32
    %0 = arith.cmpi eq, %arg2, %c0_i32 : i32
    %1 = arith.extui %0 : i1 to i32
    %c0_i32_0 = arith.constant 0 : i32
    %2 = arith.cmpi ne, %1, %c0_i32_0 : i32
    scf.if %2 {
      %c0_212 = arith.constant 0 : index
      %c0_213 = arith.constant 0 : index
      %c0_214 = arith.constant 0 : index
      %585 = vector.load %arg3[%c0_212, %c0_213, %c0_214] : memref<1x384x3xf32, #tpu.memory_space<vmem>>, vector<1x384x3xf32>
      %586 = vector.shape_cast %585 : vector<1x384x3xf32> to vector<384x3xf32>
      %587 = vector.extract_strided_slice %586 {offsets = [0, 0], sizes = [384, 1], strides = [1, 1]} : vector<384x3xf32> to vector<384x1xf32>
      %588 = vector.shape_cast %587 : vector<384x1xf32> to vector<384x1xf32>
      %589 = vector.broadcast %588 : vector<384x1xf32> to vector<384x128xf32>
      %c0_215 = arith.constant 0 : index
      %c0_216 = arith.constant 0 : index
      %c0_217 = arith.constant 0 : index
      %590 = vector.load %arg9[%c0_215, %c0_216, %c0_217] : memref<3x384x128xf32, #tpu.memory_space<vmem>>, vector<1x384x128xf32>
      %591 = vector.shape_cast %590 : vector<1x384x128xf32> to vector<384x128xf32>
      %592 = vector.shape_cast %589 : vector<384x128xf32> to vector<1x384x128xf32>
      tpu.vector_store %arg9[%c0_215, %c0_216, %c0_217], %592 {strides = array<i32>} : memref<3x384x128xf32, #tpu.memory_space<vmem>>, vector<1x384x128xf32>,
      %593 = vector.extract_strided_slice %586 {offsets = [0, 1], sizes = [384, 1], strides = [1, 1]} : vector<384x3xf32> to vector<384x1xf32>
      %594 = vector.shape_cast %593 : vector<384x1xf32> to vector<384x1xf32>
      %595 = vector.broadcast %594 : vector<384x1xf32> to vector<384x128xf32>
      %c1_218 = arith.constant 1 : index
      %c0_219 = arith.constant 0 : index
      %c0_220 = arith.constant 0 : index
      %596 = vector.load %arg9[%c1_218, %c0_219, %c0_220] : memref<3x384x128xf32, #tpu.memory_space<vmem>>, vector<1x384x128xf32>
      %597 = vector.shape_cast %596 : vector<1x384x128xf32> to vector<384x128xf32>
      %598 = vector.shape_cast %595 : vector<384x128xf32> to vector<1x384x128xf32>
      tpu.vector_store %arg9[%c1_218, %c0_219, %c0_220], %598 {strides = array<i32>} : memref<3x384x128xf32, #tpu.memory_space<vmem>>, vector<1x384x128xf32>,
      %599 = vector.extract_strided_slice %586 {offsets = [0, 2], sizes = [384, 1], strides = [1, 1]} : vector<384x3xf32> to vector<384x1xf32>
      %600 = vector.shape_cast %599 : vector<384x1xf32> to vector<384x1xf32>
      %601 = vector.broadcast %600 : vector<384x1xf32> to vector<384x128xf32>
      %c2_221 = arith.constant 2 : index
      %c0_222 = arith.constant 0 : index
      %c0_223 = arith.constant 0 : index
      %602 = vector.load %arg9[%c2_221, %c0_222, %c0_223] : memref<3x384x128xf32, #tpu.memory_space<vmem>>, vector<1x384x128xf32>
      %603 = vector.shape_cast %602 : vector<1x384x128xf32> to vector<384x128xf32>
      %604 = vector.shape_cast %601 : vector<384x128xf32> to vector<1x384x128xf32>
      tpu.vector_store %arg9[%c2_221, %c0_222, %c0_223], %604 {strides = array<i32>} : memref<3x384x128xf32, #tpu.memory_space<vmem>>, vector<1x384x128xf32>,
      %cst = arith.constant 0x7F800000 : f32
      %605 = vector.broadcast %cst : f32 to vector<384x128xf32>
      %c0_224 = arith.constant 0 : index
      %c0_225 = arith.constant 0 : index
      %606 = vector.load %arg7[%c0_224, %c0_225] : memref<384x128xf32, #tpu.memory_space<vmem>>, vector<384x128xf32>
      tpu.vector_store %arg7[%c0_224, %c0_225], %605 {strides = array<i32>} : memref<384x128xf32, #tpu.memory_space<vmem>>, vector<384x128xf32>,
    } else {
    }
    %c0_i32_1 = arith.constant 0 : i32
    %3 = arith.cmpi eq, %arg1, %c0_i32_1 : i32
    %4 = arith.extui %3 : i1 to i32
    %c0_i32_2 = arith.constant 0 : i32
    %5 = arith.cmpi ne, %4, %c0_i32_2 : i32
    scf.if %5 {
      %cst = arith.constant 0x7F800000 : f32
      %585 = vector.broadcast %cst : f32 to vector<8x384xf32>
      %586 = arith.index_cast %arg2 : i32 to index
      %c0_212 = arith.constant 0 : index
      %c0_213 = arith.constant 0 : index
      %587 = vector.load %arg8[%586, %c0_212, %c0_213] : memref<1x8x384xf32, #tpu.memory_space<vmem>>, vector<1x8x384xf32>
      %588 = vector.shape_cast %587 : vector<1x8x384xf32> to vector<8x384xf32>
      %589 = vector.shape_cast %585 : vector<8x384xf32> to vector<1x8x384xf32>
      tpu.vector_store %arg8[%586, %c0_212, %c0_213], %589 {strides = array<i32>} : memref<1x8x384xf32, #tpu.memory_space<vmem>>, vector<1x8x384xf32>,
    } else {
    }
    %c0 = arith.constant 0 : index
    %c0_3 = arith.constant 0 : index
    %6 = vector.load %arg7[%c0, %c0_3] : memref<384x128xf32, #tpu.memory_space<vmem>>, vector<128x128xf32>
    %c0_4 = arith.constant 0 : index
    %c0_5 = arith.constant 0 : index
    %c0_6 = arith.constant 0 : index
    %7 = vector.load %arg9[%c0_4, %c0_5, %c0_6] : memref<3x384x128xf32, #tpu.memory_space<vmem>>, vector<1x128x128xf32>
    %8 = vector.shape_cast %7 : vector<1x128x128xf32> to vector<128x128xf32>
    %c0_7 = arith.constant 0 : index
    %c0_8 = arith.constant 0 : index
    %c0_9 = arith.constant 0 : index
    %9 = vector.load %arg4[%c0_7, %c0_8, %c0_9] : memref<1x3x384xf32, #tpu.memory_space<vmem>>, vector<1x1x128xf32>
    %10 = vector.shape_cast %9 : vector<1x1x128xf32> to vector<1x128xf32>
    %11 = vector.broadcast %10 : vector<1x128xf32> to vector<128x128xf32>
    %12 = arith.subf %8, %11 : vector<128x128xf32>
    %13 = arith.mulf %12, %12 : vector<128x128xf32>
    %c1 = arith.constant 1 : index
    %c0_10 = arith.constant 0 : index
    %c0_11 = arith.constant 0 : index
    %14 = vector.load %arg9[%c1, %c0_10, %c0_11] : memref<3x384x128xf32, #tpu.memory_space<vmem>>, vector<1x128x128xf32>
    %15 = vector.shape_cast %14 : vector<1x128x128xf32> to vector<128x128xf32>
    %c0_12 = arith.constant 0 : index
    %c1_13 = arith.constant 1 : index
    %c0_14 = arith.constant 0 : index
    %16 = vector.load %arg4[%c0_12, %c1_13, %c0_14] : memref<1x3x384xf32, #tpu.memory_space<vmem>>, vector<1x1x128xf32>
    %17 = vector.shape_cast %16 : vector<1x1x128xf32> to vector<1x128xf32>
    %18 = vector.broadcast %17 : vector<1x128xf32> to vector<128x128xf32>
    %19 = arith.subf %15, %18 : vector<128x128xf32>
    %20 = arith.mulf %19, %19 : vector<128x128xf32>
    %21 = arith.addf %13, %20 : vector<128x128xf32>
    %c2 = arith.constant 2 : index
    %c0_15 = arith.constant 0 : index
    %c0_16 = arith.constant 0 : index
    %22 = vector.load %arg9[%c2, %c0_15, %c0_16] : memref<3x384x128xf32, #tpu.memory_space<vmem>>, vector<1x128x128xf32>
    %23 = vector.shape_cast %22 : vector<1x128x128xf32> to vector<128x128xf32>
    %c0_17 = arith.constant 0 : index
    %c2_18 = arith.constant 2 : index
    %c0_19 = arith.constant 0 : index
    %24 = vector.load %arg4[%c0_17, %c2_18, %c0_19] : memref<1x3x384xf32, #tpu.memory_space<vmem>>, vector<1x1x128xf32>
    %25 = vector.shape_cast %24 : vector<1x1x128xf32> to vector<1x128xf32>
    %26 = vector.broadcast %25 : vector<1x128xf32> to vector<128x128xf32>
    %27 = arith.subf %23, %26 : vector<128x128xf32>
    %28 = arith.mulf %27, %27 : vector<128x128xf32>
    %29 = arith.addf %21, %28 : vector<128x128xf32>
    %30 = arith.minimumf %6, %29 : vector<128x128xf32>
    %31 = vector.extract_strided_slice %29 {offsets = [0, 0], sizes = [8, 128], strides = [1, 1]} : vector<128x128xf32> to vector<8x128xf32>
    %32 = vector.extract_strided_slice %29 {offsets = [8, 0], sizes = [8, 128], strides = [1, 1]} : vector<128x128xf32> to vector<8x128xf32>
    %33 = arith.minimumf %31, %32 : vector<8x128xf32>
    %34 = vector.extract_strided_slice %29 {offsets = [16, 0], sizes = [8, 128], strides = [1, 1]} : vector<128x128xf32> to vector<8x128xf32>
    %35 = arith.minimumf %33, %34 : vector<8x128xf32>
    %36 = vector.extract_strided_slice %29 {offsets = [24, 0], sizes = [8, 128], strides = [1, 1]} : vector<128x128xf32> to vector<8x128xf32>
    %37 = arith.minimumf %35, %36 : vector<8x128xf32>
    %38 = vector.extract_strided_slice %29 {offsets = [32, 0], sizes = [8, 128], strides = [1, 1]} : vector<128x128xf32> to vector<8x128xf32>
    %39 = arith.minimumf %37, %38 : vector<8x128xf32>
    %40 = vector.extract_strided_slice %29 {offsets = [40, 0], sizes = [8, 128], strides = [1, 1]} : vector<128x128xf32> to vector<8x128xf32>
    %41 = arith.minimumf %39, %40 : vector<8x128xf32>
    %42 = vector.extract_strided_slice %29 {offsets = [48, 0], sizes = [8, 128], strides = [1, 1]} : vector<128x128xf32> to vector<8x128xf32>
    %43 = arith.minimumf %41, %42 : vector<8x128xf32>
    %44 = vector.extract_strided_slice %29 {offsets = [56, 0], sizes = [8, 128], strides = [1, 1]} : vector<128x128xf32> to vector<8x128xf32>
    %45 = arith.minimumf %43, %44 : vector<8x128xf32>
    %46 = vector.extract_strided_slice %29 {offsets = [64, 0], sizes = [8, 128], strides = [1, 1]} : vector<128x128xf32> to vector<8x128xf32>
    %47 = arith.minimumf %45, %46 : vector<8x128xf32>
    %48 = vector.extract_strided_slice %29 {offsets = [72, 0], sizes = [8, 128], strides = [1, 1]} : vector<128x128xf32> to vector<8x128xf32>
    %49 = arith.minimumf %47, %48 : vector<8x128xf32>
    %50 = vector.extract_strided_slice %29 {offsets = [80, 0], sizes = [8, 128], strides = [1, 1]} : vector<128x128xf32> to vector<8x128xf32>
    %51 = arith.minimumf %49, %50 : vector<8x128xf32>
    %52 = vector.extract_strided_slice %29 {offsets = [88, 0], sizes = [8, 128], strides = [1, 1]} : vector<128x128xf32> to vector<8x128xf32>
    %53 = arith.minimumf %51, %52 : vector<8x128xf32>
    %54 = vector.extract_strided_slice %29 {offsets = [96, 0], sizes = [8, 128], strides = [1, 1]} : vector<128x128xf32> to vector<8x128xf32>
    %55 = arith.minimumf %53, %54 : vector<8x128xf32>
    %56 = vector.extract_strided_slice %29 {offsets = [104, 0], sizes = [8, 128], strides = [1, 1]} : vector<128x128xf32> to vector<8x128xf32>
    %57 = arith.minimumf %55, %56 : vector<8x128xf32>
    %58 = vector.extract_strided_slice %29 {offsets = [112, 0], sizes = [8, 128], strides = [1, 1]} : vector<128x128xf32> to vector<8x128xf32>
    %59 = arith.minimumf %57, %58 : vector<8x128xf32>
    %60 = vector.extract_strided_slice %29 {offsets = [120, 0], sizes = [8, 128], strides = [1, 1]} : vector<128x128xf32> to vector<8x128xf32>
    %61 = arith.minimumf %59, %60 : vector<8x128xf32>
    %62 = arith.index_cast %arg2 : i32 to index
    %c0_20 = arith.constant 0 : index
    %c0_21 = arith.constant 0 : index
    %63 = vector.load %arg8[%62, %c0_20, %c0_21] : memref<1x8x384xf32, #tpu.memory_space<vmem>>, vector<1x8x128xf32>
    %64 = vector.shape_cast %63 : vector<1x8x128xf32> to vector<8x128xf32>
    %65 = arith.minimumf %64, %61 : vector<8x128xf32>
    %66 = arith.index_cast %arg2 : i32 to index
    %c0_22 = arith.constant 0 : index
    %c0_23 = arith.constant 0 : index
    %67 = vector.load %arg8[%66, %c0_22, %c0_23] : memref<1x8x384xf32, #tpu.memory_space<vmem>>, vector<1x8x128xf32>
    %68 = vector.shape_cast %67 : vector<1x8x128xf32> to vector<8x128xf32>
    %69 = vector.shape_cast %65 : vector<8x128xf32> to vector<1x8x128xf32>
    tpu.vector_store %arg8[%66, %c0_22, %c0_23], %69 {strides = array<i32>} : memref<1x8x384xf32, #tpu.memory_space<vmem>>, vector<1x8x128xf32>,
    %c0_24 = arith.constant 0 : index
    %c0_25 = arith.constant 0 : index
    %c0_26 = arith.constant 0 : index
    %70 = vector.load %arg9[%c0_24, %c0_25, %c0_26] : memref<3x384x128xf32, #tpu.memory_space<vmem>>, vector<1x128x128xf32>
    %71 = vector.shape_cast %70 : vector<1x128x128xf32> to vector<128x128xf32>
    %c0_27 = arith.constant 0 : index
    %c0_28 = arith.constant 0 : index
    %c128 = arith.constant 128 : index
    %72 = vector.load %arg4[%c0_27, %c0_28, %c128] : memref<1x3x384xf32, #tpu.memory_space<vmem>>, vector<1x1x128xf32>
    %73 = vector.shape_cast %72 : vector<1x1x128xf32> to vector<1x128xf32>
    %74 = vector.broadcast %73 : vector<1x128xf32> to vector<128x128xf32>
    %75 = arith.subf %71, %74 : vector<128x128xf32>
    %76 = arith.mulf %75, %75 : vector<128x128xf32>
    %c1_29 = arith.constant 1 : index
    %c0_30 = arith.constant 0 : index
    %c0_31 = arith.constant 0 : index
    %77 = vector.load %arg9[%c1_29, %c0_30, %c0_31] : memref<3x384x128xf32, #tpu.memory_space<vmem>>, vector<1x128x128xf32>
    %78 = vector.shape_cast %77 : vector<1x128x128xf32> to vector<128x128xf32>
    %c0_32 = arith.constant 0 : index
    %c1_33 = arith.constant 1 : index
    %c128_34 = arith.constant 128 : index
    %79 = vector.load %arg4[%c0_32, %c1_33, %c128_34] : memref<1x3x384xf32, #tpu.memory_space<vmem>>, vector<1x1x128xf32>
    %80 = vector.shape_cast %79 : vector<1x1x128xf32> to vector<1x128xf32>
    %81 = vector.broadcast %80 : vector<1x128xf32> to vector<128x128xf32>
    %82 = arith.subf %78, %81 : vector<128x128xf32>
    %83 = arith.mulf %82, %82 : vector<128x128xf32>
    %84 = arith.addf %76, %83 : vector<128x128xf32>
    %c2_35 = arith.constant 2 : index
    %c0_36 = arith.constant 0 : index
    %c0_37 = arith.constant 0 : index
    %85 = vector.load %arg9[%c2_35, %c0_36, %c0_37] : memref<3x384x128xf32, #tpu.memory_space<vmem>>, vector<1x128x128xf32>
    %86 = vector.shape_cast %85 : vector<1x128x128xf32> to vector<128x128xf32>
    %c0_38 = arith.constant 0 : index
    %c2_39 = arith.constant 2 : index
    %c128_40 = arith.constant 128 : index
    %87 = vector.load %arg4[%c0_38, %c2_39, %c128_40] : memref<1x3x384xf32, #tpu.memory_space<vmem>>, vector<1x1x128xf32>
    %88 = vector.shape_cast %87 : vector<1x1x128xf32> to vector<1x128xf32>
    %89 = vector.broadcast %88 : vector<1x128xf32> to vector<128x128xf32>
    %90 = arith.subf %86, %89 : vector<128x128xf32>
    %91 = arith.mulf %90, %90 : vector<128x128xf32>
    %92 = arith.addf %84, %91 : vector<128x128xf32>
    %93 = arith.minimumf %30, %92 : vector<128x128xf32>
    %94 = vector.extract_strided_slice %92 {offsets = [0, 0], sizes = [8, 128], strides = [1, 1]} : vector<128x128xf32> to vector<8x128xf32>
    %95 = vector.extract_strided_slice %92 {offsets = [8, 0], sizes = [8, 128], strides = [1, 1]} : vector<128x128xf32> to vector<8x128xf32>
    %96 = arith.minimumf %94, %95 : vector<8x128xf32>
    %97 = vector.extract_strided_slice %92 {offsets = [16, 0], sizes = [8, 128], strides = [1, 1]} : vector<128x128xf32> to vector<8x128xf32>
    %98 = arith.minimumf %96, %97 : vector<8x128xf32>
    %99 = vector.extract_strided_slice %92 {offsets = [24, 0], sizes = [8, 128], strides = [1, 1]} : vector<128x128xf32> to vector<8x128xf32>
    %100 = arith.minimumf %98, %99 : vector<8x128xf32>
    %101 = vector.extract_strided_slice %92 {offsets = [32, 0], sizes = [8, 128], strides = [1, 1]} : vector<128x128xf32> to vector<8x128xf32>
    %102 = arith.minimumf %100, %101 : vector<8x128xf32>
    %103 = vector.extract_strided_slice %92 {offsets = [40, 0], sizes = [8, 128], strides = [1, 1]} : vector<128x128xf32> to vector<8x128xf32>
    %104 = arith.minimumf %102, %103 : vector<8x128xf32>
    %105 = vector.extract_strided_slice %92 {offsets = [48, 0], sizes = [8, 128], strides = [1, 1]} : vector<128x128xf32> to vector<8x128xf32>
    %106 = arith.minimumf %104, %105 : vector<8x128xf32>
    %107 = vector.extract_strided_slice %92 {offsets = [56, 0], sizes = [8, 128], strides = [1, 1]} : vector<128x128xf32> to vector<8x128xf32>
    %108 = arith.minimumf %106, %107 : vector<8x128xf32>
    %109 = vector.extract_strided_slice %92 {offsets = [64, 0], sizes = [8, 128], strides = [1, 1]} : vector<128x128xf32> to vector<8x128xf32>
    %110 = arith.minimumf %108, %109 : vector<8x128xf32>
    %111 = vector.extract_strided_slice %92 {offsets = [72, 0], sizes = [8, 128], strides = [1, 1]} : vector<128x128xf32> to vector<8x128xf32>
    %112 = arith.minimumf %110, %111 : vector<8x128xf32>
    %113 = vector.extract_strided_slice %92 {offsets = [80, 0], sizes = [8, 128], strides = [1, 1]} : vector<128x128xf32> to vector<8x128xf32>
    %114 = arith.minimumf %112, %113 : vector<8x128xf32>
    %115 = vector.extract_strided_slice %92 {offsets = [88, 0], sizes = [8, 128], strides = [1, 1]} : vector<128x128xf32> to vector<8x128xf32>
    %116 = arith.minimumf %114, %115 : vector<8x128xf32>
    %117 = vector.extract_strided_slice %92 {offsets = [96, 0], sizes = [8, 128], strides = [1, 1]} : vector<128x128xf32> to vector<8x128xf32>
    %118 = arith.minimumf %116, %117 : vector<8x128xf32>
    %119 = vector.extract_strided_slice %92 {offsets = [104, 0], sizes = [8, 128], strides = [1, 1]} : vector<128x128xf32> to vector<8x128xf32>
    %120 = arith.minimumf %118, %119 : vector<8x128xf32>
    %121 = vector.extract_strided_slice %92 {offsets = [112, 0], sizes = [8, 128], strides = [1, 1]} : vector<128x128xf32> to vector<8x128xf32>
    %122 = arith.minimumf %120, %121 : vector<8x128xf32>
    %123 = vector.extract_strided_slice %92 {offsets = [120, 0], sizes = [8, 128], strides = [1, 1]} : vector<128x128xf32> to vector<8x128xf32>
    %124 = arith.minimumf %122, %123 : vector<8x128xf32>
    %125 = arith.index_cast %arg2 : i32 to index
    %c0_41 = arith.constant 0 : index
    %c128_42 = arith.constant 128 : index
    %126 = vector.load %arg8[%125, %c0_41, %c128_42] : memref<1x8x384xf32, #tpu.memory_space<vmem>>, vector<1x8x128xf32>
    %127 = vector.shape_cast %126 : vector<1x8x128xf32> to vector<8x128xf32>
    %128 = arith.minimumf %127, %124 : vector<8x128xf32>
    %129 = arith.index_cast %arg2 : i32 to index
    %c0_43 = arith.constant 0 : index
    %c128_44 = arith.constant 128 : index
    %130 = vector.load %arg8[%129, %c0_43, %c128_44] : memref<1x8x384xf32, #tpu.memory_space<vmem>>, vector<1x8x128xf32>
    %131 = vector.shape_cast %130 : vector<1x8x128xf32> to vector<8x128xf32>
    %132 = vector.shape_cast %128 : vector<8x128xf32> to vector<1x8x128xf32>
    tpu.vector_store %arg8[%129, %c0_43, %c128_44], %132 {strides = array<i32>} : memref<1x8x384xf32, #tpu.memory_space<vmem>>, vector<1x8x128xf32>,
    %c0_45 = arith.constant 0 : index
    %c0_46 = arith.constant 0 : index
    %c0_47 = arith.constant 0 : index
    %133 = vector.load %arg9[%c0_45, %c0_46, %c0_47] : memref<3x384x128xf32, #tpu.memory_space<vmem>>, vector<1x128x128xf32>
    %134 = vector.shape_cast %133 : vector<1x128x128xf32> to vector<128x128xf32>
    %c0_48 = arith.constant 0 : index
    %c0_49 = arith.constant 0 : index
    %c256 = arith.constant 256 : index
    %135 = vector.load %arg4[%c0_48, %c0_49, %c256] : memref<1x3x384xf32, #tpu.memory_space<vmem>>, vector<1x1x128xf32>
    %136 = vector.shape_cast %135 : vector<1x1x128xf32> to vector<1x128xf32>
    %137 = vector.broadcast %136 : vector<1x128xf32> to vector<128x128xf32>
    %138 = arith.subf %134, %137 : vector<128x128xf32>
    %139 = arith.mulf %138, %138 : vector<128x128xf32>
    %c1_50 = arith.constant 1 : index
    %c0_51 = arith.constant 0 : index
    %c0_52 = arith.constant 0 : index
    %140 = vector.load %arg9[%c1_50, %c0_51, %c0_52] : memref<3x384x128xf32, #tpu.memory_space<vmem>>, vector<1x128x128xf32>
    %141 = vector.shape_cast %140 : vector<1x128x128xf32> to vector<128x128xf32>
    %c0_53 = arith.constant 0 : index
    %c1_54 = arith.constant 1 : index
    %c256_55 = arith.constant 256 : index
    %142 = vector.load %arg4[%c0_53, %c1_54, %c256_55] : memref<1x3x384xf32, #tpu.memory_space<vmem>>, vector<1x1x128xf32>
    %143 = vector.shape_cast %142 : vector<1x1x128xf32> to vector<1x128xf32>
    %144 = vector.broadcast %143 : vector<1x128xf32> to vector<128x128xf32>
    %145 = arith.subf %141, %144 : vector<128x128xf32>
    %146 = arith.mulf %145, %145 : vector<128x128xf32>
    %147 = arith.addf %139, %146 : vector<128x128xf32>
    %c2_56 = arith.constant 2 : index
    %c0_57 = arith.constant 0 : index
    %c0_58 = arith.constant 0 : index
    %148 = vector.load %arg9[%c2_56, %c0_57, %c0_58] : memref<3x384x128xf32, #tpu.memory_space<vmem>>, vector<1x128x128xf32>
    %149 = vector.shape_cast %148 : vector<1x128x128xf32> to vector<128x128xf32>
    %c0_59 = arith.constant 0 : index
    %c2_60 = arith.constant 2 : index
    %c256_61 = arith.constant 256 : index
    %150 = vector.load %arg4[%c0_59, %c2_60, %c256_61] : memref<1x3x384xf32, #tpu.memory_space<vmem>>, vector<1x1x128xf32>
    %151 = vector.shape_cast %150 : vector<1x1x128xf32> to vector<1x128xf32>
    %152 = vector.broadcast %151 : vector<1x128xf32> to vector<128x128xf32>
    %153 = arith.subf %149, %152 : vector<128x128xf32>
    %154 = arith.mulf %153, %153 : vector<128x128xf32>
    %155 = arith.addf %147, %154 : vector<128x128xf32>
    %156 = arith.minimumf %93, %155 : vector<128x128xf32>
    %157 = vector.extract_strided_slice %155 {offsets = [0, 0], sizes = [8, 128], strides = [1, 1]} : vector<128x128xf32> to vector<8x128xf32>
    %158 = vector.extract_strided_slice %155 {offsets = [8, 0], sizes = [8, 128], strides = [1, 1]} : vector<128x128xf32> to vector<8x128xf32>
    %159 = arith.minimumf %157, %158 : vector<8x128xf32>
    %160 = vector.extract_strided_slice %155 {offsets = [16, 0], sizes = [8, 128], strides = [1, 1]} : vector<128x128xf32> to vector<8x128xf32>
    %161 = arith.minimumf %159, %160 : vector<8x128xf32>
    %162 = vector.extract_strided_slice %155 {offsets = [24, 0], sizes = [8, 128], strides = [1, 1]} : vector<128x128xf32> to vector<8x128xf32>
    %163 = arith.minimumf %161, %162 : vector<8x128xf32>
    %164 = vector.extract_strided_slice %155 {offsets = [32, 0], sizes = [8, 128], strides = [1, 1]} : vector<128x128xf32> to vector<8x128xf32>
    %165 = arith.minimumf %163, %164 : vector<8x128xf32>
    %166 = vector.extract_strided_slice %155 {offsets = [40, 0], sizes = [8, 128], strides = [1, 1]} : vector<128x128xf32> to vector<8x128xf32>
    %167 = arith.minimumf %165, %166 : vector<8x128xf32>
    %168 = vector.extract_strided_slice %155 {offsets = [48, 0], sizes = [8, 128], strides = [1, 1]} : vector<128x128xf32> to vector<8x128xf32>
    %169 = arith.minimumf %167, %168 : vector<8x128xf32>
    %170 = vector.extract_strided_slice %155 {offsets = [56, 0], sizes = [8, 128], strides = [1, 1]} : vector<128x128xf32> to vector<8x128xf32>
    %171 = arith.minimumf %169, %170 : vector<8x128xf32>
    %172 = vector.extract_strided_slice %155 {offsets = [64, 0], sizes = [8, 128], strides = [1, 1]} : vector<128x128xf32> to vector<8x128xf32>
    %173 = arith.minimumf %171, %172 : vector<8x128xf32>
    %174 = vector.extract_strided_slice %155 {offsets = [72, 0], sizes = [8, 128], strides = [1, 1]} : vector<128x128xf32> to vector<8x128xf32>
    %175 = arith.minimumf %173, %174 : vector<8x128xf32>
    %176 = vector.extract_strided_slice %155 {offsets = [80, 0], sizes = [8, 128], strides = [1, 1]} : vector<128x128xf32> to vector<8x128xf32>
    %177 = arith.minimumf %175, %176 : vector<8x128xf32>
    %178 = vector.extract_strided_slice %155 {offsets = [88, 0], sizes = [8, 128], strides = [1, 1]} : vector<128x128xf32> to vector<8x128xf32>
    %179 = arith.minimumf %177, %178 : vector<8x128xf32>
    %180 = vector.extract_strided_slice %155 {offsets = [96, 0], sizes = [8, 128], strides = [1, 1]} : vector<128x128xf32> to vector<8x128xf32>
    %181 = arith.minimumf %179, %180 : vector<8x128xf32>
    %182 = vector.extract_strided_slice %155 {offsets = [104, 0], sizes = [8, 128], strides = [1, 1]} : vector<128x128xf32> to vector<8x128xf32>
    %183 = arith.minimumf %181, %182 : vector<8x128xf32>
    %184 = vector.extract_strided_slice %155 {offsets = [112, 0], sizes = [8, 128], strides = [1, 1]} : vector<128x128xf32> to vector<8x128xf32>
    %185 = arith.minimumf %183, %184 : vector<8x128xf32>
    %186 = vector.extract_strided_slice %155 {offsets = [120, 0], sizes = [8, 128], strides = [1, 1]} : vector<128x128xf32> to vector<8x128xf32>
    %187 = arith.minimumf %185, %186 : vector<8x128xf32>
    %188 = arith.index_cast %arg2 : i32 to index
    %c0_62 = arith.constant 0 : index
    %c256_63 = arith.constant 256 : index
    %189 = vector.load %arg8[%188, %c0_62, %c256_63] : memref<1x8x384xf32, #tpu.memory_space<vmem>>, vector<1x8x128xf32>
    %190 = vector.shape_cast %189 : vector<1x8x128xf32> to vector<8x128xf32>
    %191 = arith.minimumf %190, %187 : vector<8x128xf32>
    %192 = arith.index_cast %arg2 : i32 to index
    %c0_64 = arith.constant 0 : index
    %c256_65 = arith.constant 256 : index
    %193 = vector.load %arg8[%192, %c0_64, %c256_65] : memref<1x8x384xf32, #tpu.memory_space<vmem>>, vector<1x8x128xf32>
    %194 = vector.shape_cast %193 : vector<1x8x128xf32> to vector<8x128xf32>
    %195 = vector.shape_cast %191 : vector<8x128xf32> to vector<1x8x128xf32>
    tpu.vector_store %arg8[%192, %c0_64, %c256_65], %195 {strides = array<i32>} : memref<1x8x384xf32, #tpu.memory_space<vmem>>, vector<1x8x128xf32>,
    %c0_66 = arith.constant 0 : index
    %c0_67 = arith.constant 0 : index
    %196 = vector.load %arg7[%c0_66, %c0_67] : memref<384x128xf32, #tpu.memory_space<vmem>>, vector<128x128xf32>
    tpu.vector_store %arg7[%c0_66, %c0_67], %156 {strides = array<i32>} : memref<384x128xf32, #tpu.memory_space<vmem>>, vector<128x128xf32>,
    %c128_68 = arith.constant 128 : index
    %c0_69 = arith.constant 0 : index
    %197 = vector.load %arg7[%c128_68, %c0_69] : memref<384x128xf32, #tpu.memory_space<vmem>>, vector<128x128xf32>
    %c0_70 = arith.constant 0 : index
    %c128_71 = arith.constant 128 : index
    %c0_72 = arith.constant 0 : index
    %198 = vector.load %arg9[%c0_70, %c128_71, %c0_72] : memref<3x384x128xf32, #tpu.memory_space<vmem>>, vector<1x128x128xf32>
    %199 = vector.shape_cast %198 : vector<1x128x128xf32> to vector<128x128xf32>
    %c0_73 = arith.constant 0 : index
    %c0_74 = arith.constant 0 : index
    %c0_75 = arith.constant 0 : index
    %200 = vector.load %arg4[%c0_73, %c0_74, %c0_75] : memref<1x3x384xf32, #tpu.memory_space<vmem>>, vector<1x1x128xf32>
    %201 = vector.shape_cast %200 : vector<1x1x128xf32> to vector<1x128xf32>
    %202 = vector.broadcast %201 : vector<1x128xf32> to vector<128x128xf32>
    %203 = arith.subf %199, %202 : vector<128x128xf32>
    %204 = arith.mulf %203, %203 : vector<128x128xf32>
    %c1_76 = arith.constant 1 : index
    %c128_77 = arith.constant 128 : index
    %c0_78 = arith.constant 0 : index
    %205 = vector.load %arg9[%c1_76, %c128_77, %c0_78] : memref<3x384x128xf32, #tpu.memory_space<vmem>>, vector<1x128x128xf32>
    %206 = vector.shape_cast %205 : vector<1x128x128xf32> to vector<128x128xf32>
    %c0_79 = arith.constant 0 : index
    %c1_80 = arith.constant 1 : index
    %c0_81 = arith.constant 0 : index
    %207 = vector.load %arg4[%c0_79, %c1_80, %c0_81] : memref<1x3x384xf32, #tpu.memory_space<vmem>>, vector<1x1x128xf32>
    %208 = vector.shape_cast %207 : vector<1x1x128xf32> to vector<1x128xf32>
    %209 = vector.broadcast %208 : vector<1x128xf32> to vector<128x128xf32>
    %210 = arith.subf %206, %209 : vector<128x128xf32>
    %211 = arith.mulf %210, %210 : vector<128x128xf32>
    %212 = arith.addf %204, %211 : vector<128x128xf32>
    %c2_82 = arith.constant 2 : index
    %c128_83 = arith.constant 128 : index
    %c0_84 = arith.constant 0 : index
    %213 = vector.load %arg9[%c2_82, %c128_83, %c0_84] : memref<3x384x128xf32, #tpu.memory_space<vmem>>, vector<1x128x128xf32>
    %214 = vector.shape_cast %213 : vector<1x128x128xf32> to vector<128x128xf32>
    %c0_85 = arith.constant 0 : index
    %c2_86 = arith.constant 2 : index
    %c0_87 = arith.constant 0 : index
    %215 = vector.load %arg4[%c0_85, %c2_86, %c0_87] : memref<1x3x384xf32, #tpu.memory_space<vmem>>, vector<1x1x128xf32>
    %216 = vector.shape_cast %215 : vector<1x1x128xf32> to vector<1x128xf32>
    %217 = vector.broadcast %216 : vector<1x128xf32> to vector<128x128xf32>
    %218 = arith.subf %214, %217 : vector<128x128xf32>
    %219 = arith.mulf %218, %218 : vector<128x128xf32>
    %220 = arith.addf %212, %219 : vector<128x128xf32>
    %221 = arith.minimumf %197, %220 : vector<128x128xf32>
    %222 = vector.extract_strided_slice %220 {offsets = [0, 0], sizes = [8, 128], strides = [1, 1]} : vector<128x128xf32> to vector<8x128xf32>
    %223 = vector.extract_strided_slice %220 {offsets = [8, 0], sizes = [8, 128], strides = [1, 1]} : vector<128x128xf32> to vector<8x128xf32>
    %224 = arith.minimumf %222, %223 : vector<8x128xf32>
    %225 = vector.extract_strided_slice %220 {offsets = [16, 0], sizes = [8, 128], strides = [1, 1]} : vector<128x128xf32> to vector<8x128xf32>
    %226 = arith.minimumf %224, %225 : vector<8x128xf32>
    %227 = vector.extract_strided_slice %220 {offsets = [24, 0], sizes = [8, 128], strides = [1, 1]} : vector<128x128xf32> to vector<8x128xf32>
    %228 = arith.minimumf %226, %227 : vector<8x128xf32>
    %229 = vector.extract_strided_slice %220 {offsets = [32, 0], sizes = [8, 128], strides = [1, 1]} : vector<128x128xf32> to vector<8x128xf32>
    %230 = arith.minimumf %228, %229 : vector<8x128xf32>
    %231 = vector.extract_strided_slice %220 {offsets = [40, 0], sizes = [8, 128], strides = [1, 1]} : vector<128x128xf32> to vector<8x128xf32>
    %232 = arith.minimumf %230, %231 : vector<8x128xf32>
    %233 = vector.extract_strided_slice %220 {offsets = [48, 0], sizes = [8, 128], strides = [1, 1]} : vector<128x128xf32> to vector<8x128xf32>
    %234 = arith.minimumf %232, %233 : vector<8x128xf32>
    %235 = vector.extract_strided_slice %220 {offsets = [56, 0], sizes = [8, 128], strides = [1, 1]} : vector<128x128xf32> to vector<8x128xf32>
    %236 = arith.minimumf %234, %235 : vector<8x128xf32>
    %237 = vector.extract_strided_slice %220 {offsets = [64, 0], sizes = [8, 128], strides = [1, 1]} : vector<128x128xf32> to vector<8x128xf32>
    %238 = arith.minimumf %236, %237 : vector<8x128xf32>
    %239 = vector.extract_strided_slice %220 {offsets = [72, 0], sizes = [8, 128], strides = [1, 1]} : vector<128x128xf32> to vector<8x128xf32>
    %240 = arith.minimumf %238, %239 : vector<8x128xf32>
    %241 = vector.extract_strided_slice %220 {offsets = [80, 0], sizes = [8, 128], strides = [1, 1]} : vector<128x128xf32> to vector<8x128xf32>
    %242 = arith.minimumf %240, %241 : vector<8x128xf32>
    %243 = vector.extract_strided_slice %220 {offsets = [88, 0], sizes = [8, 128], strides = [1, 1]} : vector<128x128xf32> to vector<8x128xf32>
    %244 = arith.minimumf %242, %243 : vector<8x128xf32>
    %245 = vector.extract_strided_slice %220 {offsets = [96, 0], sizes = [8, 128], strides = [1, 1]} : vector<128x128xf32> to vector<8x128xf32>
    %246 = arith.minimumf %244, %245 : vector<8x128xf32>
    %247 = vector.extract_strided_slice %220 {offsets = [104, 0], sizes = [8, 128], strides = [1, 1]} : vector<128x128xf32> to vector<8x128xf32>
    %248 = arith.minimumf %246, %247 : vector<8x128xf32>
    %249 = vector.extract_strided_slice %220 {offsets = [112, 0], sizes = [8, 128], strides = [1, 1]} : vector<128x128xf32> to vector<8x128xf32>
    %250 = arith.minimumf %248, %249 : vector<8x128xf32>
    %251 = vector.extract_strided_slice %220 {offsets = [120, 0], sizes = [8, 128], strides = [1, 1]} : vector<128x128xf32> to vector<8x128xf32>
    %252 = arith.minimumf %250, %251 : vector<8x128xf32>
    %253 = arith.index_cast %arg2 : i32 to index
    %c0_88 = arith.constant 0 : index
    %c0_89 = arith.constant 0 : index
    %254 = vector.load %arg8[%253, %c0_88, %c0_89] : memref<1x8x384xf32, #tpu.memory_space<vmem>>, vector<1x8x128xf32>
    %255 = vector.shape_cast %254 : vector<1x8x128xf32> to vector<8x128xf32>
    %256 = arith.minimumf %255, %252 : vector<8x128xf32>
    %257 = arith.index_cast %arg2 : i32 to index
    %c0_90 = arith.constant 0 : index
    %c0_91 = arith.constant 0 : index
    %258 = vector.load %arg8[%257, %c0_90, %c0_91] : memref<1x8x384xf32, #tpu.memory_space<vmem>>, vector<1x8x128xf32>
    %259 = vector.shape_cast %258 : vector<1x8x128xf32> to vector<8x128xf32>
    %260 = vector.shape_cast %256 : vector<8x128xf32> to vector<1x8x128xf32>
    tpu.vector_store %arg8[%257, %c0_90, %c0_91], %260 {strides = array<i32>} : memref<1x8x384xf32, #tpu.memory_space<vmem>>, vector<1x8x128xf32>,
    %c0_92 = arith.constant 0 : index
    %c128_93 = arith.constant 128 : index
    %c0_94 = arith.constant 0 : index
    %261 = vector.load %arg9[%c0_92, %c128_93, %c0_94] : memref<3x384x128xf32, #tpu.memory_space<vmem>>, vector<1x128x128xf32>
    %262 = vector.shape_cast %261 : vector<1x128x128xf32> to vector<128x128xf32>
    %c0_95 = arith.constant 0 : index
    %c0_96 = arith.constant 0 : index
    %c128_97 = arith.constant 128 : index
    %263 = vector.load %arg4[%c0_95, %c0_96, %c128_97] : memref<1x3x384xf32, #tpu.memory_space<vmem>>, vector<1x1x128xf32>
    %264 = vector.shape_cast %263 : vector<1x1x128xf32> to vector<1x128xf32>
    %265 = vector.broadcast %264 : vector<1x128xf32> to vector<128x128xf32>
    %266 = arith.subf %262, %265 : vector<128x128xf32>
    %267 = arith.mulf %266, %266 : vector<128x128xf32>
    %c1_98 = arith.constant 1 : index
    %c128_99 = arith.constant 128 : index
    %c0_100 = arith.constant 0 : index
    %268 = vector.load %arg9[%c1_98, %c128_99, %c0_100] : memref<3x384x128xf32, #tpu.memory_space<vmem>>, vector<1x128x128xf32>
    %269 = vector.shape_cast %268 : vector<1x128x128xf32> to vector<128x128xf32>
    %c0_101 = arith.constant 0 : index
    %c1_102 = arith.constant 1 : index
    %c128_103 = arith.constant 128 : index
    %270 = vector.load %arg4[%c0_101, %c1_102, %c128_103] : memref<1x3x384xf32, #tpu.memory_space<vmem>>, vector<1x1x128xf32>
    %271 = vector.shape_cast %270 : vector<1x1x128xf32> to vector<1x128xf32>
    %272 = vector.broadcast %271 : vector<1x128xf32> to vector<128x128xf32>
    %273 = arith.subf %269, %272 : vector<128x128xf32>
    %274 = arith.mulf %273, %273 : vector<128x128xf32>
    %275 = arith.addf %267, %274 : vector<128x128xf32>
    %c2_104 = arith.constant 2 : index
    %c128_105 = arith.constant 128 : index
    %c0_106 = arith.constant 0 : index
    %276 = vector.load %arg9[%c2_104, %c128_105, %c0_106] : memref<3x384x128xf32, #tpu.memory_space<vmem>>, vector<1x128x128xf32>
    %277 = vector.shape_cast %276 : vector<1x128x128xf32> to vector<128x128xf32>
    %c0_107 = arith.constant 0 : index
    %c2_108 = arith.constant 2 : index
    %c128_109 = arith.constant 128 : index
    %278 = vector.load %arg4[%c0_107, %c2_108, %c128_109] : memref<1x3x384xf32, #tpu.memory_space<vmem>>, vector<1x1x128xf32>
    %279 = vector.shape_cast %278 : vector<1x1x128xf32> to vector<1x128xf32>
    %280 = vector.broadcast %279 : vector<1x128xf32> to vector<128x128xf32>
    %281 = arith.subf %277, %280 : vector<128x128xf32>
    %282 = arith.mulf %281, %281 : vector<128x128xf32>
    %283 = arith.addf %275, %282 : vector<128x128xf32>
    %284 = arith.minimumf %221, %283 : vector<128x128xf32>
    %285 = vector.extract_strided_slice %283 {offsets = [0, 0], sizes = [8, 128], strides = [1, 1]} : vector<128x128xf32> to vector<8x128xf32>
    %286 = vector.extract_strided_slice %283 {offsets = [8, 0], sizes = [8, 128], strides = [1, 1]} : vector<128x128xf32> to vector<8x128xf32>
    %287 = arith.minimumf %285, %286 : vector<8x128xf32>
    %288 = vector.extract_strided_slice %283 {offsets = [16, 0], sizes = [8, 128], strides = [1, 1]} : vector<128x128xf32> to vector<8x128xf32>
    %289 = arith.minimumf %287, %288 : vector<8x128xf32>
    %290 = vector.extract_strided_slice %283 {offsets = [24, 0], sizes = [8, 128], strides = [1, 1]} : vector<128x128xf32> to vector<8x128xf32>
    %291 = arith.minimumf %289, %290 : vector<8x128xf32>
    %292 = vector.extract_strided_slice %283 {offsets = [32, 0], sizes = [8, 128], strides = [1, 1]} : vector<128x128xf32> to vector<8x128xf32>
    %293 = arith.minimumf %291, %292 : vector<8x128xf32>
    %294 = vector.extract_strided_slice %283 {offsets = [40, 0], sizes = [8, 128], strides = [1, 1]} : vector<128x128xf32> to vector<8x128xf32>
    %295 = arith.minimumf %293, %294 : vector<8x128xf32>
    %296 = vector.extract_strided_slice %283 {offsets = [48, 0], sizes = [8, 128], strides = [1, 1]} : vector<128x128xf32> to vector<8x128xf32>
    %297 = arith.minimumf %295, %296 : vector<8x128xf32>
    %298 = vector.extract_strided_slice %283 {offsets = [56, 0], sizes = [8, 128], strides = [1, 1]} : vector<128x128xf32> to vector<8x128xf32>
    %299 = arith.minimumf %297, %298 : vector<8x128xf32>
    %300 = vector.extract_strided_slice %283 {offsets = [64, 0], sizes = [8, 128], strides = [1, 1]} : vector<128x128xf32> to vector<8x128xf32>
    %301 = arith.minimumf %299, %300 : vector<8x128xf32>
    %302 = vector.extract_strided_slice %283 {offsets = [72, 0], sizes = [8, 128], strides = [1, 1]} : vector<128x128xf32> to vector<8x128xf32>
    %303 = arith.minimumf %301, %302 : vector<8x128xf32>
    %304 = vector.extract_strided_slice %283 {offsets = [80, 0], sizes = [8, 128], strides = [1, 1]} : vector<128x128xf32> to vector<8x128xf32>
    %305 = arith.minimumf %303, %304 : vector<8x128xf32>
    %306 = vector.extract_strided_slice %283 {offsets = [88, 0], sizes = [8, 128], strides = [1, 1]} : vector<128x128xf32> to vector<8x128xf32>
    %307 = arith.minimumf %305, %306 : vector<8x128xf32>
    %308 = vector.extract_strided_slice %283 {offsets = [96, 0], sizes = [8, 128], strides = [1, 1]} : vector<128x128xf32> to vector<8x128xf32>
    %309 = arith.minimumf %307, %308 : vector<8x128xf32>
    %310 = vector.extract_strided_slice %283 {offsets = [104, 0], sizes = [8, 128], strides = [1, 1]} : vector<128x128xf32> to vector<8x128xf32>
    %311 = arith.minimumf %309, %310 : vector<8x128xf32>
    %312 = vector.extract_strided_slice %283 {offsets = [112, 0], sizes = [8, 128], strides = [1, 1]} : vector<128x128xf32> to vector<8x128xf32>
    %313 = arith.minimumf %311, %312 : vector<8x128xf32>
    %314 = vector.extract_strided_slice %283 {offsets = [120, 0], sizes = [8, 128], strides = [1, 1]} : vector<128x128xf32> to vector<8x128xf32>
    %315 = arith.minimumf %313, %314 : vector<8x128xf32>
    %316 = arith.index_cast %arg2 : i32 to index
    %c0_110 = arith.constant 0 : index
    %c128_111 = arith.constant 128 : index
    %317 = vector.load %arg8[%316, %c0_110, %c128_111] : memref<1x8x384xf32, #tpu.memory_space<vmem>>, vector<1x8x128xf32>
    %318 = vector.shape_cast %317 : vector<1x8x128xf32> to vector<8x128xf32>
    %319 = arith.minimumf %318, %315 : vector<8x128xf32>
    %320 = arith.index_cast %arg2 : i32 to index
    %c0_112 = arith.constant 0 : index
    %c128_113 = arith.constant 128 : index
    %321 = vector.load %arg8[%320, %c0_112, %c128_113] : memref<1x8x384xf32, #tpu.memory_space<vmem>>, vector<1x8x128xf32>
    %322 = vector.shape_cast %321 : vector<1x8x128xf32> to vector<8x128xf32>
    %323 = vector.shape_cast %319 : vector<8x128xf32> to vector<1x8x128xf32>
    tpu.vector_store %arg8[%320, %c0_112, %c128_113], %323 {strides = array<i32>} : memref<1x8x384xf32, #tpu.memory_space<vmem>>, vector<1x8x128xf32>,
    %c0_114 = arith.constant 0 : index
    %c128_115 = arith.constant 128 : index
    %c0_116 = arith.constant 0 : index
    %324 = vector.load %arg9[%c0_114, %c128_115, %c0_116] : memref<3x384x128xf32, #tpu.memory_space<vmem>>, vector<1x128x128xf32>
    %325 = vector.shape_cast %324 : vector<1x128x128xf32> to vector<128x128xf32>
    %c0_117 = arith.constant 0 : index
    %c0_118 = arith.constant 0 : index
    %c256_119 = arith.constant 256 : index
    %326 = vector.load %arg4[%c0_117, %c0_118, %c256_119] : memref<1x3x384xf32, #tpu.memory_space<vmem>>, vector<1x1x128xf32>
    %327 = vector.shape_cast %326 : vector<1x1x128xf32> to vector<1x128xf32>
    %328 = vector.broadcast %327 : vector<1x128xf32> to vector<128x128xf32>
    %329 = arith.subf %325, %328 : vector<128x128xf32>
    %330 = arith.mulf %329, %329 : vector<128x128xf32>
    %c1_120 = arith.constant 1 : index
    %c128_121 = arith.constant 128 : index
    %c0_122 = arith.constant 0 : index
    %331 = vector.load %arg9[%c1_120, %c128_121, %c0_122] : memref<3x384x128xf32, #tpu.memory_space<vmem>>, vector<1x128x128xf32>
    %332 = vector.shape_cast %331 : vector<1x128x128xf32> to vector<128x128xf32>
    %c0_123 = arith.constant 0 : index
    %c1_124 = arith.constant 1 : index
    %c256_125 = arith.constant 256 : index
    %333 = vector.load %arg4[%c0_123, %c1_124, %c256_125] : memref<1x3x384xf32, #tpu.memory_space<vmem>>, vector<1x1x128xf32>
    %334 = vector.shape_cast %333 : vector<1x1x128xf32> to vector<1x128xf32>
    %335 = vector.broadcast %334 : vector<1x128xf32> to vector<128x128xf32>
    %336 = arith.subf %332, %335 : vector<128x128xf32>
    %337 = arith.mulf %336, %336 : vector<128x128xf32>
    %338 = arith.addf %330, %337 : vector<128x128xf32>
    %c2_126 = arith.constant 2 : index
    %c128_127 = arith.constant 128 : index
    %c0_128 = arith.constant 0 : index
    %339 = vector.load %arg9[%c2_126, %c128_127, %c0_128] : memref<3x384x128xf32, #tpu.memory_space<vmem>>, vector<1x128x128xf32>
    %340 = vector.shape_cast %339 : vector<1x128x128xf32> to vector<128x128xf32>
    %c0_129 = arith.constant 0 : index
    %c2_130 = arith.constant 2 : index
    %c256_131 = arith.constant 256 : index
    %341 = vector.load %arg4[%c0_129, %c2_130, %c256_131] : memref<1x3x384xf32, #tpu.memory_space<vmem>>, vector<1x1x128xf32>
    %342 = vector.shape_cast %341 : vector<1x1x128xf32> to vector<1x128xf32>
    %343 = vector.broadcast %342 : vector<1x128xf32> to vector<128x128xf32>
    %344 = arith.subf %340, %343 : vector<128x128xf32>
    %345 = arith.mulf %344, %344 : vector<128x128xf32>
    %346 = arith.addf %338, %345 : vector<128x128xf32>
    %347 = arith.minimumf %284, %346 : vector<128x128xf32>
    %348 = vector.extract_strided_slice %346 {offsets = [0, 0], sizes = [8, 128], strides = [1, 1]} : vector<128x128xf32> to vector<8x128xf32>
    %349 = vector.extract_strided_slice %346 {offsets = [8, 0], sizes = [8, 128], strides = [1, 1]} : vector<128x128xf32> to vector<8x128xf32>
    %350 = arith.minimumf %348, %349 : vector<8x128xf32>
    %351 = vector.extract_strided_slice %346 {offsets = [16, 0], sizes = [8, 128], strides = [1, 1]} : vector<128x128xf32> to vector<8x128xf32>
    %352 = arith.minimumf %350, %351 : vector<8x128xf32>
    %353 = vector.extract_strided_slice %346 {offsets = [24, 0], sizes = [8, 128], strides = [1, 1]} : vector<128x128xf32> to vector<8x128xf32>
    %354 = arith.minimumf %352, %353 : vector<8x128xf32>
    %355 = vector.extract_strided_slice %346 {offsets = [32, 0], sizes = [8, 128], strides = [1, 1]} : vector<128x128xf32> to vector<8x128xf32>
    %356 = arith.minimumf %354, %355 : vector<8x128xf32>
    %357 = vector.extract_strided_slice %346 {offsets = [40, 0], sizes = [8, 128], strides = [1, 1]} : vector<128x128xf32> to vector<8x128xf32>
    %358 = arith.minimumf %356, %357 : vector<8x128xf32>
    %359 = vector.extract_strided_slice %346 {offsets = [48, 0], sizes = [8, 128], strides = [1, 1]} : vector<128x128xf32> to vector<8x128xf32>
    %360 = arith.minimumf %358, %359 : vector<8x128xf32>
    %361 = vector.extract_strided_slice %346 {offsets = [56, 0], sizes = [8, 128], strides = [1, 1]} : vector<128x128xf32> to vector<8x128xf32>
    %362 = arith.minimumf %360, %361 : vector<8x128xf32>
    %363 = vector.extract_strided_slice %346 {offsets = [64, 0], sizes = [8, 128], strides = [1, 1]} : vector<128x128xf32> to vector<8x128xf32>
    %364 = arith.minimumf %362, %363 : vector<8x128xf32>
    %365 = vector.extract_strided_slice %346 {offsets = [72, 0], sizes = [8, 128], strides = [1, 1]} : vector<128x128xf32> to vector<8x128xf32>
    %366 = arith.minimumf %364, %365 : vector<8x128xf32>
    %367 = vector.extract_strided_slice %346 {offsets = [80, 0], sizes = [8, 128], strides = [1, 1]} : vector<128x128xf32> to vector<8x128xf32>
    %368 = arith.minimumf %366, %367 : vector<8x128xf32>
    %369 = vector.extract_strided_slice %346 {offsets = [88, 0], sizes = [8, 128], strides = [1, 1]} : vector<128x128xf32> to vector<8x128xf32>
    %370 = arith.minimumf %368, %369 : vector<8x128xf32>
    %371 = vector.extract_strided_slice %346 {offsets = [96, 0], sizes = [8, 128], strides = [1, 1]} : vector<128x128xf32> to vector<8x128xf32>
    %372 = arith.minimumf %370, %371 : vector<8x128xf32>
    %373 = vector.extract_strided_slice %346 {offsets = [104, 0], sizes = [8, 128], strides = [1, 1]} : vector<128x128xf32> to vector<8x128xf32>
    %374 = arith.minimumf %372, %373 : vector<8x128xf32>
    %375 = vector.extract_strided_slice %346 {offsets = [112, 0], sizes = [8, 128], strides = [1, 1]} : vector<128x128xf32> to vector<8x128xf32>
    %376 = arith.minimumf %374, %375 : vector<8x128xf32>
    %377 = vector.extract_strided_slice %346 {offsets = [120, 0], sizes = [8, 128], strides = [1, 1]} : vector<128x128xf32> to vector<8x128xf32>
    %378 = arith.minimumf %376, %377 : vector<8x128xf32>
    %379 = arith.index_cast %arg2 : i32 to index
    %c0_132 = arith.constant 0 : index
    %c256_133 = arith.constant 256 : index
    %380 = vector.load %arg8[%379, %c0_132, %c256_133] : memref<1x8x384xf32, #tpu.memory_space<vmem>>, vector<1x8x128xf32>
    %381 = vector.shape_cast %380 : vector<1x8x128xf32> to vector<8x128xf32>
    %382 = arith.minimumf %381, %378 : vector<8x128xf32>
    %383 = arith.index_cast %arg2 : i32 to index
    %c0_134 = arith.constant 0 : index
    %c256_135 = arith.constant 256 : index
    %384 = vector.load %arg8[%383, %c0_134, %c256_135] : memref<1x8x384xf32, #tpu.memory_space<vmem>>, vector<1x8x128xf32>
    %385 = vector.shape_cast %384 : vector<1x8x128xf32> to vector<8x128xf32>
    %386 = vector.shape_cast %382 : vector<8x128xf32> to vector<1x8x128xf32>
    tpu.vector_store %arg8[%383, %c0_134, %c256_135], %386 {strides = array<i32>} : memref<1x8x384xf32, #tpu.memory_space<vmem>>, vector<1x8x128xf32>,
    %c128_136 = arith.constant 128 : index
    %c0_137 = arith.constant 0 : index
    %387 = vector.load %arg7[%c128_136, %c0_137] : memref<384x128xf32, #tpu.memory_space<vmem>>, vector<128x128xf32>
    tpu.vector_store %arg7[%c128_136, %c0_137], %347 {strides = array<i32>} : memref<384x128xf32, #tpu.memory_space<vmem>>, vector<128x128xf32>,
    %c256_138 = arith.constant 256 : index
    %c0_139 = arith.constant 0 : index
    %388 = vector.load %arg7[%c256_138, %c0_139] : memref<384x128xf32, #tpu.memory_space<vmem>>, vector<128x128xf32>
    %c0_140 = arith.constant 0 : index
    %c256_141 = arith.constant 256 : index
    %c0_142 = arith.constant 0 : index
    %389 = vector.load %arg9[%c0_140, %c256_141, %c0_142] : memref<3x384x128xf32, #tpu.memory_space<vmem>>, vector<1x128x128xf32>
    %390 = vector.shape_cast %389 : vector<1x128x128xf32> to vector<128x128xf32>
    %c0_143 = arith.constant 0 : index
    %c0_144 = arith.constant 0 : index
    %c0_145 = arith.constant 0 : index
    %391 = vector.load %arg4[%c0_143, %c0_144, %c0_145] : memref<1x3x384xf32, #tpu.memory_space<vmem>>, vector<1x1x128xf32>
    %392 = vector.shape_cast %391 : vector<1x1x128xf32> to vector<1x128xf32>
    %393 = vector.broadcast %392 : vector<1x128xf32> to vector<128x128xf32>
    %394 = arith.subf %390, %393 : vector<128x128xf32>
    %395 = arith.mulf %394, %394 : vector<128x128xf32>
    %c1_146 = arith.constant 1 : index
    %c256_147 = arith.constant 256 : index
    %c0_148 = arith.constant 0 : index
    %396 = vector.load %arg9[%c1_146, %c256_147, %c0_148] : memref<3x384x128xf32, #tpu.memory_space<vmem>>, vector<1x128x128xf32>
    %397 = vector.shape_cast %396 : vector<1x128x128xf32> to vector<128x128xf32>
    %c0_149 = arith.constant 0 : index
    %c1_150 = arith.constant 1 : index
    %c0_151 = arith.constant 0 : index
    %398 = vector.load %arg4[%c0_149, %c1_150, %c0_151] : memref<1x3x384xf32, #tpu.memory_space<vmem>>, vector<1x1x128xf32>
    %399 = vector.shape_cast %398 : vector<1x1x128xf32> to vector<1x128xf32>
    %400 = vector.broadcast %399 : vector<1x128xf32> to vector<128x128xf32>
    %401 = arith.subf %397, %400 : vector<128x128xf32>
    %402 = arith.mulf %401, %401 : vector<128x128xf32>
    %403 = arith.addf %395, %402 : vector<128x128xf32>
    %c2_152 = arith.constant 2 : index
    %c256_153 = arith.constant 256 : index
    %c0_154 = arith.constant 0 : index
    %404 = vector.load %arg9[%c2_152, %c256_153, %c0_154] : memref<3x384x128xf32, #tpu.memory_space<vmem>>, vector<1x128x128xf32>
    %405 = vector.shape_cast %404 : vector<1x128x128xf32> to vector<128x128xf32>
    %c0_155 = arith.constant 0 : index
    %c2_156 = arith.constant 2 : index
    %c0_157 = arith.constant 0 : index
    %406 = vector.load %arg4[%c0_155, %c2_156, %c0_157] : memref<1x3x384xf32, #tpu.memory_space<vmem>>, vector<1x1x128xf32>
    %407 = vector.shape_cast %406 : vector<1x1x128xf32> to vector<1x128xf32>
    %408 = vector.broadcast %407 : vector<1x128xf32> to vector<128x128xf32>
    %409 = arith.subf %405, %408 : vector<128x128xf32>
    %410 = arith.mulf %409, %409 : vector<128x128xf32>
    %411 = arith.addf %403, %410 : vector<128x128xf32>
    %412 = arith.minimumf %388, %411 : vector<128x128xf32>
    %413 = vector.extract_strided_slice %411 {offsets = [0, 0], sizes = [8, 128], strides = [1, 1]} : vector<128x128xf32> to vector<8x128xf32>
    %414 = vector.extract_strided_slice %411 {offsets = [8, 0], sizes = [8, 128], strides = [1, 1]} : vector<128x128xf32> to vector<8x128xf32>
    %415 = arith.minimumf %413, %414 : vector<8x128xf32>
    %416 = vector.extract_strided_slice %411 {offsets = [16, 0], sizes = [8, 128], strides = [1, 1]} : vector<128x128xf32> to vector<8x128xf32>
    %417 = arith.minimumf %415, %416 : vector<8x128xf32>
    %418 = vector.extract_strided_slice %411 {offsets = [24, 0], sizes = [8, 128], strides = [1, 1]} : vector<128x128xf32> to vector<8x128xf32>
    %419 = arith.minimumf %417, %418 : vector<8x128xf32>
    %420 = vector.extract_strided_slice %411 {offsets = [32, 0], sizes = [8, 128], strides = [1, 1]} : vector<128x128xf32> to vector<8x128xf32>
    %421 = arith.minimumf %419, %420 : vector<8x128xf32>
    %422 = vector.extract_strided_slice %411 {offsets = [40, 0], sizes = [8, 128], strides = [1, 1]} : vector<128x128xf32> to vector<8x128xf32>
    %423 = arith.minimumf %421, %422 : vector<8x128xf32>
    %424 = vector.extract_strided_slice %411 {offsets = [48, 0], sizes = [8, 128], strides = [1, 1]} : vector<128x128xf32> to vector<8x128xf32>
    %425 = arith.minimumf %423, %424 : vector<8x128xf32>
    %426 = vector.extract_strided_slice %411 {offsets = [56, 0], sizes = [8, 128], strides = [1, 1]} : vector<128x128xf32> to vector<8x128xf32>
    %427 = arith.minimumf %425, %426 : vector<8x128xf32>
    %428 = vector.extract_strided_slice %411 {offsets = [64, 0], sizes = [8, 128], strides = [1, 1]} : vector<128x128xf32> to vector<8x128xf32>
    %429 = arith.minimumf %427, %428 : vector<8x128xf32>
    %430 = vector.extract_strided_slice %411 {offsets = [72, 0], sizes = [8, 128], strides = [1, 1]} : vector<128x128xf32> to vector<8x128xf32>
    %431 = arith.minimumf %429, %430 : vector<8x128xf32>
    %432 = vector.extract_strided_slice %411 {offsets = [80, 0], sizes = [8, 128], strides = [1, 1]} : vector<128x128xf32> to vector<8x128xf32>
    %433 = arith.minimumf %431, %432 : vector<8x128xf32>
    %434 = vector.extract_strided_slice %411 {offsets = [88, 0], sizes = [8, 128], strides = [1, 1]} : vector<128x128xf32> to vector<8x128xf32>
    %435 = arith.minimumf %433, %434 : vector<8x128xf32>
    %436 = vector.extract_strided_slice %411 {offsets = [96, 0], sizes = [8, 128], strides = [1, 1]} : vector<128x128xf32> to vector<8x128xf32>
    %437 = arith.minimumf %435, %436 : vector<8x128xf32>
    %438 = vector.extract_strided_slice %411 {offsets = [104, 0], sizes = [8, 128], strides = [1, 1]} : vector<128x128xf32> to vector<8x128xf32>
    %439 = arith.minimumf %437, %438 : vector<8x128xf32>
    %440 = vector.extract_strided_slice %411 {offsets = [112, 0], sizes = [8, 128], strides = [1, 1]} : vector<128x128xf32> to vector<8x128xf32>
    %441 = arith.minimumf %439, %440 : vector<8x128xf32>
    %442 = vector.extract_strided_slice %411 {offsets = [120, 0], sizes = [8, 128], strides = [1, 1]} : vector<128x128xf32> to vector<8x128xf32>
    %443 = arith.minimumf %441, %442 : vector<8x128xf32>
    %444 = arith.index_cast %arg2 : i32 to index
    %c0_158 = arith.constant 0 : index
    %c0_159 = arith.constant 0 : index
    %445 = vector.load %arg8[%444, %c0_158, %c0_159] : memref<1x8x384xf32, #tpu.memory_space<vmem>>, vector<1x8x128xf32>
    %446 = vector.shape_cast %445 : vector<1x8x128xf32> to vector<8x128xf32>
    %447 = arith.minimumf %446, %443 : vector<8x128xf32>
    %448 = arith.index_cast %arg2 : i32 to index
    %c0_160 = arith.constant 0 : index
    %c0_161 = arith.constant 0 : index
    %449 = vector.load %arg8[%448, %c0_160, %c0_161] : memref<1x8x384xf32, #tpu.memory_space<vmem>>, vector<1x8x128xf32>
    %450 = vector.shape_cast %449 : vector<1x8x128xf32> to vector<8x128xf32>
    %451 = vector.shape_cast %447 : vector<8x128xf32> to vector<1x8x128xf32>
    tpu.vector_store %arg8[%448, %c0_160, %c0_161], %451 {strides = array<i32>} : memref<1x8x384xf32, #tpu.memory_space<vmem>>, vector<1x8x128xf32>,
    %c0_162 = arith.constant 0 : index
    %c256_163 = arith.constant 256 : index
    %c0_164 = arith.constant 0 : index
    %452 = vector.load %arg9[%c0_162, %c256_163, %c0_164] : memref<3x384x128xf32, #tpu.memory_space<vmem>>, vector<1x128x128xf32>
    %453 = vector.shape_cast %452 : vector<1x128x128xf32> to vector<128x128xf32>
    %c0_165 = arith.constant 0 : index
    %c0_166 = arith.constant 0 : index
    %c128_167 = arith.constant 128 : index
    %454 = vector.load %arg4[%c0_165, %c0_166, %c128_167] : memref<1x3x384xf32, #tpu.memory_space<vmem>>, vector<1x1x128xf32>
    %455 = vector.shape_cast %454 : vector<1x1x128xf32> to vector<1x128xf32>
    %456 = vector.broadcast %455 : vector<1x128xf32> to vector<128x128xf32>
    %457 = arith.subf %453, %456 : vector<128x128xf32>
    %458 = arith.mulf %457, %457 : vector<128x128xf32>
    %c1_168 = arith.constant 1 : index
    %c256_169 = arith.constant 256 : index
    %c0_170 = arith.constant 0 : index
    %459 = vector.load %arg9[%c1_168, %c256_169, %c0_170] : memref<3x384x128xf32, #tpu.memory_space<vmem>>, vector<1x128x128xf32>
    %460 = vector.shape_cast %459 : vector<1x128x128xf32> to vector<128x128xf32>
    %c0_171 = arith.constant 0 : index
    %c1_172 = arith.constant 1 : index
    %c128_173 = arith.constant 128 : index
    %461 = vector.load %arg4[%c0_171, %c1_172, %c128_173] : memref<1x3x384xf32, #tpu.memory_space<vmem>>, vector<1x1x128xf32>
    %462 = vector.shape_cast %461 : vector<1x1x128xf32> to vector<1x128xf32>
    %463 = vector.broadcast %462 : vector<1x128xf32> to vector<128x128xf32>
    %464 = arith.subf %460, %463 : vector<128x128xf32>
    %465 = arith.mulf %464, %464 : vector<128x128xf32>
    %466 = arith.addf %458, %465 : vector<128x128xf32>
    %c2_174 = arith.constant 2 : index
    %c256_175 = arith.constant 256 : index
    %c0_176 = arith.constant 0 : index
    %467 = vector.load %arg9[%c2_174, %c256_175, %c0_176] : memref<3x384x128xf32, #tpu.memory_space<vmem>>, vector<1x128x128xf32>
    %468 = vector.shape_cast %467 : vector<1x128x128xf32> to vector<128x128xf32>
    %c0_177 = arith.constant 0 : index
    %c2_178 = arith.constant 2 : index
    %c128_179 = arith.constant 128 : index
    %469 = vector.load %arg4[%c0_177, %c2_178, %c128_179] : memref<1x3x384xf32, #tpu.memory_space<vmem>>, vector<1x1x128xf32>
    %470 = vector.shape_cast %469 : vector<1x1x128xf32> to vector<1x128xf32>
    %471 = vector.broadcast %470 : vector<1x128xf32> to vector<128x128xf32>
    %472 = arith.subf %468, %471 : vector<128x128xf32>
    %473 = arith.mulf %472, %472 : vector<128x128xf32>
    %474 = arith.addf %466, %473 : vector<128x128xf32>
    %475 = arith.minimumf %412, %474 : vector<128x128xf32>
    %476 = vector.extract_strided_slice %474 {offsets = [0, 0], sizes = [8, 128], strides = [1, 1]} : vector<128x128xf32> to vector<8x128xf32>
    %477 = vector.extract_strided_slice %474 {offsets = [8, 0], sizes = [8, 128], strides = [1, 1]} : vector<128x128xf32> to vector<8x128xf32>
    %478 = arith.minimumf %476, %477 : vector<8x128xf32>
    %479 = vector.extract_strided_slice %474 {offsets = [16, 0], sizes = [8, 128], strides = [1, 1]} : vector<128x128xf32> to vector<8x128xf32>
    %480 = arith.minimumf %478, %479 : vector<8x128xf32>
    %481 = vector.extract_strided_slice %474 {offsets = [24, 0], sizes = [8, 128], strides = [1, 1]} : vector<128x128xf32> to vector<8x128xf32>
    %482 = arith.minimumf %480, %481 : vector<8x128xf32>
    %483 = vector.extract_strided_slice %474 {offsets = [32, 0], sizes = [8, 128], strides = [1, 1]} : vector<128x128xf32> to vector<8x128xf32>
    %484 = arith.minimumf %482, %483 : vector<8x128xf32>
    %485 = vector.extract_strided_slice %474 {offsets = [40, 0], sizes = [8, 128], strides = [1, 1]} : vector<128x128xf32> to vector<8x128xf32>
    %486 = arith.minimumf %484, %485 : vector<8x128xf32>
    %487 = vector.extract_strided_slice %474 {offsets = [48, 0], sizes = [8, 128], strides = [1, 1]} : vector<128x128xf32> to vector<8x128xf32>
    %488 = arith.minimumf %486, %487 : vector<8x128xf32>
    %489 = vector.extract_strided_slice %474 {offsets = [56, 0], sizes = [8, 128], strides = [1, 1]} : vector<128x128xf32> to vector<8x128xf32>
    %490 = arith.minimumf %488, %489 : vector<8x128xf32>
    %491 = vector.extract_strided_slice %474 {offsets = [64, 0], sizes = [8, 128], strides = [1, 1]} : vector<128x128xf32> to vector<8x128xf32>
    %492 = arith.minimumf %490, %491 : vector<8x128xf32>
    %493 = vector.extract_strided_slice %474 {offsets = [72, 0], sizes = [8, 128], strides = [1, 1]} : vector<128x128xf32> to vector<8x128xf32>
    %494 = arith.minimumf %492, %493 : vector<8x128xf32>
    %495 = vector.extract_strided_slice %474 {offsets = [80, 0], sizes = [8, 128], strides = [1, 1]} : vector<128x128xf32> to vector<8x128xf32>
    %496 = arith.minimumf %494, %495 : vector<8x128xf32>
    %497 = vector.extract_strided_slice %474 {offsets = [88, 0], sizes = [8, 128], strides = [1, 1]} : vector<128x128xf32> to vector<8x128xf32>
    %498 = arith.minimumf %496, %497 : vector<8x128xf32>
    %499 = vector.extract_strided_slice %474 {offsets = [96, 0], sizes = [8, 128], strides = [1, 1]} : vector<128x128xf32> to vector<8x128xf32>
    %500 = arith.minimumf %498, %499 : vector<8x128xf32>
    %501 = vector.extract_strided_slice %474 {offsets = [104, 0], sizes = [8, 128], strides = [1, 1]} : vector<128x128xf32> to vector<8x128xf32>
    %502 = arith.minimumf %500, %501 : vector<8x128xf32>
    %503 = vector.extract_strided_slice %474 {offsets = [112, 0], sizes = [8, 128], strides = [1, 1]} : vector<128x128xf32> to vector<8x128xf32>
    %504 = arith.minimumf %502, %503 : vector<8x128xf32>
    %505 = vector.extract_strided_slice %474 {offsets = [120, 0], sizes = [8, 128], strides = [1, 1]} : vector<128x128xf32> to vector<8x128xf32>
    %506 = arith.minimumf %504, %505 : vector<8x128xf32>
    %507 = arith.index_cast %arg2 : i32 to index
    %c0_180 = arith.constant 0 : index
    %c128_181 = arith.constant 128 : index
    %508 = vector.load %arg8[%507, %c0_180, %c128_181] : memref<1x8x384xf32, #tpu.memory_space<vmem>>, vector<1x8x128xf32>
    %509 = vector.shape_cast %508 : vector<1x8x128xf32> to vector<8x128xf32>
    %510 = arith.minimumf %509, %506 : vector<8x128xf32>
    %511 = arith.index_cast %arg2 : i32 to index
    %c0_182 = arith.constant 0 : index
    %c128_183 = arith.constant 128 : index
    %512 = vector.load %arg8[%511, %c0_182, %c128_183] : memref<1x8x384xf32, #tpu.memory_space<vmem>>, vector<1x8x128xf32>
    %513 = vector.shape_cast %512 : vector<1x8x128xf32> to vector<8x128xf32>
    %514 = vector.shape_cast %510 : vector<8x128xf32> to vector<1x8x128xf32>
    tpu.vector_store %arg8[%511, %c0_182, %c128_183], %514 {strides = array<i32>} : memref<1x8x384xf32, #tpu.memory_space<vmem>>, vector<1x8x128xf32>,
    %c0_184 = arith.constant 0 : index
    %c256_185 = arith.constant 256 : index
    %c0_186 = arith.constant 0 : index
    %515 = vector.load %arg9[%c0_184, %c256_185, %c0_186] : memref<3x384x128xf32, #tpu.memory_space<vmem>>, vector<1x128x128xf32>
    %516 = vector.shape_cast %515 : vector<1x128x128xf32> to vector<128x128xf32>
    %c0_187 = arith.constant 0 : index
    %c0_188 = arith.constant 0 : index
    %c256_189 = arith.constant 256 : index
    %517 = vector.load %arg4[%c0_187, %c0_188, %c256_189] : memref<1x3x384xf32, #tpu.memory_space<vmem>>, vector<1x1x128xf32>
    %518 = vector.shape_cast %517 : vector<1x1x128xf32> to vector<1x128xf32>
    %519 = vector.broadcast %518 : vector<1x128xf32> to vector<128x128xf32>
    %520 = arith.subf %516, %519 : vector<128x128xf32>
    %521 = arith.mulf %520, %520 : vector<128x128xf32>
    %c1_190 = arith.constant 1 : index
    %c256_191 = arith.constant 256 : index
    %c0_192 = arith.constant 0 : index
    %522 = vector.load %arg9[%c1_190, %c256_191, %c0_192] : memref<3x384x128xf32, #tpu.memory_space<vmem>>, vector<1x128x128xf32>
    %523 = vector.shape_cast %522 : vector<1x128x128xf32> to vector<128x128xf32>
    %c0_193 = arith.constant 0 : index
    %c1_194 = arith.constant 1 : index
    %c256_195 = arith.constant 256 : index
    %524 = vector.load %arg4[%c0_193, %c1_194, %c256_195] : memref<1x3x384xf32, #tpu.memory_space<vmem>>, vector<1x1x128xf32>
    %525 = vector.shape_cast %524 : vector<1x1x128xf32> to vector<1x128xf32>
    %526 = vector.broadcast %525 : vector<1x128xf32> to vector<128x128xf32>
    %527 = arith.subf %523, %526 : vector<128x128xf32>
    %528 = arith.mulf %527, %527 : vector<128x128xf32>
    %529 = arith.addf %521, %528 : vector<128x128xf32>
    %c2_196 = arith.constant 2 : index
    %c256_197 = arith.constant 256 : index
    %c0_198 = arith.constant 0 : index
    %530 = vector.load %arg9[%c2_196, %c256_197, %c0_198] : memref<3x384x128xf32, #tpu.memory_space<vmem>>, vector<1x128x128xf32>
    %531 = vector.shape_cast %530 : vector<1x128x128xf32> to vector<128x128xf32>
    %c0_199 = arith.constant 0 : index
    %c2_200 = arith.constant 2 : index
    %c256_201 = arith.constant 256 : index
    %532 = vector.load %arg4[%c0_199, %c2_200, %c256_201] : memref<1x3x384xf32, #tpu.memory_space<vmem>>, vector<1x1x128xf32>
    %533 = vector.shape_cast %532 : vector<1x1x128xf32> to vector<1x128xf32>
    %534 = vector.broadcast %533 : vector<1x128xf32> to vector<128x128xf32>
    %535 = arith.subf %531, %534 : vector<128x128xf32>
    %536 = arith.mulf %535, %535 : vector<128x128xf32>
    %537 = arith.addf %529, %536 : vector<128x128xf32>
    %538 = arith.minimumf %475, %537 : vector<128x128xf32>
    %539 = vector.extract_strided_slice %537 {offsets = [0, 0], sizes = [8, 128], strides = [1, 1]} : vector<128x128xf32> to vector<8x128xf32>
    %540 = vector.extract_strided_slice %537 {offsets = [8, 0], sizes = [8, 128], strides = [1, 1]} : vector<128x128xf32> to vector<8x128xf32>
    %541 = arith.minimumf %539, %540 : vector<8x128xf32>
    %542 = vector.extract_strided_slice %537 {offsets = [16, 0], sizes = [8, 128], strides = [1, 1]} : vector<128x128xf32> to vector<8x128xf32>
    %543 = arith.minimumf %541, %542 : vector<8x128xf32>
    %544 = vector.extract_strided_slice %537 {offsets = [24, 0], sizes = [8, 128], strides = [1, 1]} : vector<128x128xf32> to vector<8x128xf32>
    %545 = arith.minimumf %543, %544 : vector<8x128xf32>
    %546 = vector.extract_strided_slice %537 {offsets = [32, 0], sizes = [8, 128], strides = [1, 1]} : vector<128x128xf32> to vector<8x128xf32>
    %547 = arith.minimumf %545, %546 : vector<8x128xf32>
    %548 = vector.extract_strided_slice %537 {offsets = [40, 0], sizes = [8, 128], strides = [1, 1]} : vector<128x128xf32> to vector<8x128xf32>
    %549 = arith.minimumf %547, %548 : vector<8x128xf32>
    %550 = vector.extract_strided_slice %537 {offsets = [48, 0], sizes = [8, 128], strides = [1, 1]} : vector<128x128xf32> to vector<8x128xf32>
    %551 = arith.minimumf %549, %550 : vector<8x128xf32>
    %552 = vector.extract_strided_slice %537 {offsets = [56, 0], sizes = [8, 128], strides = [1, 1]} : vector<128x128xf32> to vector<8x128xf32>
    %553 = arith.minimumf %551, %552 : vector<8x128xf32>
    %554 = vector.extract_strided_slice %537 {offsets = [64, 0], sizes = [8, 128], strides = [1, 1]} : vector<128x128xf32> to vector<8x128xf32>
    %555 = arith.minimumf %553, %554 : vector<8x128xf32>
    %556 = vector.extract_strided_slice %537 {offsets = [72, 0], sizes = [8, 128], strides = [1, 1]} : vector<128x128xf32> to vector<8x128xf32>
    %557 = arith.minimumf %555, %556 : vector<8x128xf32>
    %558 = vector.extract_strided_slice %537 {offsets = [80, 0], sizes = [8, 128], strides = [1, 1]} : vector<128x128xf32> to vector<8x128xf32>
    %559 = arith.minimumf %557, %558 : vector<8x128xf32>
    %560 = vector.extract_strided_slice %537 {offsets = [88, 0], sizes = [8, 128], strides = [1, 1]} : vector<128x128xf32> to vector<8x128xf32>
    %561 = arith.minimumf %559, %560 : vector<8x128xf32>
    %562 = vector.extract_strided_slice %537 {offsets = [96, 0], sizes = [8, 128], strides = [1, 1]} : vector<128x128xf32> to vector<8x128xf32>
    %563 = arith.minimumf %561, %562 : vector<8x128xf32>
    %564 = vector.extract_strided_slice %537 {offsets = [104, 0], sizes = [8, 128], strides = [1, 1]} : vector<128x128xf32> to vector<8x128xf32>
    %565 = arith.minimumf %563, %564 : vector<8x128xf32>
    %566 = vector.extract_strided_slice %537 {offsets = [112, 0], sizes = [8, 128], strides = [1, 1]} : vector<128x128xf32> to vector<8x128xf32>
    %567 = arith.minimumf %565, %566 : vector<8x128xf32>
    %568 = vector.extract_strided_slice %537 {offsets = [120, 0], sizes = [8, 128], strides = [1, 1]} : vector<128x128xf32> to vector<8x128xf32>
    %569 = arith.minimumf %567, %568 : vector<8x128xf32>
    %570 = arith.index_cast %arg2 : i32 to index
    %c0_202 = arith.constant 0 : index
    %c256_203 = arith.constant 256 : index
    %571 = vector.load %arg8[%570, %c0_202, %c256_203] : memref<1x8x384xf32, #tpu.memory_space<vmem>>, vector<1x8x128xf32>
    %572 = vector.shape_cast %571 : vector<1x8x128xf32> to vector<8x128xf32>
    %573 = arith.minimumf %572, %569 : vector<8x128xf32>
    %574 = arith.index_cast %arg2 : i32 to index
    %c0_204 = arith.constant 0 : index
    %c256_205 = arith.constant 256 : index
    %575 = vector.load %arg8[%574, %c0_204, %c256_205] : memref<1x8x384xf32, #tpu.memory_space<vmem>>, vector<1x8x128xf32>
    %576 = vector.shape_cast %575 : vector<1x8x128xf32> to vector<8x128xf32>
    %577 = vector.shape_cast %573 : vector<8x128xf32> to vector<1x8x128xf32>
    tpu.vector_store %arg8[%574, %c0_204, %c256_205], %577 {strides = array<i32>} : memref<1x8x384xf32, #tpu.memory_space<vmem>>, vector<1x8x128xf32>,
    %c256_206 = arith.constant 256 : index
    %c0_207 = arith.constant 0 : index
    %578 = vector.load %arg7[%c256_206, %c0_207] : memref<384x128xf32, #tpu.memory_space<vmem>>, vector<128x128xf32>
    tpu.vector_store %arg7[%c256_206, %c0_207], %538 {strides = array<i32>} : memref<384x128xf32, #tpu.memory_space<vmem>>, vector<128x128xf32>,
    %c0_i32_208 = arith.constant 0 : i32
    %579 = arith.cmpi eq, %arg2, %c0_i32_208 : i32
    %580 = arith.extui %579 : i1 to i32
    %c0_i32_209 = arith.constant 0 : i32
    %581 = arith.cmpi ne, %580, %c0_i32_209 : i32
    scf.if %581 {
      %c0_212 = arith.constant 0 : index
      %c0_213 = arith.constant 0 : index
      %585 = vector.load %arg7[%c0_212, %c0_213] : memref<384x128xf32, #tpu.memory_space<vmem>>, vector<384x128xf32>
      %cst = arith.constant dense<0x7F800000> : vector<384xf32>
      %586 = vector.multi_reduction <minimumf>, %585, %cst [1] : vector<384x128xf32> to vector<384xf32>
      %587 = vector.shape_cast %586 : vector<384xf32> to vector<384x1xf32>
      %588 = math.sqrt %587 : vector<384x1xf32>
      %c0_214 = arith.constant 0 : index
      %c0_215 = arith.constant 0 : index
      %c0_216 = arith.constant 0 : index
      %589 = vector.load %arg5[%c0_214, %c0_215, %c0_216] : memref<1x384x1xf32, #tpu.memory_space<vmem>>, vector<1x384x1xf32>
      %590 = vector.shape_cast %589 : vector<1x384x1xf32> to vector<384x1xf32>
      %591 = vector.shape_cast %588 : vector<384x1xf32> to vector<1x384x1xf32>
      tpu.vector_store %arg5[%c0_214, %c0_215, %c0_216], %591 {strides = array<i32>} : memref<1x384x1xf32, #tpu.memory_space<vmem>>, vector<1x384x1xf32>,
    } else {
    }
    %c0_i32_210 = arith.constant 0 : i32
    %582 = arith.cmpi eq, %arg1, %c0_i32_210 : i32
    %583 = arith.extui %582 : i1 to i32
    %c0_i32_211 = arith.constant 0 : i32
    %584 = arith.cmpi ne, %583, %c0_i32_211 : i32
    scf.if %584 {
      %585 = arith.index_cast %arg2 : i32 to index
      %c0_212 = arith.constant 0 : index
      %c0_213 = arith.constant 0 : index
      %586 = vector.load %arg8[%585, %c0_212, %c0_213] : memref<1x8x384xf32, #tpu.memory_space<vmem>>, vector<1x8x384xf32>
      %587 = vector.shape_cast %586 : vector<1x8x384xf32> to vector<8x384xf32>
      %cst = arith.constant dense<0x7F800000> : vector<384xf32>
      %588 = vector.multi_reduction <minimumf>, %587, %cst [0] : vector<8x384xf32> to vector<384xf32>
      %589 = vector.shape_cast %588 : vector<384xf32> to vector<1x384xf32>
      %590 = math.sqrt %589 : vector<1x384xf32>
      %c0_214 = arith.constant 0 : index
      %591 = arith.index_cast %arg2 : i32 to index
      %c0_215 = arith.constant 0 : index
      %592 = vector.load %arg6[%c0_214, %591, %c0_215] : memref<1x1x384xf32, #tpu.memory_space<vmem>>, vector<1x1x384xf32>
      %593 = vector.shape_cast %592 : vector<1x1x384xf32> to vector<1x384xf32>
      %594 = vector.shape_cast %590 : vector<1x384xf32> to vector<1x1x384xf32>
      tpu.vector_store %arg6[%c0_214, %591, %c0_215], %594 {strides = array<i32>} : memref<1x1x384xf32, #tpu.memory_space<vmem>>, vector<1x1x384xf32>,
    } else {
    }
    return
  }
  func.func @transform_0(%arg0: i32, %arg1: i32, %arg2: i32) -> (i32, i32, i32) {
    %c0_i32 = arith.constant 0 : i32
    %c0_i32_0 = arith.constant 0 : i32
    return %arg0, %arg1, %c0_i32 : i32, i32, i32
  }
  func.func @transform_1(%arg0: i32, %arg1: i32, %arg2: i32) -> (i32, i32, i32) {
    %c0_i32 = arith.constant 0 : i32
    %c0_i32_0 = arith.constant 0 : i32
    return %arg0, %c0_i32, %arg2 : i32, i32, i32
  }
  func.func @transform_2(%arg0: i32, %arg1: i32, %arg2: i32) -> (i32, i32, i32) {
    %c0_i32 = arith.constant 0 : i32
    %c0_i32_0 = arith.constant 0 : i32
    return %arg0, %arg1, %c0_i32 : i32, i32, i32
  }
  func.func @transform_3(%arg0: i32, %arg1: i32, %arg2: i32) -> (i32, i32, i32) {
    %c0_i32 = arith.constant 0 : i32
    %c0_i32_0 = arith.constant 0 : i32
    %c0_i32_1 = arith.constant 0 : i32
    return %arg0, %c0_i32, %c0_i32_0 : i32, i32, i32
  }
}

</mosaic_0001>

<bundles_post_ra>
// kernel: forward.1
= control target key start
LH: loop header
LB: loop body
LE: loop exit
PB: predicated region body
PF: predicated region fallthrough
CT: control target
= control target key end

     0   :  { %s4277_s12 = smov 0   ;;  %s4279_s13 = smov 0   ;;  %s7007_s0 = inlined_call_operand.vmem [shape: f32[2,384,3], index: 0, kind: input, shape index: {}]   ;;  %s7008_s1 = inlined_call_operand.vmem [shape: f32[2,3,384], index: 1, kind: input, shape index: {}]   ;;  %s7009_s2 = inlined_call_operand.vmem [shape: f32[2,384,1], index: 2, kind: output, shape index: {0}]   ;;  %s7010_s3 = inlined_call_operand.vmem [shape: f32[2,1,384], index: 3, kind: output, shape index: {1}]  }
   0x1   :  { %s4281_s14 = smov 0  }
   0x2 LB: > { %s33_s15 = sadd.s32 1, %s4247_s13  ;;  %p4029_p0 = scmp.ge.s32.totalorder %s4251_s14, 1  ;;  %s4251_s14 = sphi %s4281_s14, %s14_s14   ;;  %s4247_s13 = sphi %s4279_s13, %s7524_s13   ;;  %s4243_s12 = sphi %s4277_s12, %s7523_s12  }
   0x3   : > { %p35_p1 = scmp.ge.s32.totalorder %s33_s15, 2  ;;  %p185_p2 = scmp.lt.s32.totalorder %s4251_s14, 3 }
   0x5   : > { %s7526_s15 = smov (%p35_p1, %s33_s15), 0  ;;  %p186_p3 = pnand %p4029_p0, %p185_p2 }
   0x7   : > { %189 = sbr.rel (%p186_p3) target bundleno = 700 (0x2bc), region = 28 }
   0xc   : > { %p231_p4 = scmp.lt.s32.totalorder %s4243_s12, 1  ;;  %v4253_v0 = vmov 0   ;;  %v4254_v49 = vmov 1   ;;  %vm3753_vm0 = vcmask 7168  }
   0xd   : > { %4094 = vset.pattern.permute.xlu1 %v4253_v0  ;;  %4093 = vset.pattern.permute.xlu0 %v4253_v0 }
   0xe   : > { %s7528_s12 = smov (!%p231_p4, %s4243_s12), 1 }
   0xf   : > { %s4062_s16 = smul.u32 384, %s7528_s12 }
  0x10   : > { %s4063_s20 = smul.u32 12, %s7528_s12 }
  0x11   : > { %s4303_s19 = scalar_lea.vmem %s7007_s0, %s4062_s16  ;;  %s6683_s26 = scalar_lea.vmem %s7009_s2, %s4062_s16 }
  0x12   : > { %v4306_v1 = vld [vmem:[%s4303_s19 + $0x10] sm:$0xff]  ;;  %v4309_v2 = vld [vmem:[%s4303_s19] sm:$0xff]  ;;  %v4314_v3 = vld [vmem:[%s4303_s19 + $0x18] sm:$0xff]  ;;  %s4533_s23 = scalar_lea.vmem %s7008_s1, %s4063_s20  ;;  %s4064_s27 = smul.u32 3, %s7528_s12 }
  0x13   : > { %328 = vperm.xlu1 %4094, %v4306_v1   ;;  %318 = vperm.xlu0 %4093, %v4309_v2   ;;  %v4317_v4 = vld [vmem:[%s4303_s19 + $0x8] sm:$0xff]  ;;  %v4325_v6 = vld [vmem:[%s4303_s19 + $0x20] sm:$0xff]  ;;  %v4330_v7 = vld [vmem:[%s4303_s19 + $0x38] sm:$0xff] }
  0x14   : > { %v4322_v5 = vld [vmem:[%s4303_s19 + $0x28] sm:$0xff]  ;;  %v4333_v8 = vld [vmem:[%s4303_s19 + $0x30] sm:$0xff]  ;;  %v4341_v10 = vld [vmem:[%s4303_s19 + $0x40] sm:$0xff]  ;;  %s263_s30 = scalar_lea.vmem %s7010_s3, %s4064_s27 }
  0x15   : > { %v4338_v9 = vld [vmem:[%s4303_s19 + $0x48] sm:$0xff]  ;;  %v4346_v11 = vld [vmem:[%s4303_s19 + $0x58] sm:$0xff]  ;;  %v4349_v12 = vld [vmem:[%s4303_s19 + $0x50] sm:$0xff] }
  0x16   : > { %7022 = vst [vmem:[#allocation5_spill] sm:$0xff] %v4338_v9  ;;  %7023 = vst [vmem:[#allocation6_spill] sm:$0xff] %v4346_v11  ;;  %v4354_v13 = vld [vmem:[%s4303_s19 + $0x68] sm:$0xff]  ;;  %v4357_v14 = vld [vmem:[%s4303_s19 + $0x60] sm:$0xff] }
  0x17   : > { %333 = vperm.xlu1 %4094, %v4314_v3   ;;  %323 = vperm.xlu0 %4093, %v4317_v4   ;;  %7024 = vst [vmem:[#allocation7_spill] sm:$0xff] %v4354_v13  ;;  %7025 = vst [vmem:[#allocation8_spill] sm:$0xff] %v4357_v14  ;;  %v4362_v15 = vld [vmem:[%s4303_s19 + $0x78] sm:$0xff]  ;;  %v4365_v16 = vld [vmem:[%s4303_s19 + $0x70] sm:$0xff] }
  0x18   : > { %7026 = vst [vmem:[#allocation9_spill] sm:$0xff] %v4362_v15  ;;  %7027 = vst [vmem:[#allocation10_spill] sm:$0xff] %v4365_v16  ;;  %v4370_v17 = vld [vmem:[%s4303_s19 + $0x88] sm:$0xff]  ;;  %v4373_v18 = vld [vmem:[%s4303_s19 + $0x80] sm:$0xff] }
  0x19   : > { %7028 = vst [vmem:[#allocation11_spill] sm:$0xff] %v4370_v17  ;;  %7029 = vst [vmem:[#allocation12_spill] sm:$0xff] %v4373_v18  ;;  %v4378_v19 = vld [vmem:[%s4303_s19 + $0x98] sm:$0xff]  ;;  %v4381_v20 = vld [vmem:[%s4303_s19 + $0x90] sm:$0xff] }
  0x1a   : > { %7030 = vst [vmem:[#allocation13_spill] sm:$0xff] %v4381_v20  ;;  %v4386_v21 = vld [vmem:[%s4303_s19 + $0xa8] sm:$0xff]  ;;  %v4389_v22 = vld [vmem:[%s4303_s19 + $0xa0] sm:$0xff]  ;;  %v4394_v23 = vld [vmem:[%s4303_s19 + $0xb8] sm:$0xff] }
  0x1b   : > { %343 = vperm.xlu1 %4094, %v4322_v5   ;;  %338 = vperm.xlu0 %4093, %v4325_v6   ;;  %7031 = vst [vmem:[#allocation14_spill] sm:$0xff] %v4389_v22  ;;  %v4397_v24 = vld [vmem:[%s4303_s19 + $0xb0] sm:$0xff]  ;;  %v4402_v25 = vld [vmem:[%s4303_s19 + $0xc8] sm:$0xff]  ;;  %v4405_v26 = vld [vmem:[%s4303_s19 + $0xc0] sm:$0xff] }
  0x1c   : > { %v4410_v27 = vld [vmem:[%s4303_s19 + $0xd8] sm:$0xff]  ;;  %v4413_v28 = vld [vmem:[%s4303_s19 + $0xd0] sm:$0xff]  ;;  %v4418_v29 = vld [vmem:[%s4303_s19 + $0xe8] sm:$0xff] }
  0x1d   : > { %v4421_v30 = vld [vmem:[%s4303_s19 + $0xe0] sm:$0xff]  ;;  %v4426_v31 = vld [vmem:[%s4303_s19 + $0xf8] sm:$0xff]  ;;  %v4429_v32 = vld [vmem:[%s4303_s19 + $0xf0] sm:$0xff] }
  0x1e   : > { %v4434_v33 = vld [vmem:[%s4303_s19 + $0x108] sm:$0xff]  ;;  %v4437_v34 = vld [vmem:[%s4303_s19 + $0x100] sm:$0xff]  ;;  %v4442_v35 = vld [vmem:[%s4303_s19 + $0x118] sm:$0xff] }
  0x1f   : > { %353 = vperm.xlu1 %4094, %v4330_v7   ;;  %348 = vperm.xlu0 %4093, %v4333_v8   ;;  %v4445_v36 = vld [vmem:[%s4303_s19 + $0x110] sm:$0xff]  ;;  %v4450_v37 = vld [vmem:[%s4303_s19 + $0x128] sm:$0xff]  ;;  %v4453_v38 = vld [vmem:[%s4303_s19 + $0x120] sm:$0xff] }
  0x20   : > { %v4458_v39 = vld [vmem:[%s4303_s19 + $0x138] sm:$0xff]  ;;  %v4461_v40 = vld [vmem:[%s4303_s19 + $0x130] sm:$0xff]  ;;  %v4466_v41 = vld [vmem:[%s4303_s19 + $0x148] sm:$0xff] }
  0x21   : > { %v4469_v42 = vld [vmem:[%s4303_s19 + $0x140] sm:$0xff]  ;;  %v4474_v43 = vld [vmem:[%s4303_s19 + $0x158] sm:$0xff]  ;;  %v4477_v44 = vld [vmem:[%s4303_s19 + $0x150] sm:$0xff] }
  0x22   : > { %v4482_v45 = vld [vmem:[%s4303_s19 + $0x168] sm:$0xff]  ;;  %v4485_v46 = vld [vmem:[%s4303_s19 + $0x160] sm:$0xff]  ;;  %v4490_v47 = vld [vmem:[%s4303_s19 + $0x178] sm:$0xff] }
  0x23   : > { %363 = vperm.xlu1 %4094, %v4338_v9   ;;  %358 = vperm.xlu0 %4093, %v4341_v10   ;;  %v4493_v48 = vld [vmem:[%s4303_s19 + $0x170] sm:$0xff]  ;;  %v4540_v62 = vld [vmem:[%s4533_s23] ss:$0 sm:$0xff]  ;;  %v4543_v63 = vld [vmem:[%s4533_s23 + $0x4] ss:$0 sm:$0xff] }
  0x24   : > { %v4548_v0 = vld [vmem:[%s4533_s23 + $0x8] ss:$0 sm:$0xff] }
  0x27   : > { %373 = vperm.xlu1 %4094, %v4346_v11   ;;  %368 = vperm.xlu0 %4093, %v4349_v12  }
  0x2b   : > { %383 = vperm.xlu1 %4094, %v4354_v13   ;;  %378 = vperm.xlu0 %4093, %v4357_v14  }
  0x2f   : > { %393 = vperm.xlu1 %4094, %v4362_v15   ;;  %388 = vperm.xlu0 %4093, %v4365_v16  }
  0x33   : > { %403 = vperm.xlu1 %4094, %v4370_v17   ;;  %398 = vperm.xlu0 %4093, %v4373_v18  }
  0x37   : > { %413 = vperm.xlu1 %4094, %v4378_v19   ;;  %408 = vperm.xlu0 %4093, %v4381_v20  }
  0x3b   : > { %423 = vperm.xlu1 %4094, %v4386_v21   ;;  %418 = vperm.xlu0 %4093, %v4389_v22  }
  0x3f   : > { %433 = vperm.xlu1 %4094, %v4394_v23   ;;  %428 = vperm.xlu0 %4093, %v4397_v24  }
  0x43   : > { %443 = vperm.xlu1 %4094, %v4402_v25   ;;  %438 = vperm.xlu0 %4093, %v4405_v26  }
  0x47   : > { %453 = vperm.xlu1 %4094, %v4410_v27   ;;  %448 = vperm.xlu0 %4093, %v4413_v28  }
  0x4b   : > { %463 = vperm.xlu1 %4094, %v4418_v29   ;;  %458 = vperm.xlu0 %4093, %v4421_v30  }
  0x4f   : > { %473 = vperm.xlu1 %4094, %v4426_v31   ;;  %468 = vperm.xlu0 %4093, %v4429_v32  }
  0x53   : > { %483 = vperm.xlu1 %4094, %v4434_v33   ;;  %478 = vperm.xlu0 %4093, %v4437_v34  }
  0x57   : > { %493 = vperm.xlu1 %4094, %v4442_v35   ;;  %488 = vperm.xlu0 %4093, %v4445_v36  }
  0x5b   : > { %503 = vperm.xlu1 %4094, %v4450_v37   ;;  %498 = vperm.xlu0 %4093, %v4453_v38  }
  0x5f   : > { %513 = vperm.xlu1 %4094, %v4458_v39   ;;  %508 = vperm.xlu0 %4093, %v4461_v40  }
  0x63   : > { %523 = vperm.xlu1 %4094, %v4466_v41   ;;  %518 = vperm.xlu0 %4093, %v4469_v42  }
  0x67   : > { %533 = vperm.xlu1 %4094, %v4474_v43   ;;  %528 = vperm.xlu0 %4093, %v4477_v44  }
  0x6b   : > { %543 = vperm.xlu1 %4094, %v4482_v45   ;;  %538 = vperm.xlu0 %4093, %v4485_v46  }
  0x6f   : > { %553 = vperm.xlu1 %4094, %v4490_v47   ;;  %548 = vperm.xlu0 %4093, %v4493_v48  }
  0x73   : > { %4096 = vset.pattern.permute.xlu1 %v4254_v49  ;;  %4095 = vset.pattern.permute.xlu0 %v4254_v49 }
  0x74   : > { %609 = vperm.xlu1 %4096, %v4317_v4   ;;  %605 = vperm.xlu0 %4095, %v4309_v2  }
  0x78   : > { %613 = vperm.xlu1 %4096, %v4306_v1   ;;  %617 = vperm.xlu0 %4095, %v4314_v3  }
  0x7c   : > { %621 = vperm.xlu1 %4096, %v4325_v6   ;;  %625 = vperm.xlu0 %4095, %v4322_v5  }
  0x80   : > { %629 = vperm.xlu1 %4096, %v4333_v8   ;;  %633 = vperm.xlu0 %4095, %v4330_v7  }
  0x84   : > { %637 = vperm.xlu1 %4096, %v4341_v10   ;;  %641 = vperm.xlu0 %4095, %v4338_v9  }
  0x88   : > { %645 = vperm.xlu1 %4096, %v4349_v12   ;;  %649 = vperm.xlu0 %4095, %v4346_v11  }
  0x8c   : > { %653 = vperm.xlu1 %4096, %v4357_v14   ;;  %657 = vperm.xlu0 %4095, %v4354_v13  }
  0x8e   : > { %v329_v50 = vpop.permute.xlu1 %328  ;;  %v319_v51 = vpop.permute.xlu0 %318 }
  0x8f   : > { %v1638_v49 = vsub.f32 %v329_v50, %v4548_v0 }
  0x90   : > { %661 = vperm.xlu1 %4096, %v4365_v16   ;;  %665 = vperm.xlu0 %4095, %v4362_v15  }
  0x91   : > { %v4575_v11 = vmul.f32 %v1638_v49, %v1638_v49 }
  0x92   : > { %v334_v52 = vpop.permute.xlu1 %333  ;;  %v324_v53 = vpop.permute.xlu0 %323 }
  0x93   : > { %v1639_v15 = vsub.f32 %v334_v52, %v4548_v0  ;;  %v1412_v16 = vsub.f32 %v324_v53, %v4543_v63  ;;  %7034 = vst [vmem:[#allocation17_spill] sm:$0xff] %v4575_v11 }
  0x94   : > { %669 = vperm.xlu1 %4096, %v4373_v18   ;;  %673 = vperm.xlu0 %4095, %v4370_v17   ;;  %v1184_v17 = vsub.f32 %v334_v52, %v4540_v62 }
  0x96   : > { %v344_v54 = vpop.permute.xlu1 %343  ;;  %v339_v55 = vpop.permute.xlu0 %338  ;;  %v4589_v49 = vmul.f32 %v1184_v17, %v1184_v17 }
  0x97   : > { %v1186_v14 = vsub.f32 %v344_v54, %v4540_v62 }
  0x98   : > { %677 = vperm.xlu1 %4096, %v4381_v20   ;;  %681 = vperm.xlu0 %4095, %v4378_v19   ;;  %v1414_v20 = vsub.f32 %v334_v52, %v4543_v63 }
  0x99   : > { %v4607_v17 = vmul.f32 %v1186_v14, %v1186_v14 }
  0x9a   : > { %v4517_v56 = vpop.permute.xlu1 %353  ;;  %v4519_v57 = vpop.permute.xlu0 %348  ;;  %v4591_v11 = vmul.f32 %v1414_v20, %v1414_v20  ;;  %v1640_v20 = vsub.f32 %v339_v55, %v4548_v0 }
  0x9b   : > { %7039 = vst [vmem:[#allocation22_spill] sm:$0xff] %v4607_v17  ;;  %v1643_v14 = vsub.f32 %v4517_v56, %v4548_v0 }
  0x9c   : > { %685 = vperm.xlu1 %4096, %v4389_v22   ;;  %689 = vperm.xlu0 %4095, %v4386_v21   ;;  %v1636_v22 = vsub.f32 %v319_v51, %v4548_v0  ;;  %7036 = vst [vmem:[#allocation19_spill] sm:$0xff] %v4591_v11  ;;  %v4640_v17 = vmul.f32 %v1640_v20, %v1640_v20 }
  0x9e   : > { %v4524_v58 = vpop.permute.xlu1 %363  ;;  %v4526_v59 = vpop.permute.xlu0 %358  ;;  %7043 = vst [vmem:[#allocation26_spill] sm:$0xff] %v4640_v17  ;;  %v4656_v17 = vmul.f32 %v1643_v14, %v1643_v14 }
  0x9f   : > { %v1644_v20 = vsub.f32 %v4526_v59, %v4548_v0 }
  0xa0   : > { %693 = vperm.xlu1 %4096, %v4397_v24   ;;  %697 = vperm.xlu0 %4095, %v4394_v23   ;;  %v1183_v23 = vsub.f32 %v329_v50, %v4540_v62  ;;  %v1413_v24 = vsub.f32 %v329_v50, %v4543_v63  ;;  %7045 = vst [vmem:[#allocation28_spill] sm:$0xff] %v4656_v17 }
  0xa2   : > { %v4535_v60 = vpop.permute.xlu1 %373  ;;  %v4537_v61 = vpop.permute.xlu0 %368  ;;  %v4569_v50 = vmul.f32 %v1183_v23, %v1183_v23 }
  0xa4   : > { %701 = vperm.xlu1 %4096, %v4405_v26   ;;  %705 = vperm.xlu0 %4095, %v4402_v25   ;;  %v1181_v26 = vsub.f32 %v319_v51, %v4540_v62  ;;  %v1411_v25 = vsub.f32 %v319_v51, %v4543_v63  ;;  %7032 = vst [vmem:[#allocation15_spill] sm:$0xff] %v4569_v50 }
  0xa5   : > { %v1637_v51 = vsub.f32 %v324_v53, %v4548_v0  ;;  %v4587_v50 = vmul.f32 %v1636_v22, %v1636_v22 }
  0xa6   : > { %v4550_v19 = vpop.permute.xlu1 %383  ;;  %v4552_v21 = vpop.permute.xlu0 %378  ;;  %v4581_v52 = vmul.f32 %v1181_v26, %v1181_v26  ;;  %v4583_v23 = vmul.f32 %v1411_v25, %v1411_v25  ;;  %v4601_v26 = vmul.f32 %v1412_v16, %v1412_v16  ;;  %v1185_v25 = vsub.f32 %v339_v55, %v4540_v62 }
  0xa7   : > { %7035 = vst [vmem:[#allocation18_spill] sm:$0xff] %v4587_v50  ;;  %v4605_v22 = vmul.f32 %v1637_v51, %v1637_v51  ;;  %v1188_v16 = vsub.f32 %v4517_v56, %v4540_v62  ;;  %v1419_v50 = vsub.f32 %v4526_v59, %v4543_v63 }
  0xa8   : > { %709 = vperm.xlu1 %4096, %v4413_v28   ;;  %713 = vperm.xlu0 %4095, %v4410_v27   ;;  %v4571_v28 = vmul.f32 %v1413_v24, %v1413_v24  ;;  %v1182_v27 = vsub.f32 %v324_v53, %v4540_v62  ;;  %v1416_v24 = vsub.f32 %v344_v54, %v4543_v63 }
  0xa9   : > { %v4593_v53 = vmul.f32 %v1639_v15, %v1639_v15  ;;  %7038 = vst [vmem:[#allocation21_spill] sm:$0xff] %v4605_v22  ;;  %v1645_v22 = vsub.f32 %v4524_v58, %v4548_v0 }
  0xaa   : > { %v4565_v18 = vpop.permute.xlu1 %393  ;;  %v4567_v13 = vpop.permute.xlu0 %388  ;;  %7033 = vst [vmem:[#allocation16_spill] sm:$0xff] %v4571_v28  ;;  %v1641_v28 = vsub.f32 %v344_v54, %v4548_v0  ;;  %v1415_v54 = vsub.f32 %v339_v55, %v4543_v63  ;;  %v4612_v15 = vmul.f32 %v1416_v24, %v1416_v24  ;;  %v1187_v55 = vsub.f32 %v4519_v57, %v4540_v62 }
  0xab   : > { %7037 = vst [vmem:[#allocation20_spill] sm:$0xff] %v4593_v53  ;;  %v1418_v53 = vsub.f32 %v4517_v56, %v4543_v63  ;;  %v4632_v24 = vmul.f32 %v1185_v25, %v1185_v25  ;;  %v1190_v56 = vsub.f32 %v4524_v58, %v4540_v62  ;;  %v4648_v25 = vmul.f32 %v1188_v16, %v1188_v16 }
  0xac   : > { %717 = vperm.xlu1 %4096, %v4421_v30   ;;  %721 = vperm.xlu0 %4095, %v4418_v29   ;;  %v4599_v29 = vmul.f32 %v1182_v27, %v1182_v27  ;;  %7040 = vst [vmem:[#allocation23_spill] sm:$0xff] %v4612_v15  ;;  %v4614_v27 = vmul.f32 %v1641_v28, %v1641_v28 }
  0xad   : > { %v1420_v15 = vsub.f32 %v4524_v58, %v4543_v63  ;;  %v4658_v58 = vmul.f32 %v1187_v55, %v1187_v55  ;;  %v4676_v14 = vmul.f32 %v1645_v22, %v1645_v22  ;;  %v1421_v22 = vsub.f32 %v4537_v61, %v4543_v63 }
  0xae   : > { %v4595_v9 = vpop.permute.xlu1 %403  ;;  %v4597_v30 = vpop.permute.xlu0 %398  ;;  %7041 = vst [vmem:[#allocation24_spill] sm:$0xff] %v4614_v27  ;;  %v4634_v27 = vmul.f32 %v1415_v54, %v1415_v54  ;;  %v4650_v54 = vmul.f32 %v1418_v53, %v1418_v53  ;;  %v4668_v53 = vmul.f32 %v1190_v56, %v1190_v56  ;;  %v1191_v56 = vsub.f32 %v4537_v61, %v4540_v62 }
  0xaf   : > { %v4670_v16 = vmul.f32 %v1420_v15, %v1420_v15  ;;  %7049 = vst [vmem:[#allocation32_spill] sm:$0xff] %v4676_v14  ;;  %v4686_v15 = vmul.f32 %v1644_v20, %v1644_v20 }
  0xb0   : > { %725 = vperm.xlu1 %4096, %v4429_v32   ;;  %729 = vperm.xlu0 %4095, %v4426_v31   ;;  %v1417_v32 = vsub.f32 %v4519_v57, %v4543_v63  ;;  %v1642_v31 = vsub.f32 %v4519_v57, %v4548_v0  ;;  %7042 = vst [vmem:[#allocation25_spill] sm:$0xff] %v4634_v27  ;;  %7044 = vst [vmem:[#allocation27_spill] sm:$0xff] %v4650_v54 }
  0xb1   : > { %v1189_v57 = vsub.f32 %v4526_v59, %v4540_v62  ;;  %7047 = vst [vmem:[#allocation30_spill] sm:$0xff] %v4668_v53  ;;  %7048 = vst [vmem:[#allocation31_spill] sm:$0xff] %v4670_v16  ;;  %v1192_v54 = vsub.f32 %v4535_v60, %v4540_v62  ;;  %v1422_v59 = vsub.f32 %v4535_v60, %v4543_v63 }
  0xb2   : > { %v4628_v28 = vpop.permute.xlu1 %413  ;;  %v4630_v51 = vpop.permute.xlu0 %408  ;;  %v4660_v27 = vmul.f32 %v1417_v32, %v1417_v32  ;;  %v4662_v11 = vmul.f32 %v1642_v31, %v1642_v31  ;;  %v1647_v32 = vsub.f32 %v4535_v60, %v4548_v0  ;;  %v4684_v31 = vmul.f32 %v1419_v50, %v1419_v50  ;;  %7050 = vst [vmem:[#allocation33_spill] sm:$0xff] %v4686_v15 }
  0xb3   : > { %v4678_v55 = vmul.f32 %v1189_v57, %v1189_v57  ;;  %v1646_v57 = vsub.f32 %v4537_v61, %v4548_v0  ;;  %v1194_v60 = vsub.f32 %v4550_v19, %v4540_v62  ;;  %v4704_v14 = vmul.f32 %v1192_v54, %v1192_v54 }
  0xb4   : > { %733 = vperm.xlu1 %4096, %v4437_v34   ;;  %737 = vperm.xlu0 %4095, %v4434_v33   ;;  %7046 = vst [vmem:[#allocation29_spill] sm:$0xff] %v4662_v11  ;;  %v4706_v17 = vmul.f32 %v1422_v59, %v1422_v59  ;;  %v1193_v61 = vsub.f32 %v4552_v21, %v4540_v62 }
  0xb5   : > { %7051 = vst [vmem:[#allocation34_spill] sm:$0xff] %v4704_v14  ;;  %v1423_v15 = vsub.f32 %v4552_v21, %v4543_v63  ;;  %v4712_v16 = vmul.f32 %v1647_v32, %v1647_v32  ;;  %v1648_v53 = vsub.f32 %v4552_v21, %v4548_v0  ;;  %v4720_v54 = vmul.f32 %v1191_v56, %v1191_v56 }
  0xb6   : > { %v4664_v34 = vpop.permute.xlu1 %423  ;;  %v4666_v33 = vpop.permute.xlu0 %418  ;;  %7052 = vst [vmem:[#allocation35_spill] sm:$0xff] %v4706_v17  ;;  %v4722_v59 = vmul.f32 %v1421_v22, %v1421_v22  ;;  %v1426_v17 = vsub.f32 %v4565_v18, %v4543_v63  ;;  %v1651_v32 = vsub.f32 %v4565_v18, %v4548_v0  ;;  %v4730_v21 = vmul.f32 %v1194_v60, %v1194_v60 }
  0xb7   : > { %7053 = vst [vmem:[#allocation36_spill] sm:$0xff] %v4712_v16  ;;  %v4728_v16 = vmul.f32 %v1646_v57, %v1646_v57  ;;  %v4740_v56 = vmul.f32 %v1193_v61, %v1193_v61  ;;  %v4742_v22 = vmul.f32 %v1423_v15, %v1423_v15  ;;  %v4748_v57 = vmul.f32 %v1648_v53, %v1648_v53 }
  0xb8   : > { %741 = vperm.xlu1 %4096, %v4445_v36   ;;  %745 = vperm.xlu0 %4095, %v4442_v35   ;;  %v1424_v36 = vsub.f32 %v4550_v19, %v4543_v63  ;;  %v1649_v35 = vsub.f32 %v4550_v19, %v4548_v0  ;;  %v1196_v19 = vsub.f32 %v4565_v18, %v4540_v62 }
  0xb9   : > { %7054 = vst [vmem:[#allocation37_spill] sm:$0xff] %v4722_v59  ;;  %7055 = vst [vmem:[#allocation38_spill] sm:$0xff] %v4728_v16  ;;  %v1195_v59 = vsub.f32 %v4567_v13, %v4540_v62  ;;  %v1425_v18 = vsub.f32 %v4567_v13, %v4543_v63  ;;  %v4758_v15 = vmul.f32 %v1651_v32, %v1651_v32 }
  0xba   : > { %v4700_v50 = vpop.permute.xlu1 %433  ;;  %v4702_v20 = vpop.permute.xlu0 %428  ;;  %7056 = vst [vmem:[#allocation39_spill] sm:$0xff] %v4730_v21  ;;  %v4732_v14 = vmul.f32 %v1424_v36, %v1424_v36  ;;  %v4734_v11 = vmul.f32 %v1649_v35, %v1649_v35  ;;  %7059 = vst [vmem:[#allocation42_spill] sm:$0xff] %v4748_v57  ;;  %v4750_v60 = vmul.f32 %v1196_v19, %v1196_v19 }
  0xbb   : > { %v1650_v36 = vsub.f32 %v4567_v13, %v4548_v0  ;;  %v4756_v35 = vmul.f32 %v1426_v17, %v1426_v17  ;;  %7062 = vst [vmem:[#allocation45_spill] sm:$0xff] %v4758_v15  ;;  %v1894_v61 = vsub.f32 %v4595_v9, %v4540_v62  ;;  %v2119_v53 = vsub.f32 %v4595_v9, %v4543_v63 }
  0xbc   : > { %749 = vperm.xlu1 %4096, %v4453_v38   ;;  %753 = vperm.xlu0 %4095, %v4450_v37   ;;  %7057 = vst [vmem:[#allocation40_spill] sm:$0xff] %v4732_v14  ;;  %7058 = vst [vmem:[#allocation41_spill] sm:$0xff] %v4734_v11  ;;  %v2344_v19 = vsub.f32 %v4595_v9, %v4548_v0  ;;  %v1893_v13 = vsub.f32 %v4597_v30, %v4540_v62 }
  0xbd   : > { %7060 = vst [vmem:[#allocation43_spill] sm:$0xff] %v4750_v60  ;;  %7061 = vst [vmem:[#allocation44_spill] sm:$0xff] %v4756_v35  ;;  %v4776_v15 = vmul.f32 %v1195_v59, %v1195_v59  ;;  %v4778_v11 = vmul.f32 %v1425_v18, %v1425_v18  ;;  %v1896_v9 = vsub.f32 %v4628_v28, %v4540_v62 }
  0xbe   : > { %v4736_v38 = vpop.permute.xlu1 %443  ;;  %v4738_v37 = vpop.permute.xlu0 %438  ;;  %v2121_v35 = vsub.f32 %v4628_v28, %v4543_v63  ;;  %v4784_v60 = vmul.f32 %v1650_v36, %v1650_v36  ;;  %v2346_v57 = vsub.f32 %v4628_v28, %v4548_v0  ;;  %v4792_v59 = vmul.f32 %v1894_v61, %v1894_v61 }
  0xbf   : > { %v4794_v18 = vmul.f32 %v2119_v53, %v2119_v53  ;;  %v2120_v14 = vsub.f32 %v4630_v51, %v4543_v63  ;;  %v2345_v36 = vsub.f32 %v4630_v51, %v4548_v0  ;;  %v4802_v28 = vmul.f32 %v1893_v13, %v1893_v13 }
  0xc0   : > { %757 = vperm.xlu1 %4096, %v4461_v40   ;;  %761 = vperm.xlu0 %4095, %v4458_v39   ;;  %v2118_v40 = vsub.f32 %v4597_v30, %v4543_v63  ;;  %v2343_v39 = vsub.f32 %v4597_v30, %v4548_v0  ;;  %7063 = vst [vmem:[#allocation46_spill] sm:$0xff] %v4784_v60 }
  0xc1   : > { %v1895_v30 = vsub.f32 %v4630_v51, %v4540_v62  ;;  %7064 = vst [vmem:[#allocation47_spill] sm:$0xff] %v4794_v18  ;;  %v4800_v60 = vmul.f32 %v2344_v19, %v2344_v19  ;;  %v4812_v61 = vmul.f32 %v1896_v9, %v1896_v9  ;;  %v4814_v53 = vmul.f32 %v2121_v35, %v2121_v35 }
  0xc2   : > { %v4772_v17 = vpop.permute.xlu1 %453  ;;  %v4774_v32 = vpop.permute.xlu0 %448  ;;  %v4804_v21 = vmul.f32 %v2118_v40, %v2118_v40  ;;  %v4806_v16 = vmul.f32 %v2343_v39, %v2343_v39  ;;  %v1898_v18 = vsub.f32 %v4664_v34, %v4540_v62  ;;  %v2123_v51 = vsub.f32 %v4664_v34, %v4543_v63 }
  0xc3   : > { %7065 = vst [vmem:[#allocation48_spill] sm:$0xff] %v4800_v60  ;;  %7067 = vst [vmem:[#allocation50_spill] sm:$0xff] %v4812_v61  ;;  %v4820_v19 = vmul.f32 %v2346_v57, %v2346_v57  ;;  %v4822_v13 = vmul.f32 %v1895_v30, %v1895_v30  ;;  %v2348_v40 = vsub.f32 %v4664_v34, %v4548_v0 }
  0xc4   : > { %765 = vperm.xlu1 %4096, %v4469_v42   ;;  %769 = vperm.xlu0 %4095, %v4466_v41   ;;  %7066 = vst [vmem:[#allocation49_spill] sm:$0xff] %v4806_v16  ;;  %7068 = vst [vmem:[#allocation51_spill] sm:$0xff] %v4814_v53  ;;  %v4828_v39 = vmul.f32 %v2120_v14, %v2120_v14  ;;  %v4830_v35 = vmul.f32 %v2345_v36, %v2345_v36 }
  0xc5   : > { %7069 = vst [vmem:[#allocation52_spill] sm:$0xff] %v4820_v19  ;;  %v1897_v9 = vsub.f32 %v4666_v33, %v4540_v62  ;;  %v2122_v57 = vsub.f32 %v4666_v33, %v4543_v63  ;;  %v2347_v30 = vsub.f32 %v4666_v33, %v4548_v0  ;;  %v1900_v34 = vsub.f32 %v4700_v50, %v4540_v62 }
  0xc6   : > { %v4808_v42 = vpop.permute.xlu1 %463  ;;  %v4810_v41 = vpop.permute.xlu0 %458  ;;  %7070 = vst [vmem:[#allocation53_spill] sm:$0xff] %v4830_v35  ;;  %v4848_v19 = vmul.f32 %v1898_v18, %v1898_v18  ;;  %v4850_v60 = vmul.f32 %v2123_v51, %v2123_v51  ;;  %v1899_v33 = vsub.f32 %v4702_v20, %v4540_v62  ;;  %v2124_v35 = vsub.f32 %v4702_v20, %v4543_v63 }
  0xc7   : > { %v4856_v53 = vmul.f32 %v2348_v40, %v2348_v40  ;;  %v2349_v61 = vsub.f32 %v4702_v20, %v4548_v0  ;;  %v4864_v18 = vmul.f32 %v1897_v9, %v1897_v9  ;;  %v4866_v51 = vmul.f32 %v2122_v57, %v2122_v57 }
  0xc8   : > { %773 = vperm.xlu1 %4096, %v4477_v44   ;;  %777 = vperm.xlu0 %4095, %v4474_v43   ;;  %v2125_v44 = vsub.f32 %v4700_v50, %v4543_v63  ;;  %v2350_v43 = vsub.f32 %v4700_v50, %v4548_v0  ;;  %7071 = vst [vmem:[#allocation54_spill] sm:$0xff] %v4848_v19  ;;  %7072 = vst [vmem:[#allocation55_spill] sm:$0xff] %v4850_v60 }
  0xc9   : > { %7073 = vst [vmem:[#allocation56_spill] sm:$0xff] %v4856_v53  ;;  %v1902_v50 = vsub.f32 %v4736_v38, %v4540_v62  ;;  %7074 = vst [vmem:[#allocation57_spill] sm:$0xff] %v4866_v51  ;;  %v2127_v60 = vsub.f32 %v4736_v38, %v4543_v63  ;;  %v2352_v40 = vsub.f32 %v4736_v38, %v4548_v0 }
  0xca   : > { %v4844_v14 = vpop.permute.xlu1 %473  ;;  %v4846_v36 = vpop.permute.xlu0 %468  ;;  %v4872_v53 = vmul.f32 %v2347_v30, %v2347_v30  ;;  %v4874_v20 = vmul.f32 %v1900_v34, %v1900_v34  ;;  %v4876_v19 = vmul.f32 %v2125_v44, %v2125_v44  ;;  %v4878_v16 = vmul.f32 %v2350_v43, %v2350_v43 }
  0xcb   : > { %v4882_v9 = vmul.f32 %v1899_v33, %v1899_v33  ;;  %v4884_v57 = vmul.f32 %v2124_v35, %v2124_v35  ;;  %v1901_v51 = vsub.f32 %v4738_v37, %v4540_v62  ;;  %v2126_v38 = vsub.f32 %v4738_v37, %v4543_v63 }
  0xcc   : > { %781 = vperm.xlu1 %4096, %v4485_v46   ;;  %785 = vperm.xlu0 %4095, %v4482_v45   ;;  %7075 = vst [vmem:[#allocation58_spill] sm:$0xff] %v4872_v53  ;;  %7076 = vst [vmem:[#allocation59_spill] sm:$0xff] %v4874_v20  ;;  %v4890_v30 = vmul.f32 %v2349_v61, %v2349_v61  ;;  %v4892_v34 = vmul.f32 %v1902_v50, %v1902_v50 }
  0xcd   : > { %7077 = vst [vmem:[#allocation60_spill] sm:$0xff] %v4876_v19  ;;  %7078 = vst [vmem:[#allocation61_spill] sm:$0xff] %v4878_v16  ;;  %v2351_v44 = vsub.f32 %v4738_v37, %v4548_v0  ;;  %v4898_v43 = vmul.f32 %v2127_v60, %v2127_v60  ;;  %v4900_v35 = vmul.f32 %v2352_v40, %v2352_v40  ;;  %v4255_v19 = vmov 2  }
  0xce   : > { %v484_v46 = vpop.permute.xlu1 %483  ;;  %v4880_v45 = vpop.permute.xlu0 %478  ;;  %7079 = vst [vmem:[#allocation62_spill] sm:$0xff] %v4890_v30  ;;  %7080 = vst [vmem:[#allocation63_spill] sm:$0xff] %v4892_v34  ;;  %v1904_v33 = vsub.f32 %v4772_v17, %v4540_v62  ;;  %v2129_v61 = vsub.f32 %v4772_v17, %v4543_v63  ;;  %v2354_v50 = vsub.f32 %v4772_v17, %v4548_v0 }
  0xcf   : > { %7081 = vst [vmem:[#allocation64_spill] sm:$0xff] %v4898_v43  ;;  %7082 = vst [vmem:[#allocation65_spill] sm:$0xff] %v4900_v35  ;;  %v1903_v37 = vsub.f32 %v4774_v32, %v4540_v62  ;;  %v4916_v35 = vmul.f32 %v1901_v51, %v1901_v51  ;;  %v4918_v16 = vmul.f32 %v2126_v38, %v2126_v38 }
  0xd0   : > { %789 = vperm.xlu1 %4096, %v4493_v48   ;;  %793 = vperm.xlu0 %4095, %v4490_v47   ;;  %v2128_v48 = vsub.f32 %v4774_v32, %v4543_v63  ;;  %v2353_v47 = vsub.f32 %v4774_v32, %v4548_v0  ;;  %v1906_v43 = vsub.f32 %v4808_v42, %v4540_v62 }
  0xd1   : > { %7083 = vst [vmem:[#allocation66_spill] sm:$0xff] %v4918_v16  ;;  %v2131_v17 = vsub.f32 %v4808_v42, %v4543_v63  ;;  %v4924_v34 = vmul.f32 %v2351_v44, %v2351_v44  ;;  %v2356_v30 = vsub.f32 %v4808_v42, %v4548_v0  ;;  %v1905_v32 = vsub.f32 %v4810_v41, %v4540_v62 }
  0xd2   : > { %v494_v60 = vpop.permute.xlu1 %493  ;;  %v4914_v40 = vpop.permute.xlu0 %488  ;;  %v4930_v51 = vmul.f32 %v1904_v33, %v1904_v33  ;;  %v4932_v38 = vmul.f32 %v2129_v61, %v2129_v61  ;;  %v2130_v20 = vsub.f32 %v4810_v41, %v4543_v63  ;;  %v2355_v44 = vsub.f32 %v4810_v41, %v4548_v0 }
  0xd3   : > { %7084 = vst [vmem:[#allocation67_spill] sm:$0xff] %v4924_v34  ;;  %v4939_v34 = vmul.f32 %v2354_v50, %v2354_v50  ;;  %v4941_v42 = vmul.f32 %v1903_v37, %v1903_v37  ;;  %v4943_v53 = vmul.f32 %v2128_v48, %v2128_v48  ;;  %v4945_v16 = vmul.f32 %v2353_v47, %v2353_v47 }
  0xd4   : > { %4097 = vset.pattern.permute.xlu1 %v4255_v19  ;;  %4098 = vset.pattern.permute.xlu0 %v4255_v19  ;;  %7085 = vst [vmem:[#allocation68_spill] sm:$0xff] %v4930_v51  ;;  %7086 = vst [vmem:[#allocation69_spill] sm:$0xff] %v4932_v38  ;;  %v4948_v61 = vmul.f32 %v1906_v43, %v1906_v43  ;;  %v4950_v38 = vmul.f32 %v2131_v17, %v2131_v17 }
  0xd5   : > { %846 = vperm.xlu1 %4097, %v4309_v2   ;;  %7087 = vst [vmem:[#allocation70_spill] sm:$0xff] %v4939_v34  ;;  %7088 = vst [vmem:[#allocation71_spill] sm:$0xff] %v4945_v16  ;;  %850 = vperm.xlu0 %4098, %v4317_v4   ;;  %v1908_v41 = vsub.f32 %v4844_v14, %v4540_v62  ;;  %v2133_v2 = vsub.f32 %v4844_v14, %v4543_v63 }
  0xd6   : > { %v504_v19 = vpop.permute.xlu1 %503  ;;  %v499_v33 = vpop.permute.xlu0 %498  ;;  %7089 = vst [vmem:[#allocation72_spill] sm:$0xff] %v4948_v61  ;;  %7090 = vst [vmem:[#allocation73_spill] sm:$0xff] %v4950_v38  ;;  %v4956_v50 = vmul.f32 %v2356_v30, %v2356_v30  ;;  %v4958_v37 = vmul.f32 %v1905_v32, %v1905_v32  ;;  %v2358_v48 = vsub.f32 %v4844_v14, %v4548_v0 }
  0xd7   : > { %v1907_v4 = vsub.f32 %v4846_v36, %v4540_v62  ;;  %v4964_v43 = vmul.f32 %v2130_v20, %v2130_v20  ;;  %v4966_v47 = vmul.f32 %v2355_v44, %v2355_v44  ;;  %v2132_v17 = vsub.f32 %v4846_v36, %v4543_v63 }
  0xd8   : > { %7091 = vst [vmem:[#allocation74_spill] sm:$0xff] %v4956_v50  ;;  %v2357_v34 = vsub.f32 %v4846_v36, %v4548_v0  ;;  %v2601_v30 = vsub.f32 %v484_v46, %v4540_v62  ;;  %v2826_v32 = vsub.f32 %v484_v46, %v4543_v63  ;;  %v3051_v14 = vsub.f32 %v484_v46, %v4548_v0 }
  0xd9   : > { %7092 = vst [vmem:[#allocation75_spill] sm:$0xff] %v4966_v47  ;;  %854 = vperm.xlu1 %4097, %v4306_v1   ;;  %v2600_v20 = vsub.f32 %v4880_v45, %v4540_v62  ;;  %862 = vperm.xlu0 %4098, %v4325_v6   ;;  %v4979_v47 = vmul.f32 %v1908_v41, %v1908_v41 }
  0xda   : > { %v514_v44 = vpop.permute.xlu1 %513  ;;  %v509_v50 = vpop.permute.xlu0 %508  ;;  %v4981_v38 = vmul.f32 %v2133_v2, %v2133_v2  ;;  %v2825_v1 = vsub.f32 %v4880_v45, %v4543_v63  ;;  %v3050_v36 = vsub.f32 %v4880_v45, %v4548_v0  ;;  %v4987_v61 = vmul.f32 %v2358_v48, %v2358_v48 }
  0xdb   : > { %7093 = vst [vmem:[#allocation76_spill] sm:$0xff] %v4979_v47  ;;  %v4989_v46 = vmul.f32 %v1907_v4, %v1907_v4  ;;  %v2603_v16 = vsub.f32 %v494_v60, %v4540_v62  ;;  %v2828_v6 = vsub.f32 %v494_v60, %v4543_v63  ;;  %v4993_v51 = vmul.f32 %v2132_v17, %v2132_v17 }
  0xdc   : > { %7094 = vst [vmem:[#allocation77_spill] sm:$0xff] %v4981_v38  ;;  %7095 = vst [vmem:[#allocation78_spill] sm:$0xff] %v4987_v61  ;;  %v4995_v41 = vmul.f32 %v2357_v34, %v2357_v34  ;;  %v3053_v2 = vsub.f32 %v494_v60, %v4548_v0  ;;  %v2602_v38 = vsub.f32 %v4914_v40, %v4540_v62 }
  0xdd   : > { %858 = vperm.xlu1 %4097, %v4314_v3   ;;  %v5001_v45 = vmul.f32 %v2601_v30, %v2601_v30  ;;  %v5003_v48 = vmul.f32 %v2826_v32, %v2826_v32  ;;  %v5005_v4 = vmul.f32 %v3051_v14, %v3051_v14  ;;  %v5007_v61 = vmul.f32 %v2600_v20, %v2600_v20 }
  0xde   : > { %7096 = vst [vmem:[#allocation79_spill] sm:$0xff] %v4995_v41  ;;  %870 = vperm.xlu0 %4098, %v4333_v8   ;;  %v524_v17 = vpop.permute.xlu1 %523  ;;  %v519_v34 = vpop.permute.xlu0 %518  ;;  %v5010_v41 = vmul.f32 %v2825_v1, %v2825_v1  ;;  %v5012_v60 = vmul.f32 %v3050_v36, %v3050_v36  ;;  %v2827_v47 = vsub.f32 %v4914_v40, %v4543_v63 }
  0xdf   : > { %7097 = vst [vmem:[#allocation80_spill] sm:$0xff] %v5001_v45  ;;  %7098 = vst [vmem:[#allocation81_spill] sm:$0xff] %v5003_v48  ;;  %v3052_v3 = vsub.f32 %v4914_v40, %v4548_v0  ;;  %v5018_v30 = vmul.f32 %v2603_v16, %v2603_v16  ;;  %v5020_v32 = vmul.f32 %v2828_v6, %v2828_v6 }
  0xe0   : > { %7099 = vst [vmem:[#allocation82_spill] sm:$0xff] %v5005_v4  ;;  %7100 = vst [vmem:[#allocation83_spill] sm:$0xff] %v5007_v61  ;;  %v2605_v14 = vsub.f32 %v504_v19, %v4540_v62  ;;  %v2830_v8 = vsub.f32 %v504_v19, %v4543_v63  ;;  %v5024_v20 = vmul.f32 %v3053_v2, %v3053_v2  ;;  %v7228_v61 = vld [vmem:[#allocation44_spill] sm:$0xff] }
  0xe1   : > { %7101 = vst [vmem:[#allocation84_spill] sm:$0xff] %v5010_v41  ;;  %7102 = vst [vmem:[#allocation85_spill] sm:$0xff] %v5012_v60  ;;  %v5026_v1 = vmul.f32 %v2602_v38, %v2602_v38  ;;  %v3055_v36 = vsub.f32 %v504_v19, %v4548_v0  ;;  %v2604_v4 = vsub.f32 %v499_v33, %v4540_v62  ;;  %866 = vperm.xlu1 %4097, %v4322_v5  }
  0xe2   : > { %7103 = vst [vmem:[#allocation86_spill] sm:$0xff] %v5018_v30  ;;  %7104 = vst [vmem:[#allocation87_spill] sm:$0xff] %v5020_v32  ;;  %v2829_v40 = vsub.f32 %v499_v33, %v4543_v63  ;;  %v3054_v16 = vsub.f32 %v499_v33, %v4548_v0  ;;  %v2607_v6 = vsub.f32 %v514_v44, %v4540_v62  ;;  %878 = vperm.xlu0 %4098, %v4341_v10   ;;  %v534_v2 = vpop.permute.xlu1 %533 }
  0xe3   : > { %7105 = vst [vmem:[#allocation88_spill] sm:$0xff] %v5024_v20  ;;  %7106 = vst [vmem:[#allocation89_spill] sm:$0xff] %v5026_v1  ;;  %v2832_v32 = vsub.f32 %v514_v44, %v4543_v63  ;;  %v529_v20 = vpop.permute.xlu0 %528  ;;  %v5036_v38 = vmul.f32 %v2827_v47, %v2827_v47  ;;  %v3057_v19 = vsub.f32 %v514_v44, %v4548_v0 }
  0xe4   : > { %v2606_v30 = vsub.f32 %v509_v50, %v4540_v62  ;;  %v2831_v5 = vsub.f32 %v509_v50, %v4543_v63  ;;  %v5041_v60 = vmul.f32 %v3052_v3, %v3052_v3  ;;  %v5043_v48 = vmul.f32 %v2605_v14, %v2605_v14 }
  0xe5   : > { %7107 = vst [vmem:[#allocation90_spill] sm:$0xff] %v5036_v38  ;;  %v5045_v33 = vmul.f32 %v2830_v8, %v2830_v8  ;;  %v3056_v45 = vsub.f32 %v509_v50, %v4548_v0  ;;  %v5048_v1 = vmul.f32 %v3055_v36, %v3055_v36  ;;  %v5050_v10 = vmul.f32 %v2604_v4, %v2604_v4 }
  0xe6   : > { %7108 = vst [vmem:[#allocation91_spill] sm:$0xff] %v5041_v60  ;;  %7109 = vst [vmem:[#allocation92_spill] sm:$0xff] %v5043_v48  ;;  %v2609_v47 = vsub.f32 %v524_v17, %v4540_v62  ;;  %v2834_v44 = vsub.f32 %v524_v17, %v4543_v63  ;;  %874 = vperm.xlu1 %4097, %v4330_v7   ;;  %v5055_v38 = vmul.f32 %v2829_v40, %v2829_v40  ;;  %v544_v50 = vpop.permute.xlu1 %543 }
  0xe7   : > { %7110 = vst [vmem:[#allocation93_spill] sm:$0xff] %v5045_v33  ;;  %7111 = vst [vmem:[#allocation94_spill] sm:$0xff] %v5048_v1  ;;  %v5057_v3 = vmul.f32 %v3054_v16, %v3054_v16  ;;  %v5059_v14 = vmul.f32 %v2607_v6, %v2607_v6  ;;  %v5061_v8 = vmul.f32 %v2832_v32, %v2832_v32  ;;  %886 = vperm.xlu0 %4098, %v4349_v12   ;;  %v539_v36 = vpop.permute.xlu0 %538 }
  0xe8   : > { %7112 = vst [vmem:[#allocation95_spill] sm:$0xff] %v5050_v10  ;;  %7113 = vst [vmem:[#allocation96_spill] sm:$0xff] %v5055_v38  ;;  %v5064_v4 = vmul.f32 %v3057_v19, %v3057_v19  ;;  %v5066_v1 = vmul.f32 %v2606_v30, %v2606_v30  ;;  %v5068_v33 = vmul.f32 %v2831_v5, %v2831_v5  ;;  %v7123_v5 = vld [vmem:[#allocation5_spill] sm:$0xff] }
  0xe9   : > { %7114 = vst [vmem:[#allocation97_spill] sm:$0xff] %v5057_v3  ;;  %7115 = vst [vmem:[#allocation98_spill] sm:$0xff] %v5059_v14  ;;  %v3059_v7 = vsub.f32 %v524_v17, %v4548_v0  ;;  %v5071_v40 = vmul.f32 %v3056_v45, %v3056_v45  ;;  %v2608_v16 = vsub.f32 %v519_v34, %v4540_v62  ;;  %v7124_v14 = vld [vmem:[#allocation8_spill] sm:$0xff] }
  0xea   : > { %7116 = vst [vmem:[#allocation99_spill] sm:$0xff] %v5061_v8  ;;  %7117 = vst [vmem:[#allocation100_spill] sm:$0xff] %v5064_v4  ;;  %v2833_v6 = vsub.f32 %v519_v34, %v4543_v63  ;;  %v3058_v32 = vsub.f32 %v519_v34, %v4548_v0  ;;  %v5076_v8 = vmul.f32 %v2609_v47, %v2609_v47  ;;  %882 = vperm.xlu1 %4097, %v7123_v5   ;;  %v554_v34 = vpop.permute.xlu1 %553 }
  0xeb   : > { %7118 = vst [vmem:[#allocation101_spill] sm:$0xff] %v5066_v1  ;;  %7119 = vst [vmem:[#allocation102_spill] sm:$0xff] %v5068_v33  ;;  %v5078_v12 = vmul.f32 %v2834_v44, %v2834_v44  ;;  %v2611_v19 = vsub.f32 %v534_v2, %v4540_v62  ;;  %v2836_v30 = vsub.f32 %v534_v2, %v4543_v63  ;;  %894 = vperm.xlu0 %4098, %v7124_v14   ;;  %v549_v47 = vpop.permute.xlu0 %548  ;;  %v7131_v33 = vld [vmem:[#allocation6_spill] sm:$0xff] }
  0xec   : > { %7120 = vst [vmem:[#allocation103_spill] sm:$0xff] %v5071_v40  ;;  %7121 = vst [vmem:[#allocation104_spill] sm:$0xff] %v5076_v8  ;;  %v3061_v17 = vsub.f32 %v534_v2, %v4548_v0  ;;  %v2610_v45 = vsub.f32 %v529_v20, %v4540_v62  ;;  %v2835_v4 = vsub.f32 %v529_v20, %v4543_v63 }
  0xed   : > { %7122 = vst [vmem:[#allocation105_spill] sm:$0xff] %v5078_v12  ;;  %v3060_v40 = vsub.f32 %v529_v20, %v4548_v0  ;;  %v5088_v44 = vmul.f32 %v3059_v7, %v3059_v7  ;;  %v2613_v12 = vsub.f32 %v544_v50, %v4540_v62  ;;  %v2838_v8 = vsub.f32 %v544_v50, %v4543_v63 }
  0xee   : > { %v3063_v5 = vsub.f32 %v544_v50, %v4548_v0  ;;  %v5093_v2 = vmul.f32 %v2608_v16, %v2608_v16  ;;  %v5095_v3 = vmul.f32 %v2833_v6, %v2833_v6  ;;  %v5097_v48 = vmul.f32 %v3058_v32, %v3058_v32  ;;  %890 = vperm.xlu1 %4097, %v7131_v33   ;;  %v5108_v50 = vld [vmem:[%s4533_s23 + $0x1] ss:$0 sm:$0xff] }
  0xef   : > { %7125 = vst [vmem:[#allocation5_spill] sm:$0xff] %v5088_v44  ;;  %v2612_v20 = vsub.f32 %v539_v36, %v4540_v62  ;;  %v5100_v14 = vmul.f32 %v2611_v19, %v2611_v19  ;;  %v5102_v60 = vmul.f32 %v2836_v30, %v2836_v30  ;;  %v2837_v7 = vsub.f32 %v539_v36, %v4543_v63  ;;  %v7136_v19 = vld [vmem:[#allocation10_spill] sm:$0xff]  ;;  %v5120_v30 = vld [vmem:[%s4533_s23 + $0x5] ss:$0 sm:$0xff] }
  0xf0   : > { %7126 = vst [vmem:[#allocation8_spill] sm:$0xff] %v5093_v2  ;;  %7127 = vst [vmem:[#allocation106_spill] sm:$0xff] %v5095_v3  ;;  %v3062_v44 = vsub.f32 %v539_v36, %v4548_v0  ;;  %v5110_v16 = vmul.f32 %v3061_v17, %v3061_v17  ;;  %v5112_v6 = vmul.f32 %v2610_v45, %v2610_v45  ;;  %902 = vperm.xlu0 %4098, %v7136_v19   ;;  %v610_v17 = vpop.permute.xlu1 %609  ;;  %v7152_v2 = vld [vmem:[#allocation13_spill] sm:$0xff] }
  0xf1   : > { %7128 = vst [vmem:[#allocation107_spill] sm:$0xff] %v5097_v48  ;;  %7129 = vst [vmem:[#allocation108_spill] sm:$0xff] %v5100_v14  ;;  %v5114_v32 = vmul.f32 %v2835_v4, %v2835_v4  ;;  %v5116_v48 = vmul.f32 %v3060_v40, %v3060_v40  ;;  %v5124_v36 = vmul.f32 %v2838_v8, %v2838_v8 }
  0xf2   : > { %7130 = vst [vmem:[#allocation109_spill] sm:$0xff] %v5102_v60  ;;  %7132 = vst [vmem:[#allocation6_spill] sm:$0xff] %v5110_v16  ;;  %v5122_v60 = vmul.f32 %v2613_v12, %v2613_v12  ;;  %v5126_v33 = vmul.f32 %v3063_v5, %v3063_v5  ;;  %v2615_v14 = vsub.f32 %v554_v34, %v4540_v62  ;;  %v606_v16 = vpop.permute.xlu0 %605 }
  0xf3   : > { %7133 = vst [vmem:[#allocation110_spill] sm:$0xff] %v5112_v6  ;;  %7134 = vst [vmem:[#allocation111_spill] sm:$0xff] %v5114_v32  ;;  %v5129_v45 = vmul.f32 %v2612_v20, %v2612_v20  ;;  %v2840_v4 = vsub.f32 %v554_v34, %v4543_v63  ;;  %v2614_v40 = vsub.f32 %v549_v47, %v4540_v62  ;;  %v7145_v32 = vld [vmem:[#allocation12_spill] sm:$0xff] }
  0xf4   : > { %7135 = vst [vmem:[#allocation112_spill] sm:$0xff] %v5116_v48  ;;  %7137 = vst [vmem:[#allocation10_spill] sm:$0xff] %v5122_v60  ;;  %v5134_v48 = vld [vmem:[%s4533_s23 + $0x9] ss:$0 sm:$0xff]  ;;  %v1235_v19 = vsub.f32 %v606_v16, %v5108_v50  ;;  %v5137_v12 = vmul.f32 %v2837_v7, %v2837_v7  ;;  %v5139_v8 = vmul.f32 %v3062_v44, %v3062_v44  ;;  %910 = vperm.xlu0 %4098, %v7145_v32  }
  0xf5   : > { %7138 = vst [vmem:[#allocation113_spill] sm:$0xff] %v5124_v36  ;;  %7139 = vst [vmem:[#allocation114_spill] sm:$0xff] %v5126_v33  ;;  %v5142_v5 = vsub.f32 %v554_v34, %v4548_v0  ;;  %v1464_v33 = vsub.f32 %v606_v16, %v5120_v30  ;;  %v7144_v36 = vld [vmem:[#allocation7_spill] sm:$0xff]  ;;  %v2839_v20 = vsub.f32 %v549_v47, %v4543_v63 }
  0xf6   : > { %7140 = vst [vmem:[#allocation115_spill] sm:$0xff] %v5129_v45  ;;  %7141 = vst [vmem:[#allocation116_spill] sm:$0xff] %v5137_v12  ;;  %898 = vperm.xlu1 %4097, %v7144_v36   ;;  %v3064_v60 = vsub.f32 %v549_v47, %v4548_v0  ;;  %v1236_v62 = vsub.f32 %v610_v17, %v5108_v50  ;;  %v1465_v45 = vsub.f32 %v610_v17, %v5120_v30  ;;  %v618_v12 = vpop.permute.xlu0 %617 }
  0xf7   : > { %7142 = vst [vmem:[#allocation117_spill] sm:$0xff] %v5139_v8  ;;  %7143 = vst [vmem:[#allocation118_spill] sm:$0xff] %v5142_v5  ;;  %v5151_v7 = vmul.f32 %v2615_v14, %v2615_v14  ;;  %v1690_v44 = vsub.f32 %v610_v17, %v5134_v48  ;;  %v1251_v34 = vmul.f32 %v1235_v19, %v1235_v19  ;;  %v614_v8 = vpop.permute.xlu1 %613  ;;  %v7149_v19 = vld [vmem:[#allocation9_spill] sm:$0xff] }
  0xf8   : > { %v1689_v5 = vsub.f32 %v606_v16, %v5134_v48  ;;  %v5155_v36 = vmul.f32 %v2840_v4, %v2840_v4  ;;  %v5157_v63 = vmul.f32 %v2614_v40, %v2614_v40  ;;  %v1237_v0 = vsub.f32 %v614_v8, %v5108_v50  ;;  %918 = vperm.xlu0 %4098, %v7152_v2  }
  0xf9   : > { %7146 = vst [vmem:[#allocation7_spill] sm:$0xff] %v5151_v7  ;;  %v1466_v47 = vsub.f32 %v614_v8, %v5120_v30  ;;  %v1480_v6 = vmul.f32 %v1464_v33, %v1464_v33  ;;  %v1691_v32 = vsub.f32 %v614_v8, %v5134_v48  ;;  %v1238_v14 = vsub.f32 %v618_v12, %v5108_v50  ;;  %v7161_v7 = vld [vmem:[#allocation16_spill] sm:$0xff] }
  0xfa   : > { %7147 = vst [vmem:[#allocation12_spill] sm:$0xff] %v5155_v36  ;;  %7148 = vst [vmem:[#allocation119_spill] sm:$0xff] %v5157_v63  ;;  %v1467_v17 = vsub.f32 %v618_v12, %v5120_v30  ;;  %906 = vperm.xlu1 %4097, %v7149_v19   ;;  %v5165_v16 = vmul.f32 %v2839_v20, %v2839_v20  ;;  %v5167_v3 = vmul.f32 %v3064_v60, %v3064_v60  ;;  %v626_v10 = vpop.permute.xlu0 %625 }
  0xfb   : > { %v1252_v4 = vmul.f32 %v1236_v62, %v1236_v62  ;;  %v1481_v40 = vmul.f32 %v1465_v45, %v1465_v45  ;;  %v5170_v1 = vmul.f32 %v1690_v44, %v1690_v44  ;;  %v5172_v38 = vmul.f32 %v1689_v5, %v1689_v5  ;;  %v622_v8 = vpop.permute.xlu1 %621 }
  0xfc   : > { %7150 = vst [vmem:[#allocation9_spill] sm:$0xff] %v5165_v16  ;;  %7151 = vst [vmem:[#allocation120_spill] sm:$0xff] %v5167_v3  ;;  %v1692_v33 = vsub.f32 %v618_v12, %v5134_v48  ;;  %v5176_v36 = vadd.f32 %v1251_v34, %v4581_v52  ;;  %v1253_v19 = vmul.f32 %v1237_v0, %v1237_v0  ;;  %v7154_v3 = vld [vmem:[#allocation11_spill] sm:$0xff] }
  0xfd   : > { %v1482_v20 = vmul.f32 %v1466_v47, %v1466_v47  ;;  %v1239_v60 = vsub.f32 %v622_v8, %v5108_v50  ;;  %v1468_v62 = vsub.f32 %v622_v8, %v5120_v30  ;;  %v5180_v45 = vmul.f32 %v1691_v32, %v1691_v32  ;;  %v7156_v47 = vld [vmem:[#allocation14_spill] sm:$0xff] }
  0xfe   : > { %7153 = vst [vmem:[#allocation13_spill] sm:$0xff] %v5176_v36  ;;  %v1254_v2 = vmul.f32 %v1238_v14, %v1238_v14  ;;  %v1483_v44 = vmul.f32 %v1467_v17, %v1467_v17  ;;  %914 = vperm.xlu1 %4097, %v7154_v3   ;;  %v5184_v5 = vadd.f32 %v1480_v6, %v4583_v23  ;;  %v634_v36 = vpop.permute.xlu0 %633 }
  0xff   : > { %v1693_v12 = vsub.f32 %v622_v8, %v5134_v48  ;;  %v1240_v52 = vsub.f32 %v626_v10, %v5108_v50  ;;  %v1469_v34 = vsub.f32 %v626_v10, %v5120_v30  ;;  %v1694_v0 = vsub.f32 %v626_v10, %v5134_v48  ;;  %926 = vperm.xlu0 %4098, %v7156_v47   ;;  %v630_v17 = vpop.permute.xlu1 %629 }
 0x100   : > { %7155 = vst [vmem:[#allocation11_spill] sm:$0xff] %v5184_v5  ;;  %v5191_v32 = vmul.f32 %v1692_v33, %v1692_v33  ;;  %v1255_v14 = vmul.f32 %v1239_v60, %v1239_v60  ;;  %v5194_v3 = vadd.f32 %v1252_v4, %v4599_v29  ;;  %v5197_v23 = vadd.f32 %v1481_v40, %v4601_v26  ;;  %v7159_v5 = vld [vmem:[#allocation15_spill] sm:$0xff] }
 0x101   : > { %v1484_v6 = vmul.f32 %v1468_v62, %v1468_v62  ;;  %v1241_v8 = vsub.f32 %v630_v17, %v5108_v50  ;;  %v5201_v10 = vadd.f32 %v1253_v19, %v7159_v5  ;;  %v5204_v47 = vadd.f32 %v1482_v20, %v7161_v7  ;;  %v4202_v19 = vld [vmem:[%s4303_s19 + $0xb0] sm:$0xff] }
 0x102   : > { %7157 = vst [vmem:[#allocation14_spill] sm:$0xff] %v5194_v3  ;;  %7158 = vst [vmem:[#allocation121_spill] sm:$0xff] %v5197_v23  ;;  %v1470_v33 = vsub.f32 %v630_v17, %v5120_v30  ;;  %v1695_v60 = vsub.f32 %v630_v17, %v5134_v48  ;;  %v1242_v29 = vsub.f32 %v634_v36, %v5108_v50  ;;  %v4201_v3 = vld [vmem:[%s4303_s19 + $0x98] sm:$0xff]  ;;  %v642_v5 = vpop.permute.xlu0 %641 }
 0x103   : > { %7160 = vst [vmem:[#allocation15_spill] sm:$0xff] %v5201_v10  ;;  %7162 = vst [vmem:[#allocation16_spill] sm:$0xff] %v5204_v47  ;;  %v1471_v4 = vsub.f32 %v634_v36, %v5120_v30  ;;  %922 = vperm.xlu1 %4097, %v4201_v3   ;;  %v5211_v26 = vmul.f32 %v1693_v12, %v1693_v12  ;;  %v1256_v40 = vmul.f32 %v1240_v52, %v1240_v52  ;;  %v638_v20 = vpop.permute.xlu1 %637  ;;  %v7165_v3 = vld [vmem:[#allocation19_spill] sm:$0xff] }
 0x104   : > { %v1485_v62 = vmul.f32 %v1469_v34, %v1469_v34  ;;  %v5213_v23 = vmul.f32 %v1694_v0, %v1694_v0  ;;  %934 = vperm.xlu0 %4098, %v4202_v19   ;;  %v1696_v7 = vsub.f32 %v634_v36, %v5134_v48  ;;  %v5218_v17 = vadd.f32 %v1255_v14, %v4632_v24  ;;  %v7167_v19 = vld [vmem:[#allocation25_spill] sm:$0xff] }
 0x105   : > { %v5221_v47 = vadd.f32 %v1254_v2, %v4589_v49  ;;  %v5224_v12 = vadd.f32 %v1483_v44, %v7165_v3  ;;  %v1257_v52 = vmul.f32 %v1241_v8, %v1241_v8  ;;  %v1243_v34 = vsub.f32 %v638_v20, %v5108_v50  ;;  %v4204_v3 = vld [vmem:[%s4303_s19 + $0xc0] sm:$0xff] }
 0x106   : > { %7163 = vst [vmem:[#allocation122_spill] sm:$0xff] %v5218_v17  ;;  %v1472_v0 = vsub.f32 %v638_v20, %v5120_v30  ;;  %v5229_v10 = vadd.f32 %v1484_v6, %v7167_v19  ;;  %v1486_v36 = vmul.f32 %v1470_v33, %v1470_v33  ;;  %v5231_v16 = vmul.f32 %v1695_v60, %v1695_v60  ;;  %v4203_v17 = vld [vmem:[%s4303_s19 + $0xa8] sm:$0xff]  ;;  %v650_v19 = vpop.permute.xlu0 %649 }
 0x107   : > { %7164 = vst [vmem:[#allocation123_spill] sm:$0xff] %v5221_v47  ;;  %7166 = vst [vmem:[#allocation19_spill] sm:$0xff] %v5224_v12  ;;  %v1258_v24 = vmul.f32 %v1242_v29, %v1242_v29  ;;  %v1487_v14 = vmul.f32 %v1471_v4, %v1471_v4  ;;  %930 = vperm.xlu1 %4097, %v4203_v17   ;;  %v1697_v49 = vsub.f32 %v638_v20, %v5134_v48  ;;  %v646_v60 = vpop.permute.xlu1 %645  ;;  %v7169_v29 = vld [vmem:[#allocation18_spill] sm:$0xff]  ;;  %v7171_v17 = vld [vmem:[#allocation21_spill] sm:$0xff] }
 0x108   : > { %7168 = vst [vmem:[#allocation25_spill] sm:$0xff] %v5229_v10  ;;  %v1244_v2 = vsub.f32 %v642_v5, %v5108_v50  ;;  %v1473_v44 = vsub.f32 %v642_v5, %v5120_v30  ;;  %v1698_v8 = vsub.f32 %v642_v5, %v5134_v48  ;;  %942 = vperm.xlu0 %4098, %v4204_v3   ;;  %v4205_v10 = vld [vmem:[%s4303_s19 + $0xb8] sm:$0xff] }
 0x109   : > { %v5239_v6 = vmul.f32 %v1696_v7, %v1696_v7  ;;  %v1259_v33 = vmul.f32 %v1243_v34, %v1243_v34  ;;  %v5243_v4 = vadd.f32 %v5172_v38, %v7169_v29  ;;  %v5247_v20 = vadd.f32 %v5170_v1, %v7171_v17 }
 0x10a   : > { %v1488_v12 = vmul.f32 %v1472_v0, %v1472_v0  ;;  %v1245_v47 = vsub.f32 %v646_v60, %v5108_v50  ;;  %v1474_v5 = vsub.f32 %v646_v60, %v5120_v30  ;;  %v1699_v7 = vsub.f32 %v646_v60, %v5134_v48  ;;  %v4206_v60 = vld [vmem:[%s4303_s19 + $0xd0] sm:$0xff]  ;;  %v658_v63 = vpop.permute.xlu0 %657 }
 0x10b   : > { %7170 = vst [vmem:[#allocation18_spill] sm:$0xff] %v5243_v4  ;;  %7172 = vst [vmem:[#allocation21_spill] sm:$0xff] %v5247_v20  ;;  %v1246_v34 = vsub.f32 %v650_v19, %v5108_v50  ;;  %v1475_v3 = vsub.f32 %v650_v19, %v5120_v30  ;;  %938 = vperm.xlu1 %4097, %v4205_v10   ;;  %v5256_v38 = vadd.f32 %v1257_v52, %v4658_v58  ;;  %v654_v10 = vpop.permute.xlu1 %653  ;;  %v7175_v58 = vld [vmem:[#allocation22_spill] sm:$0xff] }
 0x10c   : > { %v5259_v29 = vadd.f32 %v1486_v36, %v4660_v27  ;;  %v5261_v1 = vmul.f32 %v1697_v49, %v1697_v49  ;;  %v5263_v0 = vmul.f32 %v1244_v2, %v1244_v2  ;;  %v5265_v17 = vmul.f32 %v1473_v44, %v1473_v44  ;;  %950 = vperm.xlu0 %4098, %v4206_v60   ;;  %v7177_v27 = vld [vmem:[#allocation23_spill] sm:$0xff] }
 0x10d   : > { %7173 = vst [vmem:[#allocation124_spill] sm:$0xff] %v5256_v38  ;;  %v5267_v20 = vmul.f32 %v1698_v8, %v1698_v8  ;;  %v1700_v4 = vsub.f32 %v650_v19, %v5134_v48  ;;  %v5272_v52 = vadd.f32 %v1256_v40, %v7175_v58  ;;  %v5275_v36 = vadd.f32 %v1485_v62, %v7177_v27  ;;  %v4207_v58 = vld [vmem:[%s4303_s19 + $0xc8] sm:$0xff] }
 0x10e   : > { %7174 = vst [vmem:[#allocation125_spill] sm:$0xff] %v5259_v29  ;;  %v5278_v49 = vadd.f32 %v1259_v33, %v4678_v55  ;;  %v1261_v2 = vmul.f32 %v1245_v47, %v1245_v47  ;;  %v1490_v44 = vmul.f32 %v1474_v5, %v1474_v5  ;;  %v5280_v8 = vmul.f32 %v1699_v7, %v1699_v7 }
 0x10f   : > { %7176 = vst [vmem:[#allocation22_spill] sm:$0xff] %v5272_v52  ;;  %7178 = vst [vmem:[#allocation23_spill] sm:$0xff] %v5275_v36  ;;  %v5283_v60 = vadd.f32 %v1488_v12, %v4684_v31  ;;  %v5285_v19 = vmul.f32 %v1246_v34, %v1246_v34  ;;  %v5287_v29 = vmul.f32 %v1475_v3, %v1475_v3  ;;  %946 = vperm.xlu1 %4097, %v4207_v58   ;;  %v4208_v31 = vld [vmem:[%s4303_s19 + $0xe0] sm:$0xff]  ;;  %v662_v7 = vpop.permute.xlu1 %661  ;;  %v666_v34 = vpop.permute.xlu0 %665  ;;  %v7183_v58 = vld [vmem:[#allocation26_spill] sm:$0xff] }
 0x110   : > { %7179 = vst [vmem:[#allocation126_spill] sm:$0xff] %v5278_v49  ;;  %v1247_v40 = vsub.f32 %v654_v10, %v5108_v50  ;;  %v1476_v62 = vsub.f32 %v654_v10, %v5120_v30  ;;  %v1701_v55 = vsub.f32 %v654_v10, %v5134_v48  ;;  %v1248_v47 = vsub.f32 %v658_v63, %v5108_v50  ;;  %v7181_v3 = vld [vmem:[#allocation17_spill] sm:$0xff]  ;;  %v7186_v49 = vld [vmem:[#allocation27_spill] sm:$0xff] }
 0x111   : > { %7180 = vst [vmem:[#allocation127_spill] sm:$0xff] %v5283_v60  ;;  %v1477_v33 = vsub.f32 %v658_v63, %v5120_v30  ;;  %v1702_v5 = vsub.f32 %v658_v63, %v5134_v48  ;;  %958 = vperm.xlu0 %4098, %v4208_v31   ;;  %v5297_v12 = vmul.f32 %v1700_v4, %v1700_v4 }
 0x112   : > { %v5301_v27 = vadd.f32 %v5180_v45, %v7181_v3  ;;  %v5305_v10 = vadd.f32 %v5211_v26, %v7183_v58  ;;  %v5308_v60 = vadd.f32 %v1258_v24, %v4648_v25  ;;  %v1249_v63 = vsub.f32 %v662_v7, %v5108_v50  ;;  %v4209_v58 = vld [vmem:[%s4303_s19 + $0xd8] sm:$0xff] }
 0x113   : > { %v1478_v31 = vsub.f32 %v662_v7, %v5120_v30  ;;  %v1703_v4 = vsub.f32 %v662_v7, %v5134_v48  ;;  %v5314_v36 = vadd.f32 %v1487_v14, %v7186_v49  ;;  %v1263_v52 = vmul.f32 %v1247_v40, %v1247_v40  ;;  %954 = vperm.xlu1 %4097, %v4209_v58   ;;  %v4210_v7 = vld [vmem:[%s4303_s19 + $0xf0] sm:$0xff]  ;;  %v670_v49 = vpop.permute.xlu1 %669  ;;  %v674_v40 = vpop.permute.xlu0 %673 }
 0x114   : > { %7182 = vst [vmem:[#allocation17_spill] sm:$0xff] %v5301_v27  ;;  %7184 = vst [vmem:[#allocation26_spill] sm:$0xff] %v5305_v10  ;;  %v1492_v45 = vmul.f32 %v1476_v62, %v1476_v62  ;;  %v1250_v3 = vsub.f32 %v666_v34, %v5108_v50  ;;  %v1479_v26 = vsub.f32 %v666_v34, %v5120_v30 }
 0x115   : > { %7185 = vst [vmem:[#allocation128_spill] sm:$0xff] %v5308_v60  ;;  %7187 = vst [vmem:[#allocation27_spill] sm:$0xff] %v5314_v36  ;;  %v5319_v10 = vmul.f32 %v1701_v55, %v1701_v55  ;;  %v5321_v25 = vmul.f32 %v1248_v47, %v1248_v47  ;;  %v5323_v24 = vmul.f32 %v1477_v33, %v1477_v33  ;;  %966 = vperm.xlu0 %4098, %v4210_v7   ;;  %v7189_v36 = vld [vmem:[#allocation37_spill] sm:$0xff]  ;;  %v7191_v55 = vld [vmem:[#allocation20_spill] sm:$0xff] }
 0x116   : > { %v5325_v60 = vmul.f32 %v1702_v5, %v1702_v5  ;;  %v1704_v14 = vsub.f32 %v666_v34, %v5134_v48  ;;  %v5330_v62 = vadd.f32 %v1261_v2, %v4720_v54  ;;  %v5333_v58 = vadd.f32 %v1490_v44, %v7189_v36  ;;  %v7193_v34 = vld [vmem:[#allocation29_spill] sm:$0xff] }
 0x117   : > { %v5337_v47 = vadd.f32 %v5191_v32, %v7191_v55  ;;  %v5339_v33 = vmul.f32 %v1249_v63, %v1249_v63  ;;  %v5341_v5 = vmul.f32 %v1478_v31, %v1478_v31  ;;  %v5343_v7 = vmul.f32 %v1703_v4, %v1703_v4  ;;  %v4211_v32 = vld [vmem:[%s4303_s19 + $0xe8] sm:$0xff] }
 0x118   : > { %7188 = vst [vmem:[#allocation129_spill] sm:$0xff] %v5330_v62  ;;  %7190 = vst [vmem:[#allocation37_spill] sm:$0xff] %v5333_v58  ;;  %v5347_v27 = vadd.f32 %v5231_v16, %v7193_v34  ;;  %v5349_v54 = vmul.f32 %v1250_v3, %v1250_v3  ;;  %v5351_v2 = vmul.f32 %v1479_v26, %v1479_v26  ;;  %962 = vperm.xlu1 %4097, %v4211_v32   ;;  %v4212_v16 = vld [vmem:[%s4303_s19 + $0x100] sm:$0xff]  ;;  %v678_v26 = vpop.permute.xlu1 %677  ;;  %v682_v34 = vpop.permute.xlu0 %681  ;;  %v7195_v58 = vld [vmem:[#allocation30_spill] sm:$0xff] }
 0x119   : > { %7192 = vst [vmem:[#allocation20_spill] sm:$0xff] %v5337_v47  ;;  %v1946_v36 = vsub.f32 %v670_v49, %v5108_v50  ;;  %v2171_v44 = vsub.f32 %v670_v49, %v5120_v30  ;;  %v2396_v63 = vsub.f32 %v670_v49, %v5134_v48  ;;  %v1947_v31 = vsub.f32 %v674_v40, %v5108_v50  ;;  %v7197_v32 = vld [vmem:[#allocation31_spill] sm:$0xff] }
 0x11a   : > { %7194 = vst [vmem:[#allocation29_spill] sm:$0xff] %v5347_v27  ;;  %v2172_v4 = vsub.f32 %v674_v40, %v5120_v30  ;;  %v2397_v55 = vsub.f32 %v674_v40, %v5134_v48  ;;  %974 = vperm.xlu0 %4098, %v4212_v16   ;;  %v5361_v3 = vmul.f32 %v1704_v14, %v1704_v14 }
 0x11b   : > { %v5365_v62 = vadd.f32 %v5263_v0, %v7195_v58  ;;  %v5369_v49 = vadd.f32 %v5265_v17, %v7197_v32  ;;  %v5372_v27 = vadd.f32 %v1263_v52, %v4740_v56  ;;  %v1948_v40 = vsub.f32 %v678_v26, %v5108_v50  ;;  %v4213_v32 = vld [vmem:[%s4303_s19 + $0xf8] sm:$0xff] }
 0x11c   : > { %v2173_v16 = vsub.f32 %v678_v26, %v5120_v30  ;;  %v2398_v14 = vsub.f32 %v678_v26, %v5134_v48  ;;  %v5378_v47 = vadd.f32 %v1492_v45, %v4742_v22  ;;  %v1962_v38 = vmul.f32 %v1946_v36, %v1946_v36  ;;  %970 = vperm.xlu1 %4097, %v4213_v32   ;;  %v4214_v26 = vld [vmem:[%s4303_s19 + $0x110] sm:$0xff]  ;;  %v686_v45 = vpop.permute.xlu1 %685  ;;  %v690_v36 = vpop.permute.xlu0 %689  ;;  %v7203_v32 = vld [vmem:[#allocation33_spill] sm:$0xff] }
 0x11d   : > { %7196 = vst [vmem:[#allocation30_spill] sm:$0xff] %v5365_v62  ;;  %7198 = vst [vmem:[#allocation31_spill] sm:$0xff] %v5369_v49  ;;  %v5380_v0 = vmul.f32 %v2171_v44, %v2171_v44  ;;  %v1949_v58 = vsub.f32 %v682_v34, %v5108_v50  ;;  %v2174_v17 = vsub.f32 %v682_v34, %v5120_v30  ;;  %v7201_v44 = vld [vmem:[#allocation24_spill] sm:$0xff]  ;;  %v7207_v62 = vld [vmem:[#allocation35_spill] sm:$0xff] }
 0x11e   : > { %7199 = vst [vmem:[#allocation130_spill] sm:$0xff] %v5372_v27  ;;  %7200 = vst [vmem:[#allocation131_spill] sm:$0xff] %v5378_v47  ;;  %v5385_v56 = vmul.f32 %v2396_v63, %v2396_v63  ;;  %v5387_v52 = vmul.f32 %v1947_v31, %v1947_v31  ;;  %v5389_v27 = vmul.f32 %v2172_v4, %v2172_v4  ;;  %982 = vperm.xlu0 %4098, %v4214_v26   ;;  %v7205_v31 = vld [vmem:[#allocation34_spill] sm:$0xff] }
 0x11f   : > { %v5391_v49 = vmul.f32 %v2397_v55, %v2397_v55  ;;  %v2399_v22 = vsub.f32 %v682_v34, %v5134_v48  ;;  %v5397_v47 = vadd.f32 %v5213_v23, %v7201_v44  ;;  %v5401_v63 = vadd.f32 %v5261_v1, %v7203_v32 }
 0x120   : > { %v5405_v4 = vadd.f32 %v5285_v19, %v7205_v31  ;;  %v5407_v55 = vmul.f32 %v1948_v40, %v1948_v40  ;;  %v5409_v26 = vmul.f32 %v2173_v16, %v2173_v16  ;;  %v5411_v34 = vmul.f32 %v2398_v14, %v2398_v14  ;;  %v4215_v19 = vld [vmem:[%s4303_s19 + $0x108] sm:$0xff] }
 0x121   : > { %7202 = vst [vmem:[#allocation24_spill] sm:$0xff] %v5397_v47  ;;  %7204 = vst [vmem:[#allocation33_spill] sm:$0xff] %v5401_v63  ;;  %v5415_v41 = vadd.f32 %v5287_v29, %v7207_v62  ;;  %v5417_v23 = vmul.f32 %v1949_v58, %v1949_v58  ;;  %v5419_v44 = vmul.f32 %v2174_v17, %v2174_v17  ;;  %978 = vperm.xlu1 %4097, %v4215_v19   ;;  %v4216_v29 = vld [vmem:[%s4303_s19 + $0x120] sm:$0xff]  ;;  %v694_v58 = vpop.permute.xlu1 %693  ;;  %v698_v17 = vpop.permute.xlu0 %697  ;;  %v7211_v19 = vld [vmem:[#allocation28_spill] sm:$0xff] }
 0x122   : > { %7206 = vst [vmem:[#allocation34_spill] sm:$0xff] %v5405_v4  ;;  %v1950_v1 = vsub.f32 %v686_v45, %v5108_v50  ;;  %v2175_v32 = vsub.f32 %v686_v45, %v5120_v30  ;;  %v2400_v40 = vsub.f32 %v686_v45, %v5134_v48  ;;  %v1951_v16 = vsub.f32 %v690_v36, %v5108_v50  ;;  %v7213_v63 = vld [vmem:[#allocation38_spill] sm:$0xff] }
 0x123   : > { %7208 = vst [vmem:[#allocation35_spill] sm:$0xff] %v5415_v41  ;;  %v2176_v14 = vsub.f32 %v690_v36, %v5120_v30  ;;  %v2401_v31 = vsub.f32 %v690_v36, %v5134_v48  ;;  %990 = vperm.xlu0 %4098, %v4216_v29   ;;  %v5429_v62 = vmul.f32 %v2399_v22, %v2399_v22 }
 0x124   : > { %v5433_v41 = vadd.f32 %v5339_v33, %v4776_v15  ;;  %v5437_v45 = vadd.f32 %v5341_v5, %v4778_v11  ;;  %v5441_v4 = vadd.f32 %v5239_v6, %v7211_v19  ;;  %v1952_v36 = vsub.f32 %v694_v58, %v5108_v50  ;;  %v4217_v6 = vld [vmem:[%s4303_s19 + $0x118] sm:$0xff] }
 0x125   : > { %v2177_v22 = vsub.f32 %v694_v58, %v5120_v30  ;;  %v2402_v29 = vsub.f32 %v694_v58, %v5134_v48  ;;  %v5448_v47 = vadd.f32 %v5280_v8, %v7213_v63  ;;  %v5450_v15 = vmul.f32 %v1950_v1, %v1950_v1  ;;  %986 = vperm.xlu1 %4097, %v4217_v6   ;;  %v4218_v8 = vld [vmem:[%s4303_s19 + $0x130] sm:$0xff]  ;;  %v702_v1 = vpop.permute.xlu1 %701  ;;  %v7217_v6 = vld [vmem:[#allocation40_spill] sm:$0xff] }
 0x126   : > { %7209 = vst [vmem:[#allocation132_spill] sm:$0xff] %v5433_v41  ;;  %7210 = vst [vmem:[#allocation133_spill] sm:$0xff] %v5437_v45  ;;  %v5452_v33 = vmul.f32 %v2175_v32, %v2175_v32  ;;  %v1953_v11 = vsub.f32 %v698_v17, %v5108_v50  ;;  %v2178_v5 = vsub.f32 %v698_v17, %v5120_v30  ;;  %v706_v32 = vpop.permute.xlu0 %705 }
 0x127   : > { %7212 = vst [vmem:[#allocation28_spill] sm:$0xff] %v5441_v4  ;;  %7214 = vst [vmem:[#allocation38_spill] sm:$0xff] %v5448_v47  ;;  %v5457_v19 = vmul.f32 %v2400_v40, %v2400_v40  ;;  %v5459_v45 = vmul.f32 %v1951_v16, %v1951_v16  ;;  %v5461_v41 = vmul.f32 %v2176_v14, %v2176_v14  ;;  %998 = vperm.xlu0 %4098, %v4218_v8   ;;  %v7215_v47 = vld [vmem:[#allocation39_spill] sm:$0xff] }
 0x128   : > { %v5463_v58 = vmul.f32 %v2401_v31, %v2401_v31  ;;  %v2403_v63 = vsub.f32 %v698_v17, %v5134_v48  ;;  %v5469_v4 = vadd.f32 %v5321_v25, %v7215_v47  ;;  %v5473_v40 = vadd.f32 %v5323_v24, %v7217_v6 }
 0x129   : > { %v5476_v16 = vadd.f32 %v1962_v38, %v4802_v28  ;;  %v5478_v14 = vmul.f32 %v1952_v36, %v1952_v36  ;;  %v5480_v31 = vmul.f32 %v2177_v22, %v2177_v22  ;;  %v5482_v8 = vmul.f32 %v2402_v29, %v2402_v29  ;;  %v4219_v28 = vld [vmem:[%s4303_s19 + $0x128] sm:$0xff] }
 0x12a   : > { %7216 = vst [vmem:[#allocation39_spill] sm:$0xff] %v5469_v4  ;;  %7218 = vst [vmem:[#allocation40_spill] sm:$0xff] %v5473_v40  ;;  %v5486_v17 = vadd.f32 %v5380_v0, %v4804_v21  ;;  %v5488_v25 = vmul.f32 %v1953_v11, %v1953_v11  ;;  %v5490_v47 = vmul.f32 %v2178_v5, %v2178_v5  ;;  %994 = vperm.xlu1 %4097, %v4219_v28   ;;  %v4220_v21 = vld [vmem:[%s4303_s19 + $0x140] sm:$0xff]  ;;  %v710_v11 = vpop.permute.xlu1 %709  ;;  %v714_v5 = vpop.permute.xlu0 %713  ;;  %v7224_v28 = vld [vmem:[#allocation42_spill] sm:$0xff] }
 0x12b   : > { %7219 = vst [vmem:[#allocation134_spill] sm:$0xff] %v5476_v16  ;;  %v1954_v24 = vsub.f32 %v702_v1, %v5108_v50  ;;  %v2179_v6 = vsub.f32 %v702_v1, %v5120_v30  ;;  %v2404_v38 = vsub.f32 %v702_v1, %v5134_v48  ;;  %v1955_v36 = vsub.f32 %v706_v32, %v5108_v50  ;;  %v7226_v40 = vld [vmem:[#allocation43_spill] sm:$0xff] }
 0x12c   : > { %7220 = vst [vmem:[#allocation135_spill] sm:$0xff] %v5486_v17  ;;  %v2180_v22 = vsub.f32 %v706_v32, %v5120_v30  ;;  %v2405_v29 = vsub.f32 %v706_v32, %v5134_v48  ;;  %1006 = vperm.xlu0 %4098, %v4220_v21   ;;  %v5500_v0 = vmul.f32 %v2403_v63, %v2403_v63  ;;  %v7222_v17 = vld [vmem:[#allocation32_spill] sm:$0xff] }
 0x12d   : > { %v5504_v16 = vadd.f32 %v5267_v20, %v7222_v17  ;;  %v5508_v1 = vadd.f32 %v5319_v10, %v7224_v28  ;;  %v5512_v4 = vadd.f32 %v5349_v54, %v7226_v40  ;;  %v1956_v32 = vsub.f32 %v710_v11, %v5108_v50  ;;  %v4221_v54 = vld [vmem:[%s4303_s19 + $0x138] sm:$0xff] }
 0x12e   : > { %7221 = vst [vmem:[#allocation136_spill] sm:$0xff] %v5500_v0  ;;  %v2181_v63 = vsub.f32 %v710_v11, %v5120_v30  ;;  %v2406_v21 = vsub.f32 %v710_v11, %v5134_v48  ;;  %v5519_v0 = vadd.f32 %v5351_v2, %v7228_v61  ;;  %v5521_v20 = vmul.f32 %v1954_v24, %v1954_v24  ;;  %v4222_v61 = vld [vmem:[%s4303_s19 + $0x150] sm:$0xff]  ;;  %v718_v24 = vpop.permute.xlu1 %717 }
 0x12f   : > { %7223 = vst [vmem:[#allocation32_spill] sm:$0xff] %v5504_v16  ;;  %7225 = vst [vmem:[#allocation42_spill] sm:$0xff] %v5508_v1  ;;  %v5523_v17 = vmul.f32 %v2179_v6, %v2179_v6  ;;  %v1957_v10 = vsub.f32 %v714_v5, %v5108_v50  ;;  %v2182_v28 = vsub.f32 %v714_v5, %v5120_v30  ;;  %1002 = vperm.xlu1 %4097, %v4221_v54   ;;  %v722_v6 = vpop.permute.xlu0 %721 }
 0x130   : > { %7227 = vst [vmem:[#allocation43_spill] sm:$0xff] %v5512_v4  ;;  %7229 = vst [vmem:[#allocation44_spill] sm:$0xff] %v5519_v0  ;;  %v5528_v40 = vmul.f32 %v2404_v38, %v2404_v38  ;;  %v5530_v4 = vmul.f32 %v1955_v36, %v1955_v36  ;;  %v5532_v1 = vmul.f32 %v2180_v22, %v2180_v22  ;;  %1014 = vperm.xlu0 %4098, %v4222_v61   ;;  %v7232_v36 = vld [vmem:[#allocation36_spill] sm:$0xff]  ;;  %v7234_v61 = vld [vmem:[#allocation46_spill] sm:$0xff] }
 0x131   : > { %v5534_v11 = vmul.f32 %v2405_v29, %v2405_v29  ;;  %v2407_v2 = vsub.f32 %v714_v5, %v5134_v48  ;;  %v5540_v0 = vadd.f32 %v5407_v55, %v4822_v13  ;;  %v5544_v38 = vadd.f32 %v5409_v26, %v4828_v39 }
 0x132   : > { %v5548_v22 = vadd.f32 %v5297_v12, %v7232_v36  ;;  %v5550_v29 = vmul.f32 %v1956_v32, %v1956_v32  ;;  %v5552_v54 = vmul.f32 %v2181_v63, %v2181_v63  ;;  %v5554_v5 = vmul.f32 %v2406_v21, %v2406_v21  ;;  %v4223_v12 = vld [vmem:[%s4303_s19 + $0x148] sm:$0xff] }
 0x133   : > { %7230 = vst [vmem:[#allocation137_spill] sm:$0xff] %v5540_v0  ;;  %7231 = vst [vmem:[#allocation138_spill] sm:$0xff] %v5544_v38  ;;  %v5558_v16 = vadd.f32 %v5343_v7, %v7234_v61  ;;  %v5560_v13 = vmul.f32 %v1957_v10, %v1957_v10  ;;  %v5562_v55 = vmul.f32 %v2182_v28, %v2182_v28  ;;  %1010 = vperm.xlu1 %4097, %v4223_v12   ;;  %v4224_v7 = vld [vmem:[%s4303_s19 + $0x160] sm:$0xff]  ;;  %v726_v28 = vpop.permute.xlu1 %725  ;;  %v730_v61 = vpop.permute.xlu0 %729  ;;  %v7238_v12 = vld [vmem:[#allocation47_spill] sm:$0xff] }
 0x134   : > { %7233 = vst [vmem:[#allocation36_spill] sm:$0xff] %v5548_v22  ;;  %v1958_v39 = vsub.f32 %v718_v24, %v5108_v50  ;;  %v2183_v26 = vsub.f32 %v718_v24, %v5120_v30  ;;  %v2408_v32 = vsub.f32 %v718_v24, %v5134_v48  ;;  %v1959_v63 = vsub.f32 %v722_v6, %v5108_v50 }
 0x135   : > { %7235 = vst [vmem:[#allocation46_spill] sm:$0xff] %v5558_v16  ;;  %v2184_v21 = vsub.f32 %v722_v6, %v5120_v30  ;;  %v2409_v36 = vsub.f32 %v722_v6, %v5134_v48  ;;  %1022 = vperm.xlu0 %4098, %v4224_v7   ;;  %v5572_v10 = vmul.f32 %v2407_v2, %v2407_v2 }
 0x136   : > { %v5576_v38 = vadd.f32 %v5387_v52, %v4792_v59  ;;  %v5580_v24 = vadd.f32 %v5389_v27, %v7238_v12  ;;  %v5584_v0 = vadd.f32 %v5450_v15, %v4864_v18  ;;  %v1960_v6 = vsub.f32 %v726_v28, %v5108_v50  ;;  %v4225_v18 = vld [vmem:[%s4303_s19 + $0x158] sm:$0xff] }
 0x137   : > { %7236 = vst [vmem:[#allocation139_spill] sm:$0xff] %v5572_v10  ;;  %v2185_v2 = vsub.f32 %v726_v28, %v5120_v30  ;;  %v2410_v7 = vsub.f32 %v726_v28, %v5134_v48  ;;  %v7241_v10 = vld [vmem:[#allocation57_spill] sm:$0xff]  ;;  %v5593_v59 = vmul.f32 %v1958_v39, %v1958_v39  ;;  %v5595_v52 = vmul.f32 %v2183_v26, %v2183_v26  ;;  %v734_v26 = vpop.permute.xlu1 %733 }
 0x138   : > { %7237 = vst [vmem:[#allocation140_spill] sm:$0xff] %v5576_v38  ;;  %7239 = vst [vmem:[#allocation47_spill] sm:$0xff] %v5580_v24  ;;  %v5591_v16 = vadd.f32 %v5452_v33, %v7241_v10  ;;  %v1961_v27 = vsub.f32 %v730_v61, %v5108_v50  ;;  %v2186_v12 = vsub.f32 %v730_v61, %v5120_v30  ;;  %1018 = vperm.xlu1 %4097, %v4225_v18   ;;  %v4226_v33 = vld [vmem:[%s4303_s19 + $0x170] sm:$0xff]  ;;  %v738_v10 = vpop.permute.xlu0 %737  ;;  %v7245_v18 = vld [vmem:[#allocation49_spill] sm:$0xff] }
 0x139   : > { %7240 = vst [vmem:[#allocation141_spill] sm:$0xff] %v5584_v0  ;;  %v5600_v15 = vmul.f32 %v2408_v32, %v2408_v32  ;;  %v5602_v0 = vmul.f32 %v1959_v63, %v1959_v63  ;;  %v5604_v24 = vmul.f32 %v2184_v21, %v2184_v21  ;;  %v5606_v28 = vmul.f32 %v2409_v36, %v2409_v36  ;;  %v7247_v63 = vld [vmem:[#allocation50_spill] sm:$0xff] }
 0x13a   : > { %7242 = vst [vmem:[#allocation57_spill] sm:$0xff] %v5591_v16  ;;  %1030 = vperm.xlu0 %4098, %v4226_v33   ;;  %v2411_v39 = vsub.f32 %v730_v61, %v5134_v48  ;;  %v7244_v16 = vld [vmem:[#allocation41_spill] sm:$0xff]  ;;  %v5616_v32 = vadd.f32 %v5385_v56, %v7245_v18  ;;  %v5620_v21 = vadd.f32 %v5417_v23, %v7247_v63  ;;  %v7250_v61 = vld [vmem:[#allocation51_spill] sm:$0xff]  ;;  %v4227_v23 = vld [vmem:[%s4303_s19 + $0x168] sm:$0xff] }
 0x13b   : > { %7243 = vst [vmem:[#allocation142_spill] sm:$0xff] %v5606_v28  ;;  %v5612_v38 = vadd.f32 %v5325_v60, %v7244_v16  ;;  %v5622_v36 = vmul.f32 %v1960_v6, %v1960_v6  ;;  %v5624_v28 = vmul.f32 %v2185_v2, %v2185_v2  ;;  %v5626_v33 = vmul.f32 %v2410_v7, %v2410_v7 }
 0x13c   : > { %7246 = vst [vmem:[#allocation41_spill] sm:$0xff] %v5616_v32  ;;  %7248 = vst [vmem:[#allocation49_spill] sm:$0xff] %v5620_v21  ;;  %v5630_v22 = vadd.f32 %v5419_v44, %v7250_v61  ;;  %v5632_v60 = vmul.f32 %v1961_v27, %v1961_v27  ;;  %v5634_v16 = vmul.f32 %v2186_v12, %v2186_v12  ;;  %1026 = vperm.xlu1 %4097, %v4227_v23   ;;  %v742_v27 = vpop.permute.xlu1 %741  ;;  %v746_v12 = vpop.permute.xlu0 %745 }
 0x13d   : > { %7249 = vst [vmem:[#allocation50_spill] sm:$0xff] %v5626_v33  ;;  %v2653_v56 = vsub.f32 %v734_v26, %v5108_v50  ;;  %v2878_v18 = vsub.f32 %v734_v26, %v5120_v30  ;;  %v3103_v6 = vsub.f32 %v734_v26, %v5134_v48  ;;  %v2654_v2 = vsub.f32 %v738_v10, %v5108_v50  ;;  %v7255_v26 = vld [vmem:[#allocation45_spill] sm:$0xff] }
 0x13e   : > { %7251 = vst [vmem:[#allocation51_spill] sm:$0xff] %v5630_v22  ;;  %v2879_v7 = vsub.f32 %v738_v10, %v5120_v30  ;;  %v3104_v44 = vsub.f32 %v738_v10, %v5134_v48  ;;  %v5643_v63 = vmul.f32 %v2411_v39, %v2411_v39  ;;  %v5647_v61 = vadd.f32 %v5478_v14, %v4882_v9 }
 0x13f   : > { %v5651_v23 = vadd.f32 %v5480_v31, %v4884_v57  ;;  %v5655_v33 = vadd.f32 %v5361_v3, %v7255_v26  ;;  %v2655_v22 = vsub.f32 %v742_v27, %v5108_v50  ;;  %v2880_v10 = vsub.f32 %v742_v27, %v5120_v30  ;;  %v4228_v3 = vld [vmem:[%s4303_s19 + $0x178] sm:$0xff] }
 0x140   : > { %7252 = vst [vmem:[#allocation143_spill] sm:$0xff] %v5643_v63  ;;  %7253 = vst [vmem:[#allocation144_spill] sm:$0xff] %v5647_v61  ;;  %v3105_v39 = vsub.f32 %v742_v27, %v5134_v48  ;;  %v7257_v63 = vld [vmem:[#allocation53_spill] sm:$0xff]  ;;  %v5664_v9 = vmul.f32 %v2653_v56, %v2653_v56  ;;  %v5666_v14 = vmul.f32 %v2878_v18, %v2878_v18  ;;  %1034 = vperm.xlu1 %4097, %v4228_v3   ;;  %v750_v56 = vpop.permute.xlu1 %749  ;;  %v7263_v18 = vld [vmem:[#allocation54_spill] sm:$0xff] }
 0x141   : > { %7254 = vst [vmem:[#allocation145_spill] sm:$0xff] %v5651_v23  ;;  %7256 = vst [vmem:[#allocation45_spill] sm:$0xff] %v5655_v33  ;;  %v5662_v21 = vadd.f32 %v5411_v34, %v7257_v63  ;;  %v2656_v57 = vsub.f32 %v746_v12, %v5108_v50  ;;  %v2881_v31 = vsub.f32 %v746_v12, %v5120_v30  ;;  %v754_v63 = vpop.permute.xlu0 %753  ;;  %v7264_v33 = vld [vmem:[#allocation55_spill] sm:$0xff] }
 0x142   : > { %v5671_v26 = vmul.f32 %v3103_v6, %v3103_v6  ;;  %v5673_v23 = vmul.f32 %v2654_v2, %v2654_v2  ;;  %v5675_v61 = vmul.f32 %v2879_v7, %v2879_v7  ;;  %v5677_v27 = vmul.f32 %v3104_v44, %v3104_v44 }
 0x143   : > { %7258 = vst [vmem:[#allocation53_spill] sm:$0xff] %v5662_v21  ;;  %v3106_v34 = vsub.f32 %v746_v12, %v5134_v48  ;;  %v5682_v21 = vadd.f32 %v5459_v45, %v7263_v18  ;;  %v5686_v32 = vadd.f32 %v5461_v41, %v7264_v33  ;;  %v5690_v6 = vadd.f32 %v5521_v20, %v4916_v35  ;;  %v7268_v12 = vld [vmem:[#allocation66_spill] sm:$0xff] }
 0x144   : > { %7259 = vst [vmem:[#allocation146_spill] sm:$0xff] %v5671_v26  ;;  %7260 = vst [vmem:[#allocation147_spill] sm:$0xff] %v5673_v23  ;;  %v5692_v2 = vmul.f32 %v2655_v22, %v2655_v22  ;;  %v5694_v7 = vmul.f32 %v2880_v10, %v2880_v10  ;;  %v5696_v44 = vmul.f32 %v3105_v39, %v3105_v39 }
 0x145   : > { %7261 = vst [vmem:[#allocation148_spill] sm:$0xff] %v5675_v61  ;;  %7262 = vst [vmem:[#allocation149_spill] sm:$0xff] %v5677_v27  ;;  %v5700_v3 = vadd.f32 %v5523_v17, %v7268_v12  ;;  %v5702_v45 = vmul.f32 %v2656_v57, %v2656_v57  ;;  %v5704_v18 = vmul.f32 %v2881_v31, %v2881_v31  ;;  %v758_v17 = vpop.permute.xlu1 %757  ;;  %v762_v12 = vpop.permute.xlu0 %761  ;;  %v7272_v57 = vld [vmem:[#allocation48_spill] sm:$0xff]  ;;  %v7273_v27 = vld [vmem:[#allocation58_spill] sm:$0xff] }
 0x146   : > { %7265 = vst [vmem:[#allocation54_spill] sm:$0xff] %v5692_v2  ;;  %7266 = vst [vmem:[#allocation55_spill] sm:$0xff] %v5694_v7  ;;  %v2657_v41 = vsub.f32 %v750_v56, %v5108_v50  ;;  %v2882_v33 = vsub.f32 %v750_v56, %v5120_v30  ;;  %v3107_v35 = vsub.f32 %v750_v56, %v5134_v48 }
 0x147   : > { %7267 = vst [vmem:[#allocation150_spill] sm:$0xff] %v5696_v44  ;;  %7269 = vst [vmem:[#allocation66_spill] sm:$0xff] %v5702_v45  ;;  %v2658_v20 = vsub.f32 %v754_v63, %v5108_v50  ;;  %v2883_v22 = vsub.f32 %v754_v63, %v5120_v30  ;;  %v3108_v10 = vsub.f32 %v754_v63, %v5134_v48 }
 0x148   : > { %7270 = vst [vmem:[#allocation151_spill] sm:$0xff] %v5704_v18  ;;  %v5712_v39 = vmul.f32 %v3106_v34, %v3106_v34  ;;  %v5716_v31 = vadd.f32 %v5391_v49, %v7272_v57  ;;  %v5720_v44 = vadd.f32 %v5457_v19, %v7273_v27  ;;  %v7274_v18 = vld [vmem:[#allocation59_spill] sm:$0xff]  ;;  %v2659_v45 = vsub.f32 %v758_v17, %v5108_v50 }
 0x149   : > { %v5724_v56 = vadd.f32 %v5488_v25, %v7274_v18  ;;  %v2884_v63 = vsub.f32 %v758_v17, %v5120_v30  ;;  %v3109_v34 = vsub.f32 %v758_v17, %v5134_v48  ;;  %v5733_v49 = vmul.f32 %v2657_v41, %v2657_v41 }
 0x14a   : > { %7271 = vst [vmem:[#allocation152_spill] sm:$0xff] %v5712_v39  ;;  %v7275_v39 = vld [vmem:[#allocation60_spill] sm:$0xff]  ;;  %v5735_v57 = vmul.f32 %v2882_v33, %v2882_v33  ;;  %v2660_v19 = vsub.f32 %v762_v12, %v5108_v50  ;;  %v2885_v27 = vsub.f32 %v762_v12, %v5120_v30  ;;  %v5739_v25 = vmul.f32 %v3107_v35, %v3107_v35 }
 0x14b   : > { %v5731_v26 = vadd.f32 %v5490_v47, %v7275_v39  ;;  %7276 = vst [vmem:[#allocation48_spill] sm:$0xff] %v5733_v49  ;;  %v5741_v18 = vmul.f32 %v2658_v20, %v2658_v20  ;;  %v5743_v61 = vmul.f32 %v2883_v22, %v2883_v22  ;;  %v5745_v23 = vmul.f32 %v3108_v10, %v3108_v10  ;;  %v766_v47 = vpop.permute.xlu1 %765  ;;  %v770_v39 = vpop.permute.xlu0 %769  ;;  %v7282_v35 = vld [vmem:[#allocation52_spill] sm:$0xff] }
 0x14c   : > { %7277 = vst [vmem:[#allocation58_spill] sm:$0xff] %v5735_v57  ;;  %7278 = vst [vmem:[#allocation59_spill] sm:$0xff] %v5739_v25  ;;  %v3110_v17 = vsub.f32 %v762_v12, %v5134_v48  ;;  %v5750_v41 = vadd.f32 %v5550_v29, %v4941_v42  ;;  %v5754_v33 = vadd.f32 %v5552_v54, %v4943_v53  ;;  %v7286_v12 = vld [vmem:[#allocation62_spill] sm:$0xff]  ;;  %v7342_v57 = vld [vmem:[#allocation13_spill] sm:$0xff] }
 0x14d   : > { %7279 = vst [vmem:[#allocation60_spill] sm:$0xff] %v5741_v18  ;;  %7280 = vst [vmem:[#allocation153_spill] sm:$0xff] %v5743_v61  ;;  %v5758_v20 = vadd.f32 %v5429_v62, %v7282_v35  ;;  %v5760_v22 = vmul.f32 %v2659_v45, %v2659_v45  ;;  %v5762_v10 = vmul.f32 %v2884_v63, %v2884_v63 }
 0x14e   : > { %7281 = vst [vmem:[#allocation154_spill] sm:$0xff] %v5745_v23  ;;  %v5764_v23 = vmul.f32 %v3109_v34, %v3109_v34  ;;  %v5768_v25 = vadd.f32 %v5482_v8, %v7286_v12  ;;  %v5770_v42 = vmul.f32 %v2660_v19, %v2660_v19  ;;  %v5772_v29 = vmul.f32 %v2885_v27, %v2885_v27  ;;  %v7290_v19 = vld [vmem:[#allocation63_spill] sm:$0xff] }
 0x14f   : > { %7283 = vst [vmem:[#allocation52_spill] sm:$0xff] %v5760_v22  ;;  %7284 = vst [vmem:[#allocation155_spill] sm:$0xff] %v5762_v10  ;;  %v2661_v53 = vsub.f32 %v766_v47, %v5108_v50  ;;  %v2886_v54 = vsub.f32 %v766_v47, %v5120_v30  ;;  %v3111_v62 = vsub.f32 %v766_v47, %v5134_v48  ;;  %v774_v8 = vpop.permute.xlu1 %773  ;;  %v778_v12 = vpop.permute.xlu0 %777 }
 0x150   : > { %7285 = vst [vmem:[#allocation156_spill] sm:$0xff] %v5764_v23  ;;  %7287 = vst [vmem:[#allocation62_spill] sm:$0xff] %v5770_v42  ;;  %v2662_v45 = vsub.f32 %v770_v39, %v5108_v50  ;;  %v2887_v63 = vsub.f32 %v770_v39, %v5120_v30  ;;  %v3112_v34 = vsub.f32 %v770_v39, %v5134_v48  ;;  %v7291_v23 = vld [vmem:[#allocation64_spill] sm:$0xff] }
 0x151   : > { %7288 = vst [vmem:[#allocation157_spill] sm:$0xff] %v5772_v29  ;;  %v5780_v35 = vmul.f32 %v3110_v17, %v3110_v17  ;;  %v5784_v27 = vadd.f32 %v5530_v4, %v7290_v19  ;;  %v5788_v29 = vadd.f32 %v5532_v1, %v7291_v23  ;;  %v5792_v47 = vadd.f32 %v5593_v59, %v4958_v37 }
 0x152   : > { %v2663_v42 = vsub.f32 %v774_v8, %v5108_v50  ;;  %v2888_v39 = vsub.f32 %v774_v8, %v5120_v30  ;;  %v3113_v17 = vsub.f32 %v774_v8, %v5134_v48  ;;  %v5801_v4 = vmul.f32 %v2661_v53, %v2661_v53  ;;  %v7299_v53 = vld [vmem:[#allocation56_spill] sm:$0xff] }
 0x153   : > { %7289 = vst [vmem:[#allocation158_spill] sm:$0xff] %v5780_v35  ;;  %v5799_v35 = vadd.f32 %v5595_v52, %v4964_v43  ;;  %v5803_v19 = vmul.f32 %v2886_v54, %v2886_v54  ;;  %v2664_v1 = vsub.f32 %v778_v12, %v5108_v50  ;;  %v2889_v23 = vsub.f32 %v778_v12, %v5120_v30  ;;  %v782_v43 = vpop.permute.xlu1 %781  ;;  %v786_v52 = vpop.permute.xlu0 %785 }
 0x154   : > { %7293 = vst [vmem:[#allocation64_spill] sm:$0xff] %v5801_v4  ;;  %v5807_v37 = vmul.f32 %v3111_v62, %v3111_v62  ;;  %v5809_v59 = vmul.f32 %v2662_v45, %v2662_v45  ;;  %v5811_v61 = vmul.f32 %v2887_v63, %v2887_v63  ;;  %v5813_v18 = vmul.f32 %v3112_v34, %v3112_v34  ;;  %v7301_v62 = vld [vmem:[#allocation68_spill] sm:$0xff] }
 0x155   : > { %7292 = vst [vmem:[#allocation63_spill] sm:$0xff] %v5799_v35  ;;  %7294 = vst [vmem:[#allocation159_spill] sm:$0xff] %v5803_v19  ;;  %v3114_v8 = vsub.f32 %v778_v12, %v5134_v48  ;;  %v5818_v54 = vadd.f32 %v5463_v58, %v7299_v53  ;;  %v7300_v19 = vld [vmem:[#allocation67_spill] sm:$0xff]  ;;  %v5826_v45 = vadd.f32 %v5560_v13, %v7301_v62  ;;  %v7305_v12 = vld [vmem:[#allocation69_spill] sm:$0xff] }
 0x156   : > { %7295 = vst [vmem:[#allocation160_spill] sm:$0xff] %v5807_v37  ;;  %7296 = vst [vmem:[#allocation161_spill] sm:$0xff] %v5809_v59  ;;  %v5822_v4 = vadd.f32 %v5528_v40, %v7300_v19  ;;  %v5828_v63 = vmul.f32 %v2663_v42, %v2663_v42  ;;  %v5830_v34 = vmul.f32 %v2888_v39, %v2888_v39 }
 0x157   : > { %7297 = vst [vmem:[#allocation162_spill] sm:$0xff] %v5811_v61  ;;  %7298 = vst [vmem:[#allocation163_spill] sm:$0xff] %v5813_v18  ;;  %v5832_v18 = vmul.f32 %v3113_v17, %v3113_v17  ;;  %v5836_v37 = vadd.f32 %v5562_v55, %v7305_v12  ;;  %v5838_v58 = vmul.f32 %v2664_v1, %v2664_v1  ;;  %v790_v55 = vpop.permute.xlu1 %789  ;;  %v794_v12 = vpop.permute.xlu0 %793 }
 0x158   : > { %7302 = vst [vmem:[#allocation56_spill] sm:$0xff] %v5828_v63  ;;  %7303 = vst [vmem:[#allocation67_spill] sm:$0xff] %v5830_v34  ;;  %v5840_v53 = vmul.f32 %v2889_v23, %v2889_v23  ;;  %v2665_v40 = vsub.f32 %v782_v43, %v5108_v50  ;;  %v2890_v19 = vsub.f32 %v782_v43, %v5120_v30  ;;  %v5884_v34 = vld [vmem:[%s4533_s23 + $0x2] ss:$0 sm:$0xff] }
 0x159   : > { %7304 = vst [vmem:[#allocation68_spill] sm:$0xff] %v5832_v18  ;;  %7306 = vst [vmem:[#allocation69_spill] sm:$0xff] %v5836_v37  ;;  %v3115_v13 = vsub.f32 %v782_v43, %v5134_v48  ;;  %v2666_v42 = vsub.f32 %v786_v52, %v5108_v50  ;;  %v2891_v39 = vsub.f32 %v786_v52, %v5120_v30  ;;  %v7312_v43 = vld [vmem:[#allocation61_spill] sm:$0xff]  ;;  %v7313_v18 = vld [vmem:[#allocation136_spill] sm:$0xff] }
 0x15a   : > { %7307 = vst [vmem:[#allocation164_spill] sm:$0xff] %v5838_v58  ;;  %7308 = vst [vmem:[#allocation165_spill] sm:$0xff] %v5840_v53  ;;  %v3116_v17 = vsub.f32 %v786_v52, %v5134_v48  ;;  %v5848_v62 = vmul.f32 %v3114_v8, %v3114_v8  ;;  %v5852_v1 = vadd.f32 %v5622_v36, %v4989_v46  ;;  %v7314_v58 = vld [vmem:[#allocation71_spill] sm:$0xff] }
 0x15b   : > { %v5856_v23 = vadd.f32 %v5624_v28, %v4993_v51  ;;  %v5860_v53 = vadd.f32 %v7313_v18, %v7312_v43  ;;  %v2667_v52 = vsub.f32 %v790_v55, %v5108_v50  ;;  %v2892_v8 = vsub.f32 %v790_v55, %v5120_v30 }
 0x15c   : > { %7309 = vst [vmem:[#allocation166_spill] sm:$0xff] %v5848_v62  ;;  %7310 = vst [vmem:[#allocation167_spill] sm:$0xff] %v5852_v1  ;;  %v2668_v62 = vsub.f32 %v794_v12, %v5108_v50  ;;  %v5867_v61 = vadd.f32 %v5554_v5, %v7314_v58  ;;  %v5869_v46 = vmul.f32 %v2665_v40, %v2665_v40  ;;  %v5887_v5 = vld [vmem:[%s4533_s23 + $0x6] ss:$0 sm:$0xff] }
 0x15d   : > { %7311 = vst [vmem:[#allocation168_spill] sm:$0xff] %v5856_v23  ;;  %v5871_v36 = vmul.f32 %v2890_v19, %v2890_v19  ;;  %v3117_v51 = vsub.f32 %v790_v55, %v5134_v48  ;;  %v2893_v28 = vsub.f32 %v794_v12, %v5120_v30  ;;  %v5875_v18 = vmul.f32 %v3115_v13, %v3115_v13  ;;  %v7322_v19 = vld [vmem:[#allocation72_spill] sm:$0xff]  ;;  %v7324_v30 = vld [vmem:[#allocation73_spill] sm:$0xff] }
 0x15e   : > { %7315 = vst [vmem:[#allocation61_spill] sm:$0xff] %v5867_v61  ;;  %7316 = vst [vmem:[#allocation136_spill] sm:$0xff] %v5869_v46  ;;  %v5877_v43 = vmul.f32 %v2666_v42, %v2666_v42  ;;  %v5879_v59 = vmul.f32 %v2891_v39, %v2891_v39  ;;  %v5881_v50 = vmul.f32 %v3116_v17, %v3116_v17  ;;  %v847_v17 = vpop.permute.xlu1 %846  ;;  %v7340_v46 = vld [vmem:[#allocation7_spill] sm:$0xff]  ;;  %v7354_v1 = vld [vmem:[#allocation25_spill] sm:$0xff] }
 0x15f   : > { %7317 = vst [vmem:[#allocation71_spill] sm:$0xff] %v5871_v36  ;;  %7318 = vst [vmem:[#allocation169_spill] sm:$0xff] %v5875_v18  ;;  %v2683_v58 = vmul.f32 %v2667_v52, %v2667_v52  ;;  %v2908_v40 = vmul.f32 %v2892_v8, %v2892_v8  ;;  %v5891_v55 = vadd.f32 %v5602_v0, %v7322_v19  ;;  %v5911_v19 = vld [vmem:[%s4533_s23 + $0xa] ss:$0 sm:$0xff] }
 0x160   : > { %7319 = vst [vmem:[#allocation170_spill] sm:$0xff] %v5877_v43  ;;  %7320 = vst [vmem:[#allocation171_spill] sm:$0xff] %v5879_v59  ;;  %v5895_v13 = vadd.f32 %v5604_v24, %v7324_v30  ;;  %v2684_v42 = vmul.f32 %v2668_v62, %v2668_v62  ;;  %v5898_v39 = vsub.f32 %v794_v12, %v5134_v48  ;;  %v7329_v59 = vld [vmem:[#allocation84_spill] sm:$0xff]  ;;  %v851_v48 = vpop.permute.xlu0 %850 }
 0x161   : > { %7321 = vst [vmem:[#allocation172_spill] sm:$0xff] %v5881_v50  ;;  %7323 = vst [vmem:[#allocation72_spill] sm:$0xff] %v5891_v55  ;;  %v7327_v50 = vld [vmem:[#allocation83_spill] sm:$0xff]  ;;  %v5906_v52 = vadd.f32 %v5666_v14, %v7329_v59  ;;  %v5908_v8 = vmul.f32 %v3117_v51, %v3117_v51  ;;  %v2909_v0 = vmul.f32 %v2893_v28, %v2893_v28 }
 0x162   : > { %7325 = vst [vmem:[#allocation73_spill] sm:$0xff] %v5895_v13  ;;  %7326 = vst [vmem:[#allocation173_spill] sm:$0xff] %v5898_v39  ;;  %v5902_v18 = vadd.f32 %v5664_v9, %v7327_v50  ;;  %v1305_v24 = vsub.f32 %v847_v17, %v5884_v34  ;;  %v1533_v62 = vsub.f32 %v847_v17, %v5887_v5  ;;  %v7332_v9 = vld [vmem:[#allocation65_spill] sm:$0xff]  ;;  %v7334_v14 = vld [vmem:[#allocation75_spill] sm:$0xff] }
 0x163   : > { %7330 = vst [vmem:[#allocation84_spill] sm:$0xff] %v5906_v52  ;;  %7331 = vst [vmem:[#allocation174_spill] sm:$0xff] %v5908_v8  ;;  %v1306_v12 = vsub.f32 %v851_v48, %v5884_v34  ;;  %v1534_v30 = vsub.f32 %v851_v48, %v5887_v5  ;;  %v5919_v50 = vadd.f32 %v5534_v11, %v7332_v9  ;;  %v7336_v51 = vld [vmem:[#allocation119_spill] sm:$0xff]  ;;  %v7338_v39 = vld [vmem:[#allocation9_spill] sm:$0xff]  ;;  %v855_v9 = vpop.permute.xlu1 %854 }
 0x164   : > { %7328 = vst [vmem:[#allocation83_spill] sm:$0xff] %v5902_v18  ;;  %v5923_v59 = vadd.f32 %v5600_v15, %v7334_v14  ;;  %v5926_v28 = vadd.f32 %v2683_v58, %v7336_v51  ;;  %v5929_v8 = vadd.f32 %v2908_v40, %v7338_v39  ;;  %v1321_v43 = vmul.f32 %v1305_v24, %v1305_v24  ;;  %v7343_v15 = vld [vmem:[#allocation11_spill] sm:$0xff]  ;;  %v863_v40 = vpop.permute.xlu0 %862  ;;  %v7344_v39 = vld [vmem:[#allocation12_spill] sm:$0xff] }
 0x165   : > { %7333 = vst [vmem:[#allocation65_spill] sm:$0xff] %v5919_v50  ;;  %v1549_v36 = vmul.f32 %v1533_v62, %v1533_v62  ;;  %v5932_v63 = vadd.f32 %v2684_v42, %v7340_v46  ;;  %v1758_v10 = vsub.f32 %v847_v17, %v5911_v19  ;;  %v1322_v22 = vmul.f32 %v1306_v12, %v1306_v12  ;;  %v7346_v62 = vld [vmem:[#allocation14_spill] sm:$0xff]  ;;  %v7347_v42 = vld [vmem:[#allocation121_spill] sm:$0xff] }
 0x166   : > { %7335 = vst [vmem:[#allocation75_spill] sm:$0xff] %v5923_v59  ;;  %7337 = vst [vmem:[#allocation119_spill] sm:$0xff] %v5926_v28  ;;  %v1550_v11 = vmul.f32 %v1534_v30, %v1534_v30  ;;  %v1337_v49 = vadd.f32 %v1321_v43, %v7342_v57  ;;  %v1307_v58 = vsub.f32 %v855_v9, %v5884_v34  ;;  %v7353_v50 = vld [vmem:[#allocation18_spill] sm:$0xff] }
 0x167   : > { %7339 = vst [vmem:[#allocation9_spill] sm:$0xff] %v5929_v8  ;;  %7341 = vst [vmem:[#allocation7_spill] sm:$0xff] %v5932_v63  ;;  %v1565_v14 = vadd.f32 %v1549_v36, %v7343_v15  ;;  %v1535_v51 = vsub.f32 %v855_v9, %v5887_v5  ;;  %v5940_v24 = vadd.f32 %v2909_v0, %v7344_v39  ;;  %v859_v7 = vpop.permute.xlu1 %858  ;;  %v7348_v0 = vld [vmem:[#allocation15_spill] sm:$0xff] }
 0x168   : > { %v1338_v46 = vadd.f32 %v1322_v22, %v7346_v62  ;;  %v1566_v63 = vadd.f32 %v1550_v11, %v7347_v42  ;;  %v1309_v17 = vsub.f32 %v863_v40, %v5884_v34  ;;  %v1759_v12 = vsub.f32 %v851_v48, %v5911_v19  ;;  %v871_v42 = vpop.permute.xlu0 %870 }
 0x169   : > { %7345 = vst [vmem:[#allocation13_spill] sm:$0xff] %v5940_v24  ;;  %v1323_v30 = vmul.f32 %v1307_v58, %v1307_v58  ;;  %v1551_v57 = vmul.f32 %v1535_v51, %v1535_v51  ;;  %v1537_v36 = vsub.f32 %v863_v40, %v5887_v5  ;;  %v1774_v43 = vmul.f32 %v1758_v10, %v1758_v10  ;;  %v7349_v24 = vld [vmem:[#allocation16_spill] sm:$0xff] }
 0x16a   : > { %v1369_v15 = vmin.f32 %v1337_v49, %v1338_v46  ;;  %v1597_v8 = vmin.f32 %v1565_v14, %v1566_v63  ;;  %v1760_v28 = vsub.f32 %v855_v9, %v5911_v19  ;;  %v1325_v62 = vmul.f32 %v1309_v17, %v1309_v17  ;;  %v7350_v51 = vld [vmem:[#allocation76_spill] sm:$0xff] }
 0x16b   : > { %v1339_v39 = vadd.f32 %v1323_v30, %v7348_v0  ;;  %v1567_v22 = vadd.f32 %v1551_v57, %v7349_v24  ;;  %v1762_v11 = vsub.f32 %v863_v40, %v5911_v19  ;;  %v1553_v2 = vmul.f32 %v1537_v36, %v1537_v36  ;;  %v7352_v57 = vld [vmem:[#allocation122_spill] sm:$0xff]  ;;  %v867_v23 = vpop.permute.xlu1 %866 }
 0x16c   : > { %v1308_v48 = vsub.f32 %v859_v7, %v5884_v34  ;;  %v1536_v58 = vsub.f32 %v859_v7, %v5887_v5  ;;  %v5955_v10 = vadd.f32 %v5632_v60, %v7350_v51  ;;  %v1775_v52 = vmul.f32 %v1759_v12, %v1759_v12  ;;  %v7355_v51 = vld [vmem:[#allocation123_spill] sm:$0xff] }
 0x16d   : > { %v1370_v9 = vmin.f32 %v1369_v15, %v1339_v39  ;;  %v1598_v18 = vmin.f32 %v1597_v8, %v1567_v22  ;;  %v1311_v30 = vsub.f32 %v871_v42, %v5884_v34  ;;  %v1776_v0 = vmul.f32 %v1760_v28, %v1760_v28  ;;  %v7356_v8 = vld [vmem:[#allocation19_spill] sm:$0xff] }
 0x16e   : > { %7351 = vst [vmem:[#allocation11_spill] sm:$0xff] %v5955_v10  ;;  %v1324_v24 = vmul.f32 %v1308_v48, %v1308_v48  ;;  %v1552_v17 = vmul.f32 %v1536_v58, %v1536_v58  ;;  %v1761_v40 = vsub.f32 %v859_v7, %v5911_v19  ;;  %v1341_v36 = vadd.f32 %v1325_v62, %v7352_v57  ;;  %v7357_v10 = vld [vmem:[#allocation21_spill] sm:$0xff]  ;;  %v7359_v57 = vld [vmem:[#allocation22_spill] sm:$0xff] }
 0x16f   : > { %v1778_v59 = vmul.f32 %v1762_v11, %v1762_v11  ;;  %v1581_v13 = vmin.f32 %v1337_v49, %v1565_v14  ;;  %v1790_v55 = vadd.f32 %v1774_v43, %v7353_v50  ;;  %v1569_v60 = vadd.f32 %v1553_v2, %v7354_v1  ;;  %v879_v11 = vpop.permute.xlu0 %878 }
 0x170   : > { %v5963_v12 = vadd.f32 %v1324_v24, %v7355_v51  ;;  %v5966_v15 = vadd.f32 %v1552_v17, %v7356_v8  ;;  %v1582_v28 = vmin.f32 %v1338_v46, %v1566_v63  ;;  %v1327_v48 = vmul.f32 %v1311_v30, %v1311_v30  ;;  %v7360_v8 = vld [vmem:[#allocation17_spill] sm:$0xff] }
 0x171   : > { %v1539_v58 = vsub.f32 %v871_v42, %v5887_v5  ;;  %v1806_v7 = vmin.f32 %v1581_v13, %v1790_v55  ;;  %v1791_v62 = vadd.f32 %v1775_v52, %v7357_v10  ;;  %v1777_v14 = vmul.f32 %v1761_v40, %v1761_v40  ;;  %v7358_v10 = vld [vmem:[#allocation124_spill] sm:$0xff] }
 0x172   : > { %v1371_v49 = vmin.f32 %v1370_v9, %v5963_v12  ;;  %v1599_v50 = vmin.f32 %v1598_v18, %v5966_v15  ;;  %v1310_v2 = vsub.f32 %v867_v23, %v5884_v34  ;;  %v1764_v1 = vsub.f32 %v871_v42, %v5911_v19 }
 0x173   : > { %3321 = vmin.xlane.f32.xlu0 %v1806_v7  ;;  %v1807_v43 = vmin.f32 %v1582_v28, %v1791_v62  ;;  %v1822_v24 = vmin.f32 %v1790_v55, %v1791_v62  ;;  %v1538_v63 = vsub.f32 %v867_v23, %v5887_v5  ;;  %v1313_v52 = vsub.f32 %v879_v11, %v5884_v34  ;;  %v875_v7 = vpop.permute.xlu1 %874  ;;  %v7361_v62 = vld [vmem:[#allocation23_spill] sm:$0xff] }
 0x174   : > { %v1326_v46 = vmul.f32 %v1310_v2, %v1310_v2  ;;  %v1372_v30 = vmin.f32 %v1371_v49, %v1341_v36  ;;  %v1600_v13 = vmin.f32 %v1599_v50, %v1569_v60  ;;  %v1343_v17 = vadd.f32 %v1327_v48, %v7358_v10  ;;  %v887_v2 = vpop.permute.xlu0 %886 }
 0x175   : > { %v1555_v9 = vmul.f32 %v1539_v58, %v1539_v58  ;;  %3323 = vmin.xlane.f32.xlu1 %v1807_v43  ;;  %v1554_v18 = vmul.f32 %v1538_v63, %v1538_v63  ;;  %v1541_v40 = vsub.f32 %v879_v11, %v5887_v5  ;;  %v1763_v42 = vsub.f32 %v867_v23, %v5911_v19 }
 0x176   : > { %v5979_v51 = vadd.f32 %v1326_v46, %v7359_v57  ;;  %v1583_v55 = vmin.f32 %v1339_v39, %v1567_v22  ;;  %v1792_v28 = vadd.f32 %v1776_v0, %v7360_v8  ;;  %v1329_v50 = vmul.f32 %v1313_v52, %v1313_v52  ;;  %v7362_v57 = vld [vmem:[#allocation125_spill] sm:$0xff]  ;;  %v7363_v39 = vld [vmem:[#allocation26_spill] sm:$0xff] }
 0x177   : > { %v5984_v49 = vadd.f32 %v1554_v18, %v7361_v62  ;;  %v1766_v48 = vsub.f32 %v879_v11, %v5911_v19  ;;  %v1585_v58 = vmin.f32 %v1341_v36, %v1569_v60  ;;  %v1557_v63 = vmul.f32 %v1541_v40, %v1541_v40 }
 0x178   : > { %v1373_v43 = vmin.f32 %v1372_v30, %v5979_v51  ;;  %v1808_v10 = vmin.f32 %v1583_v55, %v1792_v28  ;;  %v1823_v46 = vmin.f32 %v1822_v24, %v1792_v28  ;;  %v1571_v61 = vadd.f32 %v1555_v9, %v7362_v57  ;;  %v7364_v24 = vld [vmem:[#allocation126_spill] sm:$0xff]  ;;  %v7365_v9 = vld [vmem:[#allocation127_spill] sm:$0xff] }
 0x179   : > { %v1601_v23 = vmin.f32 %v1600_v13, %v5984_v49  ;;  %v1794_v22 = vadd.f32 %v1778_v59, %v7363_v39  ;;  %v1312_v0 = vsub.f32 %v875_v7, %v5884_v34  ;;  %v1780_v18 = vmul.f32 %v1764_v1, %v1764_v1  ;;  %v7366_v59 = vld [vmem:[#allocation128_spill] sm:$0xff]  ;;  %v7368_v39 = vld [vmem:[#allocation27_spill] sm:$0xff] }
 0x17a   : > { %3325 = vmin.xlane.f32.xlu0 %v1808_v10  ;;  %v1374_v52 = vmin.f32 %v1373_v43, %v1343_v17  ;;  %v1540_v11 = vsub.f32 %v875_v7, %v5887_v5  ;;  %v1315_v36 = vsub.f32 %v887_v2, %v5884_v34  ;;  %v1779_v60 = vmul.f32 %v1763_v42, %v1763_v42  ;;  %v7367_v10 = vld [vmem:[#allocation20_spill] sm:$0xff] }
 0x17b   : > { %v1810_v30 = vmin.f32 %v1585_v58, %v1794_v22  ;;  %v1328_v40 = vmul.f32 %v1312_v0, %v1312_v0  ;;  %v1602_v55 = vmin.f32 %v1601_v23, %v1571_v61  ;;  %v1345_v8 = vadd.f32 %v1329_v50, %v7364_v24  ;;  %v883_v58 = vpop.permute.xlu1 %882  ;;  %v895_v0 = vpop.permute.xlu0 %894 }
 0x17c   : > { %v1573_v28 = vadd.f32 %v1557_v63, %v7365_v9  ;;  %v1782_v13 = vmul.f32 %v1766_v48, %v1766_v48  ;;  %v1556_v62 = vmul.f32 %v1540_v11, %v1540_v11  ;;  %v1543_v1 = vsub.f32 %v887_v2, %v5887_v5 }
 0x17d   : > { %3329 = vmin.xlane.f32.xlu1 %v1810_v30  ;;  %v5997_v57 = vadd.f32 %v1328_v40, %v7366_v59  ;;  %v1584_v43 = vmin.f32 %v5963_v12, %v5966_v15  ;;  %v1793_v42 = vadd.f32 %v1777_v14, %v7367_v10  ;;  %v1765_v50 = vsub.f32 %v875_v7, %v5911_v19  ;;  %v7369_v12 = vld [vmem:[#allocation29_spill] sm:$0xff] }
 0x17e   : > { %v6004_v23 = vadd.f32 %v1556_v62, %v7368_v39  ;;  %v1331_v63 = vmul.f32 %v1315_v36, %v1315_v36  ;;  %v1587_v48 = vmin.f32 %v1343_v17, %v1571_v61  ;;  %v1768_v30 = vsub.f32 %v887_v2, %v5911_v19  ;;  %v7370_v10 = vld [vmem:[#allocation129_spill] sm:$0xff]  ;;  %v7371_v39 = vld [vmem:[#allocation30_spill] sm:$0xff] }
 0x17f   : > { %v1375_v11 = vmin.f32 %v1374_v52, %v5997_v57  ;;  %v1809_v40 = vmin.f32 %v1584_v43, %v1793_v42  ;;  %v1824_v24 = vmin.f32 %v1823_v46, %v1793_v42  ;;  %v1796_v15 = vadd.f32 %v1780_v18, %v7369_v12 }
 0x180   : > { %v1603_v9 = vmin.f32 %v1602_v55, %v6004_v23  ;;  %v1314_v14 = vsub.f32 %v883_v58, %v5884_v34  ;;  %v1542_v62 = vsub.f32 %v883_v58, %v5887_v5  ;;  %v1559_v59 = vmul.f32 %v1543_v1, %v1543_v1  ;;  %v7372_v1 = vld [vmem:[#allocation31_spill] sm:$0xff] }
 0x181   : > { %3327 = vmin.xlane.f32.xlu0 %v1809_v40  ;;  %v1376_v7 = vmin.f32 %v1375_v11, %v1345_v8  ;;  %v1317_v61 = vsub.f32 %v895_v0, %v5884_v34  ;;  %v1545_v17 = vsub.f32 %v895_v0, %v5887_v5  ;;  %v1812_v52 = vmin.f32 %v1587_v48, %v1796_v15  ;;  %v7373_v48 = vld [vmem:[#allocation24_spill] sm:$0xff] }
 0x182   : > { %v1330_v36 = vmul.f32 %v1314_v14, %v1314_v14  ;;  %v1558_v2 = vmul.f32 %v1542_v62, %v1542_v62  ;;  %v1604_v43 = vmin.f32 %v1603_v9, %v1573_v28  ;;  %v1781_v46 = vmul.f32 %v1765_v50, %v1765_v50  ;;  %v891_v62 = vpop.permute.xlu1 %890  ;;  %v7374_v9 = vld [vmem:[#allocation37_spill] sm:$0xff] }
 0x183   : > { %v1347_v55 = vadd.f32 %v1331_v63, %v7370_v10  ;;  %v1784_v42 = vmul.f32 %v1768_v30, %v1768_v30  ;;  %v1767_v18 = vsub.f32 %v883_v58, %v5911_v19  ;;  %3333 = vmin.xlane.f32.xlu1 %v1812_v52  ;;  %v1586_v40 = vmin.f32 %v5979_v51, %v5984_v49  ;;  %v903_v10 = vpop.permute.xlu0 %902 }
 0x184   : > { %v6018_v12 = vadd.f32 %v1330_v36, %v7371_v39  ;;  %v6021_v11 = vadd.f32 %v1558_v2, %v7372_v1  ;;  %v1795_v14 = vadd.f32 %v1779_v60, %v7373_v48  ;;  %v1575_v50 = vadd.f32 %v1559_v59, %v7374_v9  ;;  %v7375_v1 = vld [vmem:[#allocation33_spill] sm:$0xff] }
 0x185   : > { %v1333_v37 = vmul.f32 %v1317_v61, %v1317_v61  ;;  %v1561_v63 = vmul.f32 %v1545_v17, %v1545_v17  ;;  %v1825_v30 = vmin.f32 %v1824_v24, %v1794_v22  ;;  %v1589_v39 = vmin.f32 %v1345_v8, %v1573_v28  ;;  %v7377_v28 = vld [vmem:[#allocation131_spill] sm:$0xff] }
 0x186   : > { %v1377_v58 = vmin.f32 %v1376_v7, %v6018_v12  ;;  %v1605_v52 = vmin.f32 %v1604_v43, %v6021_v11  ;;  %v1811_v36 = vmin.f32 %v1586_v40, %v1795_v14  ;;  %v1798_v35 = vadd.f32 %v1782_v13, %v7375_v1  ;;  %v7376_v40 = vld [vmem:[#allocation130_spill] sm:$0xff]  ;;  %v899_v1 = vpop.permute.xlu1 %898 }
 0x187   : > { %v1826_v2 = vmin.f32 %v1825_v30, %v1795_v14  ;;  %v1316_v51 = vsub.f32 %v891_v62, %v5884_v34  ;;  %v1544_v49 = vsub.f32 %v891_v62, %v5887_v5  ;;  %v1783_v60 = vmul.f32 %v1767_v18, %v1767_v18  ;;  %v7378_v18 = vld [vmem:[#allocation34_spill] sm:$0xff]  ;;  %v7379_v30 = vld [vmem:[#allocation35_spill] sm:$0xff] }
 0x188   : > { %3331 = vmin.xlane.f32.xlu0 %v1811_v36  ;;  %v1378_v59 = vmin.f32 %v1377_v58, %v1347_v55  ;;  %v1606_v61 = vmin.f32 %v1605_v52, %v1575_v50  ;;  %v1319_v22 = vsub.f32 %v903_v10, %v5884_v34  ;;  %v1814_v24 = vmin.f32 %v1589_v39, %v1798_v35  ;;  %v7380_v36 = vld [vmem:[#allocation28_spill] sm:$0xff] }
 0x189   : > { %v1332_v17 = vmul.f32 %v1316_v51, %v1316_v51  ;;  %v1560_v7 = vmul.f32 %v1544_v49, %v1544_v49  ;;  %v1547_v43 = vsub.f32 %v903_v10, %v5887_v5  ;;  %v1349_v8 = vadd.f32 %v1333_v37, %v7376_v40 }
 0x18a   : > { %v1577_v48 = vadd.f32 %v1561_v63, %v7377_v28  ;;  %v1770_v13 = vsub.f32 %v895_v0, %v5911_v19  ;;  %v1588_v14 = vmin.f32 %v5997_v57, %v6004_v23  ;;  %3337 = vmin.xlane.f32.xlu1 %v1814_v24  ;;  %v1769_v52 = vsub.f32 %v891_v62, %v5911_v19 }
 0x18b   : > { %v6040_v9 = vadd.f32 %v1332_v17, %v7378_v18  ;;  %v6043_v58 = vadd.f32 %v1560_v7, %v7379_v30  ;;  %v1797_v39 = vadd.f32 %v1781_v46, %v7380_v36  ;;  %v1335_v37 = vmul.f32 %v1319_v22, %v1319_v22  ;;  %v911_v17 = vpop.permute.xlu0 %910  ;;  %v7381_v7 = vld [vmem:[#allocation38_spill] sm:$0xff] }
 0x18c   : > { %v1772_v63 = vsub.f32 %v903_v10, %v5911_v19  ;;  %v1827_v51 = vmin.f32 %v1826_v2, %v1796_v15  ;;  %v1591_v0 = vmin.f32 %v1347_v55, %v1575_v50  ;;  %v1563_v23 = vmul.f32 %v1547_v43, %v1547_v43  ;;  %v7382_v15 = vld [vmem:[#allocation77_spill] sm:$0xff] }
 0x18d   : > { %v1379_v49 = vmin.f32 %v1378_v59, %v6040_v9  ;;  %v1607_v57 = vmin.f32 %v1606_v61, %v6043_v58  ;;  %v1813_v24 = vmin.f32 %v1588_v14, %v1797_v39  ;;  %v1800_v28 = vadd.f32 %v1784_v42, %v7381_v7  ;;  %v7383_v14 = vld [vmem:[#allocation132_spill] sm:$0xff]  ;;  %v907_v7 = vpop.permute.xlu1 %906 }
 0x18e   : > { %v1828_v40 = vmin.f32 %v1827_v51, %v1797_v39  ;;  %v1318_v62 = vsub.f32 %v899_v1, %v5884_v34  ;;  %v1546_v46 = vsub.f32 %v899_v1, %v5887_v5  ;;  %v1786_v18 = vmul.f32 %v1770_v13, %v1770_v13  ;;  %v7384_v13 = vld [vmem:[#allocation133_spill] sm:$0xff]  ;;  %v7385_v51 = vld [vmem:[#allocation39_spill] sm:$0xff] }
 0x18f   : > { %3335 = vmin.xlane.f32.xlu0 %v1813_v24  ;;  %v1380_v22 = vmin.f32 %v1379_v49, %v1349_v8  ;;  %v1608_v10 = vmin.f32 %v1607_v57, %v1577_v48  ;;  %v6055_v55 = vadd.f32 %v5634_v16, %v7382_v15  ;;  %v1816_v50 = vmin.f32 %v1591_v0, %v1800_v28  ;;  %v7386_v16 = vld [vmem:[#allocation40_spill] sm:$0xff] }
 0x190   : > { %v1334_v2 = vmul.f32 %v1318_v62, %v1318_v62  ;;  %v1562_v59 = vmul.f32 %v1546_v46, %v1546_v46  ;;  %v2015_v61 = vsub.f32 %v911_v17, %v5884_v34  ;;  %v1785_v43 = vmul.f32 %v1769_v52, %v1769_v52  ;;  %v7387_v0 = vld [vmem:[#allocation32_spill] sm:$0xff]  ;;  %v919_v46 = vpop.permute.xlu0 %918 }
 0x191   : > { %v1351_v42 = vadd.f32 %v1335_v37, %v7383_v14  ;;  %v1788_v30 = vmul.f32 %v1772_v63, %v1772_v63  ;;  %v1590_v36 = vmin.f32 %v6018_v12, %v6021_v11  ;;  %v1579_v39 = vadd.f32 %v1563_v23, %v7384_v13  ;;  %3341 = vmin.xlane.f32.xlu1 %v1816_v50 }
 0x192   : > { %v6063_v49 = vadd.f32 %v1334_v2, %v7385_v51  ;;  %v6066_v57 = vadd.f32 %v1562_v59, %v7386_v16  ;;  %v1799_v24 = vadd.f32 %v1783_v60, %v7387_v0  ;;  %v1771_v52 = vsub.f32 %v899_v1, %v5911_v19  ;;  %v7388_v2 = vld [vmem:[#allocation42_spill] sm:$0xff] }
 0x193   : > { %v2240_v37 = vsub.f32 %v911_v17, %v5887_v5  ;;  %v1829_v63 = vmin.f32 %v1828_v40, %v1798_v35  ;;  %v1593_v62 = vmin.f32 %v1349_v8, %v1577_v48  ;;  %v2031_v23 = vmul.f32 %v2015_v61, %v2015_v61 }
 0x194   : > { %v1381_v12 = vmin.f32 %v1380_v22, %v6063_v49  ;;  %v1609_v11 = vmin.f32 %v1608_v10, %v6066_v57  ;;  %v1815_v15 = vmin.f32 %v1590_v36, %v1799_v24  ;;  %v1802_v59 = vadd.f32 %v1786_v18, %v7388_v2  ;;  %v7389_v18 = vld [vmem:[#allocation134_spill] sm:$0xff] }
 0x195   : > { %v1830_v50 = vmin.f32 %v1829_v63, %v1799_v24  ;;  %v1320_v14 = vsub.f32 %v907_v7, %v5884_v34  ;;  %v1548_v60 = vsub.f32 %v907_v7, %v5887_v5  ;;  %v2465_v1 = vsub.f32 %v911_v17, %v5911_v19  ;;  %v7390_v17 = vld [vmem:[#allocation43_spill] sm:$0xff]  ;;  %v7391_v24 = vld [vmem:[#allocation44_spill] sm:$0xff] }
 0x196   : > { %3339 = vmin.xlane.f32.xlu0 %v1815_v15  ;;  %v6077_v13 = vmin.f32 %v1381_v12, %v1351_v42  ;;  %v6079_v35 = vmin.f32 %v1609_v11, %v1579_v39  ;;  %v2017_v8 = vsub.f32 %v919_v46, %v5884_v34  ;;  %v1818_v48 = vmin.f32 %v1593_v62, %v1802_v59  ;;  %v7392_v12 = vld [vmem:[#allocation36_spill] sm:$0xff]  ;;  %v915_v15 = vpop.permute.xlu1 %914 }
 0x197   : > { %v1336_v40 = vmul.f32 %v1320_v14, %v1320_v14  ;;  %v1564_v22 = vmul.f32 %v1548_v60, %v1548_v60  ;;  %v2242_v10 = vsub.f32 %v919_v46, %v5887_v5  ;;  %v1787_v61 = vmul.f32 %v1771_v52, %v1771_v52 }
 0x198   : > { %v2047_v36 = vadd.f32 %v2031_v23, %v7389_v18  ;;  %v2256_v51 = vmul.f32 %v2240_v37, %v2240_v37  ;;  %v1592_v16 = vmin.f32 %v6040_v9, %v6043_v58  ;;  %3345 = vmin.xlane.f32.xlu1 %v1818_v48  ;;  %v1773_v62 = vsub.f32 %v907_v7, %v5911_v19  ;;  %v927_v37 = vpop.permute.xlu0 %926  ;;  %v7405_v58 = vld [vmem:[#allocation51_spill] sm:$0xff]  ;;  %v7407_v9 = vld [vmem:[#allocation144_spill] sm:$0xff] }
 0x199   : > { %v6087_v0 = vadd.f32 %v1336_v40, %v7390_v17  ;;  %v6090_v63 = vadd.f32 %v1564_v22, %v7391_v24  ;;  %v1801_v11 = vadd.f32 %v1785_v43, %v7392_v12  ;;  %v2481_v2 = vmul.f32 %v2465_v1, %v2465_v1  ;;  %v7393_v22 = vld [vmem:[#allocation46_spill] sm:$0xff]  ;;  %v7394_v1 = vld [vmem:[#allocation135_spill] sm:$0xff] }
 0x19a   : > { %v2033_v52 = vmul.f32 %v2017_v8, %v2017_v8  ;;  %v1831_v14 = vmin.f32 %v1830_v50, %v1800_v28  ;;  %v1595_v23 = vmin.f32 %v1351_v42, %v1579_v39  ;;  %v2258_v60 = vmul.f32 %v2242_v10, %v2242_v10  ;;  %v7396_v12 = vld [vmem:[#allocation138_spill] sm:$0xff] }
 0x19b   : > { %v1817_v48 = vmin.f32 %v1592_v16, %v1801_v11  ;;  %v1804_v18 = vadd.f32 %v1788_v30, %v7393_v22  ;;  %v2016_v7 = vsub.f32 %v915_v15, %v5884_v34  ;;  %v2241_v43 = vsub.f32 %v915_v15, %v5887_v5  ;;  %v7395_v16 = vld [vmem:[#allocation137_spill] sm:$0xff]  ;;  %v7398_v22 = vld [vmem:[#allocation47_spill] sm:$0xff] }
 0x19c   : > { %v1832_v40 = vmin.f32 %v1831_v14, %v1801_v11  ;;  %v2272_v8 = vadd.f32 %v2256_v51, %v7394_v1  ;;  %v1789_v28 = vmul.f32 %v1773_v62, %v1773_v62  ;;  %v2019_v42 = vsub.f32 %v927_v37, %v5884_v34  ;;  %v7397_v62 = vld [vmem:[#allocation140_spill] sm:$0xff] }
 0x19d   : > { %3343 = vmin.xlane.f32.xlu0 %v1817_v48  ;;  %v2244_v39 = vsub.f32 %v927_v37, %v5887_v5  ;;  %v1820_v50 = vmin.f32 %v1595_v23, %v1804_v18  ;;  %v2032_v17 = vmul.f32 %v2016_v7, %v2016_v7  ;;  %v2257_v24 = vmul.f32 %v2241_v43, %v2241_v43  ;;  %v923_v43 = vpop.permute.xlu1 %922 }
 0x19e   : > { %v1594_v10 = vmin.f32 %v6063_v49, %v6066_v57  ;;  %v2049_v30 = vadd.f32 %v2033_v52, %v7395_v16  ;;  %v2274_v11 = vadd.f32 %v2258_v60, %v7396_v12  ;;  %v2467_v14 = vsub.f32 %v919_v46, %v5911_v19  ;;  %v7399_v16 = vld [vmem:[#allocation41_spill] sm:$0xff]  ;;  %v935_v46 = vpop.permute.xlu0 %934 }
 0x19f   : > { %v2466_v51 = vsub.f32 %v915_v15, %v5911_v19  ;;  %3349 = vmin.xlane.f32.xlu1 %v1820_v50  ;;  %v6111_v48 = vadd.f32 %v2032_v17, %v7397_v62  ;;  %v6114_v1 = vadd.f32 %v2257_v24, %v7398_v22  ;;  %v1803_v23 = vadd.f32 %v1787_v61, %v5612_v38 }
 0x1a0   : > { %v1833_v7 = vmin.f32 %v1832_v40, %v1802_v59  ;;  %v2035_v49 = vmul.f32 %v2019_v42, %v2019_v42  ;;  %v2260_v57 = vmul.f32 %v2244_v39, %v2244_v39  ;;  %v2288_v52 = vmin.f32 %v2047_v36, %v2272_v8 }
 0x1a1   : > { %v6118_v60 = vadd.f32 %v2481_v2, %v7399_v16  ;;  %v2079_v15 = vmin.f32 %v2047_v36, %v6111_v48  ;;  %v2304_v50 = vmin.f32 %v2272_v8, %v6114_v1  ;;  %v1819_v17 = vmin.f32 %v1594_v10, %v1803_v23  ;;  %v7402_v16 = vld [vmem:[#allocation45_spill] sm:$0xff] }
 0x1a2   : > { %v1834_v12 = vmin.f32 %v1833_v7, %v1803_v23  ;;  %v2483_v62 = vmul.f32 %v2467_v14, %v2467_v14  ;;  %v2018_v38 = vsub.f32 %v923_v43, %v5884_v34  ;;  %v2243_v59 = vsub.f32 %v923_v43, %v5887_v5  ;;  %v7400_v14 = vld [vmem:[#allocation141_spill] sm:$0xff] }
 0x1a3   : > { %v2513_v24 = vmin.f32 %v2288_v52, %v6118_v60  ;;  %3347 = vmin.xlane.f32.xlu0 %v1819_v17  ;;  %v2080_v61 = vmin.f32 %v2079_v15, %v2049_v30  ;;  %v2305_v40 = vmin.f32 %v2304_v50, %v2274_v11  ;;  %v2021_v2 = vsub.f32 %v935_v46, %v5884_v34  ;;  %v7401_v23 = vld [vmem:[#allocation57_spill] sm:$0xff] }
 0x1a4   : > { %v2246_v42 = vsub.f32 %v935_v46, %v5887_v5  ;;  %v2482_v39 = vmul.f32 %v2466_v51, %v2466_v51  ;;  %v2469_v36 = vsub.f32 %v927_v37, %v5911_v19  ;;  %v2034_v8 = vmul.f32 %v2018_v38, %v2018_v38  ;;  %v7404_v50 = vld [vmem:[#allocation49_spill] sm:$0xff]  ;;  %v931_v38 = vpop.permute.xlu1 %930 }
 0x1a5   : > { %3353 = vmin.xlane.f32.xlu1 %v2513_v24  ;;  %v2259_v10 = vmul.f32 %v2243_v59, %v2243_v59  ;;  %v2051_v22 = vadd.f32 %v2035_v49, %v7400_v14  ;;  %v2276_v7 = vadd.f32 %v2260_v57, %v7401_v23  ;;  %v1596_v52 = vmin.f32 %v6087_v0, %v6090_v63  ;;  %v943_v49 = vpop.permute.xlu0 %942 }
 0x1a6   : > { %v6133_v15 = vadd.f32 %v1789_v28, %v7402_v16  ;;  %v6136_v17 = vadd.f32 %v2034_v8, %v7404_v50  ;;  %v2468_v37 = vsub.f32 %v923_v43, %v5911_v19  ;;  %v6142_v24 = vmin.f32 %v1834_v12, %v1804_v18 }
 0x1a7   : > { %v6139_v51 = vadd.f32 %v2259_v10, %v7405_v58  ;;  %v2037_v59 = vmul.f32 %v2021_v2, %v2021_v2  ;;  %v2262_v57 = vmul.f32 %v2246_v42, %v2246_v42  ;;  %v2290_v23 = vmin.f32 %v2049_v30, %v2274_v11  ;;  %v7406_v58 = vld [vmem:[#allocation53_spill] sm:$0xff] }
 0x1a8   : > { %7403 = vst [vmem:[#allocation12_spill] sm:$0xff] %v6133_v15  ;;  %v1821_v14 = vmin.f32 %v1596_v52, %v6133_v15  ;;  %v2081_v28 = vmin.f32 %v2080_v61, %v6136_v17  ;;  %v2499_v10 = vadd.f32 %v2483_v62, %v7406_v58  ;;  %v2485_v50 = vmul.f32 %v2469_v36, %v2469_v36  ;;  %v7408_v36 = vld [vmem:[#allocation145_spill] sm:$0xff] }
 0x1a9   : > { %v2306_v16 = vmin.f32 %v2305_v40, %v6139_v51  ;;  %v2020_v18 = vsub.f32 %v931_v38, %v5884_v34  ;;  %v2245_v43 = vsub.f32 %v931_v38, %v5887_v5  ;;  %v2023_v12 = vsub.f32 %v943_v49, %v5884_v34 }
 0x1aa   : > { %3351 = vmin.xlane.f32.xlu0 %v1821_v14  ;;  %v2515_v2 = vmin.f32 %v2290_v23, %v2499_v10  ;;  %v2082_v42 = vmin.f32 %v2081_v28, %v2051_v22  ;;  %v2248_v11 = vsub.f32 %v943_v49, %v5887_v5  ;;  %v2484_v61 = vmul.f32 %v2468_v37, %v2468_v37  ;;  %v939_v23 = vpop.permute.xlu1 %938 }
 0x1ab   : > { %v2307_v30 = vmin.f32 %v2306_v16, %v2276_v7  ;;  %v2471_v40 = vsub.f32 %v935_v46, %v5911_v19  ;;  %v2036_v52 = vmul.f32 %v2020_v18, %v2020_v18  ;;  %v2261_v8 = vmul.f32 %v2245_v43, %v2245_v43  ;;  %v951_v18 = vpop.permute.xlu0 %950 }
 0x1ac   : > { %v2053_v62 = vadd.f32 %v2037_v59, %v7407_v9  ;;  %v2278_v14 = vadd.f32 %v2262_v57, %v7408_v36  ;;  %3357 = vmin.xlane.f32.xlu1 %v2515_v2  ;;  %v2289_v58 = vmin.f32 %v6111_v48, %v6114_v1  ;;  %v2498_v15 = vadd.f32 %v2482_v39, %v5716_v31 }
 0x1ad   : > { %v6161_v28 = vadd.f32 %v2036_v52, %v5682_v21  ;;  %v6164_v37 = vadd.f32 %v2261_v8, %v5686_v32  ;;  %v2470_v46 = vsub.f32 %v931_v38, %v5911_v19  ;;  %v2292_v16 = vmin.f32 %v2051_v22, %v2276_v7 }
 0x1ae   : > { %v2039_v9 = vmul.f32 %v2023_v12, %v2023_v12  ;;  %v2264_v59 = vmul.f32 %v2248_v11, %v2248_v11  ;;  %v2514_v57 = vmin.f32 %v2289_v58, %v2498_v15  ;;  %v2529_v43 = vmin.f32 %v6118_v60, %v2498_v15  ;;  %v947_v52 = vpop.permute.xlu1 %946 }
 0x1af   : > { %v2083_v48 = vmin.f32 %v2082_v42, %v6161_v28  ;;  %v2308_v31 = vmin.f32 %v2307_v30, %v6164_v37  ;;  %v2501_v1 = vadd.f32 %v2485_v50, %v5720_v44  ;;  %v2022_v21 = vsub.f32 %v939_v23, %v5884_v34 }
 0x1b0   : > { %v2487_v39 = vmul.f32 %v2471_v40, %v2471_v40  ;;  %3355 = vmin.xlane.f32.xlu0 %v2514_v57  ;;  %v2247_v32 = vsub.f32 %v939_v23, %v5887_v5  ;;  %v2025_v22 = vsub.f32 %v951_v18, %v5884_v34  ;;  %v2250_v7 = vsub.f32 %v951_v18, %v5887_v5 }
 0x1b1   : > { %v2517_v38 = vmin.f32 %v2292_v16, %v2501_v1  ;;  %v2038_v8 = vmul.f32 %v2022_v21, %v2022_v21  ;;  %v2084_v12 = vmin.f32 %v2083_v48, %v2053_v62  ;;  %v2309_v60 = vmin.f32 %v2308_v31, %v2278_v14 }
 0x1b2   : > { %v2486_v15 = vmul.f32 %v2470_v46, %v2470_v46  ;;  %v2055_v2 = vadd.f32 %v2039_v9, %v5690_v6  ;;  %v2473_v42 = vsub.f32 %v943_v49, %v5911_v19  ;;  %v2263_v44 = vmul.f32 %v2247_v32, %v2247_v32  ;;  %v959_v46 = vpop.permute.xlu0 %958 }
 0x1b3   : > { %v2280_v50 = vadd.f32 %v2264_v59, %v5700_v3  ;;  %3361 = vmin.xlane.f32.xlu1 %v2517_v38  ;;  %v6179_v30 = vadd.f32 %v2038_v8, %v5724_v56  ;;  %v2291_v11 = vmin.f32 %v6136_v17, %v6139_v51  ;;  %v2500_v40 = vadd.f32 %v2484_v61, %v5758_v20  ;;  %v955_v38 = vpop.permute.xlu1 %954 }
 0x1b4   : > { %v6185_v36 = vadd.f32 %v2263_v44, %v5731_v26  ;;  %v2472_v6 = vsub.f32 %v939_v23, %v5911_v19  ;;  %v2041_v58 = vmul.f32 %v2025_v22, %v2025_v22  ;;  %v2530_v49 = vmin.f32 %v2529_v43, %v2499_v10 }
 0x1b5   : > { %v2085_v3 = vmin.f32 %v2084_v12, %v6179_v30  ;;  %v2266_v16 = vmul.f32 %v2250_v7, %v2250_v7  ;;  %v2516_v9 = vmin.f32 %v2291_v11, %v2500_v40  ;;  %v2294_v56 = vmin.f32 %v2053_v62, %v2278_v14 }
 0x1b6   : > { %v2310_v59 = vmin.f32 %v2309_v60, %v6185_v36  ;;  %v2531_v57 = vmin.f32 %v2530_v49, %v2500_v40  ;;  %v2503_v17 = vadd.f32 %v2487_v39, %v5768_v25  ;;  %v2024_v20 = vsub.f32 %v947_v52, %v5884_v34  ;;  %v967_v12 = vpop.permute.xlu0 %966 }
 0x1b7   : > { %v2489_v51 = vmul.f32 %v2473_v42, %v2473_v42  ;;  %3359 = vmin.xlane.f32.xlu0 %v2516_v9  ;;  %v2086_v26 = vmin.f32 %v2085_v3, %v2055_v2  ;;  %v2249_v61 = vsub.f32 %v947_v52, %v5887_v5  ;;  %v2027_v10 = vsub.f32 %v959_v46, %v5884_v34 }
 0x1b8   : > { %v2488_v23 = vmul.f32 %v2472_v6, %v2472_v6  ;;  %v2519_v43 = vmin.f32 %v2294_v56, %v2503_v17  ;;  %v2040_v48 = vmul.f32 %v2024_v20, %v2024_v20  ;;  %v2311_v31 = vmin.f32 %v2310_v59, %v2280_v50  ;;  %v963_v59 = vpop.permute.xlu1 %962 }
 0x1b9   : > { %v6195_v62 = vadd.f32 %v2041_v58, %v5750_v41  ;;  %v2282_v14 = vadd.f32 %v2266_v16, %v5754_v33  ;;  %v2475_v25 = vsub.f32 %v951_v18, %v5911_v19  ;;  %v2265_v21 = vmul.f32 %v2249_v61, %v2249_v61 }
 0x1ba   : > { %3365 = vmin.xlane.f32.xlu1 %v2519_v43  ;;  %v6200_v39 = vadd.f32 %v2040_v48, %v5784_v27  ;;  %v2252_v32 = vsub.f32 %v959_v46, %v5887_v5  ;;  %v2293_v22 = vmin.f32 %v6161_v28, %v6164_v37  ;;  %v2502_v7 = vadd.f32 %v2486_v15, %v5818_v54  ;;  %v975_v43 = vpop.permute.xlu0 %974 }
 0x1bb   : > { %v6207_v41 = vadd.f32 %v2265_v21, %v5788_v29  ;;  %v2474_v33 = vsub.f32 %v947_v52, %v5911_v19  ;;  %v2043_v8 = vmul.f32 %v2027_v10, %v2027_v10  ;;  %v2532_v18 = vmin.f32 %v2531_v57, %v2501_v1  ;;  %v7409_v57 = vld [vmem:[#allocation63_spill] sm:$0xff]  ;;  %v6233_v10 = vld [vmem:[%s4533_s23 + $0x2] ss:$0 sm:$0xff] }
 0x1bc   : > { %v2087_v60 = vmin.f32 %v2086_v26, %v6200_v39  ;;  %v2477_v27 = vsub.f32 %v959_v46, %v5911_v19  ;;  %v2518_v42 = vmin.f32 %v2293_v22, %v2502_v7  ;;  %v2296_v44 = vmin.f32 %v2055_v2, %v2280_v50 }
 0x1bd   : > { %v2312_v11 = vmin.f32 %v2311_v31, %v6207_v41  ;;  %v2533_v28 = vmin.f32 %v2532_v18, %v2502_v7  ;;  %v2505_v54 = vadd.f32 %v2489_v51, %v5822_v4  ;;  %v2026_v37 = vsub.f32 %v955_v38, %v5884_v34  ;;  %v7410_v51 = vld [vmem:[#allocation69_spill] sm:$0xff]  ;;  %v6248_v18 = vld [vmem:[%s4533_s23 + $0xa] ss:$0 sm:$0xff] }
 0x1be   : > { %v2268_v29 = vmul.f32 %v2252_v32, %v2252_v32  ;;  %3363 = vmin.xlane.f32.xlu0 %v2518_v42  ;;  %v2088_v15 = vmin.f32 %v2087_v60, %v6195_v62  ;;  %v2251_v1 = vsub.f32 %v955_v38, %v5887_v5  ;;  %v2029_v40 = vsub.f32 %v967_v12, %v5884_v34 }
 0x1bf   : > { %v2521_v52 = vmin.f32 %v2296_v44, %v2505_v54  ;;  %v2042_v6 = vmul.f32 %v2026_v37, %v2026_v37  ;;  %v2313_v58 = vmin.f32 %v2312_v11, %v2282_v14  ;;  %v2254_v2 = vsub.f32 %v967_v12, %v5887_v5  ;;  %v7413_v44 = vld [vmem:[#allocation168_spill] sm:$0xff] }
 0x1c0   : > { %v2491_v50 = vmul.f32 %v2475_v25, %v2475_v25  ;;  %v2490_v49 = vmul.f32 %v2474_v33, %v2474_v33  ;;  %v6220_v4 = vadd.f32 %v2043_v8, %v5792_v47  ;;  %v2267_v46 = vmul.f32 %v2251_v1, %v2251_v1  ;;  %v7411_v25 = vld [vmem:[#allocation61_spill] sm:$0xff]  ;;  %v7414_v37 = vld [vmem:[#allocation72_spill] sm:$0xff] }
 0x1c1   : > { %v2493_v3 = vmul.f32 %v2477_v27, %v2477_v27  ;;  %3369 = vmin.xlane.f32.xlu1 %v2521_v52  ;;  %v6223_v16 = vadd.f32 %v2042_v6, %v5826_v45  ;;  %v2295_v9 = vmin.f32 %v6179_v30, %v6185_v36  ;;  %v2504_v56 = vadd.f32 %v2488_v23, %v5860_v53  ;;  %v6238_v36 = vld [vmem:[%s4533_s23 + $0x6] ss:$0 sm:$0xff]  ;;  %v7412_v27 = vld [vmem:[#allocation167_spill] sm:$0xff]  ;;  %v971_v6 = vpop.permute.xlu1 %970 }
 0x1c2   : > { %v2284_v20 = vadd.f32 %v2268_v29, %v7409_v57  ;;  %v6230_v26 = vadd.f32 %v2267_v46, %v7410_v51  ;;  %v2045_v47 = vmul.f32 %v2029_v40, %v2029_v40  ;;  %v2534_v61 = vmin.f32 %v2533_v28, %v2503_v17  ;;  %v7415_v40 = vld [vmem:[#allocation65_spill] sm:$0xff] }
 0x1c3   : > { %v2089_v48 = vmin.f32 %v2088_v15, %v6223_v16  ;;  %v2270_v45 = vmul.f32 %v2254_v2, %v2254_v2  ;;  %v2520_v31 = vmin.f32 %v2295_v9, %v2504_v56  ;;  %v2298_v30 = vmin.f32 %v6195_v62, %v2282_v14 }
 0x1c4   : > { %v2314_v53 = vmin.f32 %v2313_v58, %v6230_v26  ;;  %v2535_v23 = vmin.f32 %v2534_v61, %v2504_v56  ;;  %v2507_v21 = vadd.f32 %v2491_v50, %v7411_v25  ;;  %v2028_v32 = vsub.f32 %v963_v59, %v5884_v34  ;;  %v7416_v58 = vld [vmem:[#allocation73_spill] sm:$0xff]  ;;  %v983_v61 = vpop.permute.xlu0 %982 }
 0x1c5   : > { %v2476_v17 = vsub.f32 %v955_v38, %v5911_v19  ;;  %3367 = vmin.xlane.f32.xlu0 %v2520_v31  ;;  %v2090_v22 = vmin.f32 %v2089_v48, %v6220_v4  ;;  %v2253_v7 = vsub.f32 %v963_v59, %v5887_v5  ;;  %v2722_v33 = vsub.f32 %v975_v43, %v6233_v10 }
 0x1c6   : > { %v2523_v8 = vmin.f32 %v2298_v30, %v2507_v21  ;;  %v2044_v62 = vmul.f32 %v2028_v32, %v2028_v32  ;;  %v2315_v14 = vmin.f32 %v2314_v53, %v2284_v20  ;;  %v2947_v60 = vsub.f32 %v975_v43, %v6238_v36  ;;  %v7418_v53 = vld [vmem:[#allocation83_spill] sm:$0xff]  ;;  %v7419_v32 = vld [vmem:[#allocation84_spill] sm:$0xff] }
 0x1c7   : > { %v6252_v42 = vadd.f32 %v2045_v47, %v7412_v27  ;;  %v6255_v11 = vadd.f32 %v2270_v45, %v7413_v44  ;;  %v2479_v38 = vsub.f32 %v967_v12, %v5911_v19  ;;  %v2269_v28 = vmul.f32 %v2253_v7, %v2253_v7 }
 0x1c8   : > { %3373 = vmin.xlane.f32.xlu1 %v2523_v8  ;;  %v6259_v29 = vadd.f32 %v2044_v62, %v7414_v37  ;;  %v2478_v15 = vsub.f32 %v963_v59, %v5911_v19  ;;  %v2297_v1 = vmin.f32 %v6200_v39, %v6207_v41  ;;  %v2506_v52 = vadd.f32 %v2490_v49, %v7415_v40  ;;  %v7417_v39 = vld [vmem:[#allocation75_spill] sm:$0xff]  ;;  %v7424_v40 = vld [vmem:[#allocation54_spill] sm:$0xff] }
 0x1c9   : > { %v6266_v2 = vadd.f32 %v2269_v28, %v7416_v58  ;;  %v2738_v50 = vmul.f32 %v2722_v33, %v2722_v33  ;;  %v3172_v46 = vsub.f32 %v975_v43, %v6248_v18  ;;  %v2536_v12 = vmin.f32 %v2535_v23, %v2505_v54  ;;  %v7421_v33 = vld [vmem:[#allocation70_spill] sm:$0xff]  ;;  %v7422_v8 = vld [vmem:[#allocation139_spill] sm:$0xff] }
 0x1ca   : > { %v2091_v9 = vmin.f32 %v2090_v22, %v6259_v29  ;;  %v2963_v56 = vmul.f32 %v2947_v60, %v2947_v60  ;;  %v2522_v57 = vmin.f32 %v2297_v1, %v2506_v52  ;;  %v2300_v51 = vmin.f32 %v6220_v4, %v2284_v20  ;;  %v7420_v22 = vld [vmem:[#allocation11_spill] sm:$0xff]  ;;  %v979_v1 = vpop.permute.xlu1 %978 }
 0x1cb   : > { %v2316_v59 = vmin.f32 %v2315_v14, %v6266_v2  ;;  %v2537_v47 = vmin.f32 %v2536_v12, %v2506_v52  ;;  %v6273_v41 = vadd.f32 %v2493_v3, %v7417_v39  ;;  %v2030_v49 = vsub.f32 %v971_v6, %v5884_v34  ;;  %v7425_v58 = vld [vmem:[#allocation79_spill] sm:$0xff]  ;;  %v991_v39 = vpop.permute.xlu0 %990 }
 0x1cc   : > { %v2492_v48 = vmul.f32 %v2476_v17, %v2476_v17  ;;  %v2495_v45 = vmul.f32 %v2479_v38, %v2479_v38  ;;  %3371 = vmin.xlane.f32.xlu0 %v2522_v57  ;;  %v2092_v54 = vmin.f32 %v2091_v9, %v6252_v42  ;;  %v2255_v43 = vsub.f32 %v971_v6, %v5887_v5  ;;  %v7429_v12 = vld [vmem:[#allocation55_spill] sm:$0xff] }
 0x1cd   : > { %v2494_v31 = vmul.f32 %v2478_v15, %v2478_v15  ;;  %v2525_v30 = vmin.f32 %v2300_v51, %v6273_v41  ;;  %v2046_v4 = vmul.f32 %v2030_v49, %v2030_v49  ;;  %v2317_v20 = vmin.f32 %v2316_v59, %v6255_v11 }
 0x1ce   : > { %v6281_v23 = vadd.f32 %v2738_v50, %v7418_v53  ;;  %v6283_v3 = vmul.f32 %v3172_v46, %v3172_v46  ;;  %v2271_v34 = vmul.f32 %v2255_v43, %v2255_v43  ;;  %v2724_v25 = vsub.f32 %v983_v61, %v6233_v10  ;;  %v7428_v46 = vld [vmem:[#allocation90_spill] sm:$0xff] }
 0x1cf   : > { %v6287_v17 = vadd.f32 %v2963_v56, %v7419_v32  ;;  %3377 = vmin.xlane.f32.xlu1 %v2525_v30  ;;  %v6290_v5 = vadd.f32 %v2046_v4, %v7420_v22  ;;  %v2299_v7 = vmin.f32 %v6223_v16, %v6230_v26  ;;  %v2439_v62 = vadd.f32 %v7422_v8, %v7421_v33  ;;  %v7423_v26 = vld [vmem:[#allocation89_spill] sm:$0xff]  ;;  %v7434_v4 = vld [vmem:[#allocation148_spill] sm:$0xff]  ;;  %v7435_v33 = vld [vmem:[#allocation74_spill] sm:$0xff] }
 0x1d0   : > { %v6297_v14 = vadd.f32 %v2271_v34, %v6055_v55  ;;  %v2480_v60 = vsub.f32 %v971_v6, %v5911_v19  ;;  %v2949_v27 = vsub.f32 %v983_v61, %v6238_v36  ;;  %v2538_v44 = vmin.f32 %v2537_v47, %v2507_v21  ;;  %v7426_v19 = vld [vmem:[#allocation50_spill] sm:$0xff]  ;;  %v7433_v30 = vld [vmem:[#allocation81_spill] sm:$0xff] }
 0x1d1   : > { %v2093_v38 = vmin.f32 %v2092_v54, %v6290_v5  ;;  %v2740_v28 = vmul.f32 %v2724_v25, %v2724_v25  ;;  %v3174_v37 = vsub.f32 %v983_v61, %v6248_v18  ;;  %v2508_v15 = vadd.f32 %v2492_v48, %v2439_v62  ;;  %v7436_v8 = vld [vmem:[#allocation142_spill] sm:$0xff] }
 0x1d2   : > { %v2318_v16 = vmin.f32 %v2317_v20, %v6297_v14  ;;  %v2687_v52 = vadd.f32 %v7424_v40, %v7423_v26  ;;  %v2302_v55 = vmin.f32 %v6252_v42, %v6255_v11  ;;  %v2442_v6 = vadd.f32 %v7426_v19, %v7425_v58  ;;  %v7439_v26 = vld [vmem:[#allocation96_spill] sm:$0xff]  ;;  %v7441_v58 = vld [vmem:[#allocation85_spill] sm:$0xff]  ;;  %v7442_v19 = vld [vmem:[#allocation146_spill] sm:$0xff] }
 0x1d3   : > { %v7427_v21 = vmin.f32 %v6077_v13, %v6087_v0  ;;  %v2912_v9 = vadd.f32 %v7429_v12, %v7428_v46  ;;  %v2524_v56 = vmin.f32 %v2299_v7, %v2508_v15  ;;  %v2539_v57 = vmin.f32 %v2538_v44, %v2508_v15  ;;  %v999_v46 = vpop.permute.xlu0 %998 }
 0x1d4   : > { %v7430_v51 = vmin.f32 %v6079_v35, %v6090_v63  ;;  %v6322_v47 = vmul.f32 %v2480_v60, %v2480_v60  ;;  %v6324_v42 = vadd.f32 %v2495_v45, %v2442_v6  ;;  %v2723_v11 = vsub.f32 %v979_v1, %v6233_v10  ;;  %v7431_v35 = vld [vmem:[#allocation80_spill] sm:$0xff]  ;;  %v7432_v63 = vld [vmem:[#allocation147_spill] sm:$0xff]  ;;  %v987_v60 = vpop.permute.xlu1 %986 }
 0x1d5   : > { %v6313_v50 = vmin.f32 %v7427_v21, %v2093_v38  ;;  %v6327_v13 = vadd.f32 %v2740_v28, %v2687_v52  ;;  %v2965_v0 = vmul.f32 %v2949_v27, %v2949_v27  ;;  %v6329_v49 = vmul.f32 %v3174_v37, %v3174_v37  ;;  %3375 = vmin.xlane.f32.xlu0 %v2524_v56  ;;  %v7437_v38 = vld [vmem:[#allocation95_spill] sm:$0xff]  ;;  %v7438_v28 = vld [vmem:[#allocation48_spill] sm:$0xff] }
 0x1d6   : > { %v6320_v59 = vmin.f32 %v7430_v51, %v2318_v16  ;;  %v2948_v61 = vsub.f32 %v979_v1, %v6238_v36  ;;  %v2527_v48 = vmin.f32 %v2302_v55, %v6324_v42  ;;  %v2686_v54 = vadd.f32 %v7432_v63, %v7431_v35  ;;  %v7444_v51 = vld [vmem:[#allocation66_spill] sm:$0xff]  ;;  %v7446_v35 = vld [vmem:[#allocation151_spill] sm:$0xff] }
 0x1d7   : > { %v2739_v43 = vmul.f32 %v2723_v11, %v2723_v11  ;;  %v3173_v45 = vsub.f32 %v979_v1, %v6248_v18  ;;  %v2911_v20 = vadd.f32 %v7434_v4, %v7433_v30  ;;  %v2726_v34 = vsub.f32 %v991_v39, %v6233_v10 }
 0x1d8   : > { %v2964_v53 = vmul.f32 %v2948_v61, %v2948_v61  ;;  %v2951_v25 = vsub.f32 %v991_v39, %v6238_v36  ;;  %3381 = vmin.xlane.f32.xlu1 %v2527_v48  ;;  %v3176_v22 = vsub.f32 %v991_v39, %v6248_v18  ;;  %v2301_v7 = vmin.f32 %v6259_v29, %v6266_v2  ;;  %v7440_v29 = vld [vmem:[#allocation58_spill] sm:$0xff]  ;;  %v7445_v48 = vld [vmem:[#allocation87_spill] sm:$0xff] }
 0x1d9   : > { %v6340_v32 = vadd.f32 %v2739_v43, %v2686_v54  ;;  %v2441_v62 = vadd.f32 %v7436_v8, %v7435_v33  ;;  %v6347_v27 = vadd.f32 %v2965_v0, %v2912_v9  ;;  %v2689_v37 = vadd.f32 %v7438_v28, %v7437_v38  ;;  %v7449_v8 = vld [vmem:[#allocation78_spill] sm:$0xff]  ;;  %v995_v38 = vpop.permute.xlu1 %994 }
 0x1da   : > { %v6349_v44 = vadd.f32 %v2964_v53, %v2911_v20  ;;  %v2540_v15 = vmin.f32 %v2539_v57, %v6273_v41  ;;  %v6356_v16 = vmul.f32 %v3173_v45, %v3173_v45  ;;  %v2914_v2 = vadd.f32 %v7440_v29, %v7439_v26 }
 0x1db   : > { %v2786_v1 = vmin.f32 %v6281_v23, %v6340_v32  ;;  %v2510_v40 = vadd.f32 %v2494_v31, %v2441_v62  ;;  %v2742_v52 = vmul.f32 %v2726_v34, %v2726_v34  ;;  %v2995_v55 = vmin.f32 %v6281_v23, %v6287_v17  ;;  %v7443_v31 = vld [vmem:[#allocation86_spill] sm:$0xff]  ;;  %v7450_v62 = vld [vmem:[#allocation143_spill] sm:$0xff] }
 0x1dc   : > { %v3135_v6 = vadd.f32 %v7442_v19, %v7441_v58  ;;  %v2725_v21 = vsub.f32 %v987_v60, %v6233_v10  ;;  %v3011_v41 = vmin.f32 %v6287_v17, %v6349_v44  ;;  %v2967_v12 = vmul.f32 %v2951_v25, %v2951_v25  ;;  %v7447_v25 = vld [vmem:[#allocation101_spill] sm:$0xff] }
 0x1dd   : > { %v6367_v9 = vmul.f32 %v3176_v22, %v3176_v22  ;;  %v2526_v56 = vmin.f32 %v2301_v7, %v2510_v40  ;;  %v2688_v11 = vadd.f32 %v7444_v51, %v7443_v31  ;;  %v2950_v39 = vsub.f32 %v987_v60, %v6238_v36  ;;  %v7448_v22 = vld [vmem:[#allocation52_spill] sm:$0xff] }
 0x1de   : > { %v6370_v57 = vadd.f32 %v6283_v3, %v3135_v6  ;;  %v2741_v23 = vmul.f32 %v2725_v21, %v2725_v21  ;;  %v2541_v0 = vmin.f32 %v2540_v15, %v2510_v40  ;;  %v2787_v61 = vmin.f32 %v2786_v1, %v6327_v13  ;;  %v7452_v15 = vld [vmem:[#allocation155_spill] sm:$0xff] }
 0x1df   : > { %3379 = vmin.xlane.f32.xlu0 %v2526_v56  ;;  %v2913_v17 = vadd.f32 %v7446_v35, %v7445_v48  ;;  %v2728_v63 = vsub.f32 %v999_v46, %v6233_v10  ;;  %v2966_v3 = vmul.f32 %v2950_v39, %v2950_v39  ;;  %v3175_v45 = vsub.f32 %v987_v60, %v6248_v18  ;;  %v1007_v56 = vpop.permute.xlu0 %1006  ;;  %v7460_v48 = vld [vmem:[#allocation153_spill] sm:$0xff] }
 0x1e0   : > { %v3220_v54 = vmin.f32 %v2995_v55, %v6370_v57  ;;  %v6380_v43 = vadd.f32 %v2741_v23, %v2688_v11  ;;  %v6383_v30 = vadd.f32 %v2742_v52, %v2689_v37  ;;  %v6385_v4 = vadd.f32 %v2967_v12, %v2914_v2  ;;  %v7451_v37 = vld [vmem:[#allocation102_spill] sm:$0xff] }
 0x1e1   : > { %v3012_v20 = vmin.f32 %v3011_v41, %v6347_v27  ;;  %v2953_v53 = vsub.f32 %v999_v46, %v6238_v36  ;;  %v6389_v34 = vadd.f32 %v2966_v3, %v2913_v17  ;;  %v2691_v7 = vadd.f32 %v7448_v22, %v7447_v25  ;;  %v7461_v25 = vld [vmem:[#allocation82_spill] sm:$0xff]  ;;  %v7462_v22 = vld [vmem:[#allocation149_spill] sm:$0xff] }
 0x1e2   : > { %3385 = vmin.xlane.f32.xlu1 %v3220_v54  ;;  %v2303_v33 = vmin.f32 %v6290_v5, %v6297_v14  ;;  %v2443_v60 = vadd.f32 %v7450_v62, %v7449_v8  ;;  %v2788_v28 = vmin.f32 %v2787_v61, %v6380_v43  ;;  %v2916_v1 = vadd.f32 %v7452_v15, %v7451_v37  ;;  %v7453_v5 = vld [vmem:[#allocation91_spill] sm:$0xff]  ;;  %v7454_v14 = vld [vmem:[#allocation150_spill] sm:$0xff]  ;;  %v7459_v61 = vld [vmem:[#allocation93_spill] sm:$0xff] }
 0x1e3   : > { %v2744_v26 = vmul.f32 %v2728_v63, %v2728_v63  ;;  %v2542_v29 = vmin.f32 %v2541_v0, %v6324_v42  ;;  %v6401_v2 = vmul.f32 %v3175_v45, %v3175_v45  ;;  %v2997_v52 = vmin.f32 %v6327_v13, %v6347_v27  ;;  %v7455_v13 = vld [vmem:[#allocation92_spill] sm:$0xff] }
 0x1e4   : > { %v2512_v40 = vadd.f32 %v6322_v47, %v2443_v60  ;;  %v3137_v55 = vadd.f32 %v7454_v14, %v7453_v5  ;;  %v3013_v58 = vmin.f32 %v3012_v20, %v6389_v34  ;;  %v2969_v19 = vmul.f32 %v2953_v53, %v2953_v53  ;;  %v7456_v27 = vld [vmem:[#allocation60_spill] sm:$0xff]  ;;  %v7467_v5 = vld [vmem:[#allocation106_spill] sm:$0xff]  ;;  %v7468_v14 = vld [vmem:[#allocation159_spill] sm:$0xff] }
 0x1e5   : > { %v3178_v6 = vsub.f32 %v999_v46, %v6248_v18  ;;  %v2727_v21 = vsub.f32 %v995_v38, %v6233_v10  ;;  %v2952_v47 = vsub.f32 %v995_v38, %v6238_v36  ;;  %v6415_v31 = vadd.f32 %v2744_v26, %v2691_v7  ;;  %v7457_v46 = vld [vmem:[#allocation12_spill] sm:$0xff]  ;;  %v7463_v26 = vld [vmem:[#allocation97_spill] sm:$0xff] }
 0x1e6   : > { %v2528_v41 = vmin.f32 %v2303_v33, %v2512_v40  ;;  %v2543_v12 = vmin.f32 %v2542_v29, %v2512_v40  ;;  %v6412_v42 = vadd.f32 %v6329_v49, %v3137_v55  ;;  %v2690_v51 = vadd.f32 %v7456_v27, %v7455_v13  ;;  %v1003_v33 = vpop.permute.xlu1 %1002  ;;  %v7464_v29 = vld [vmem:[#allocation59_spill] sm:$0xff]  ;;  %v7465_v40 = vld [vmem:[#allocation8_spill] sm:$0xff]  ;;  %v1015_v13 = vpop.permute.xlu0 %1014 }
 0x1e7   : > { %v2743_v11 = vmul.f32 %v2727_v21, %v2727_v21  ;;  %v2789_v23 = vmin.f32 %v2788_v28, %v6383_v30  ;;  %v7458_v39 = vmin.f32 %v6142_v24, %v7457_v46  ;;  %v2915_v35 = vadd.f32 %v7460_v48, %v7459_v61 }
 0x1e8   : > { %3383 = vmin.xlane.f32.xlu0 %v2528_v41  ;;  %v3222_v49 = vmin.f32 %v2997_v52, %v6412_v42  ;;  %v2968_v17 = vmul.f32 %v2952_v47, %v2952_v47  ;;  %v3014_v54 = vmin.f32 %v3013_v58, %v6385_v4  ;;  %v3177_v3 = vsub.f32 %v995_v38, %v6248_v18  ;;  %v7466_v52 = vld [vmem:[#allocation64_spill] sm:$0xff]  ;;  %v7470_v41 = vld [vmem:[#allocation62_spill] sm:$0xff] }
 0x1e9   : > { %v6423_v0 = vmin.f32 %v7458_v39, %v2543_v12  ;;  %v6428_v63 = vadd.f32 %v2743_v11, %v2690_v51  ;;  %v2730_v45 = vsub.f32 %v1007_v56, %v6233_v10  ;;  %v2955_v24 = vsub.f32 %v1007_v56, %v6238_v36  ;;  %v7471_v39 = vld [vmem:[#allocation99_spill] sm:$0xff] }
 0x1ea   : > { %3389 = vmin.xlane.f32.xlu1 %v3222_v49  ;;  %v6433_v20 = vadd.f32 %v2968_v17, %v2915_v35  ;;  %v2996_v53 = vmin.f32 %v6340_v32, %v6349_v44  ;;  %v3136_v7 = vadd.f32 %v7462_v22, %v7461_v25  ;;  %v6440_v8 = vadd.f32 %v2969_v19, %v2916_v1  ;;  %v7472_v49 = vld [vmem:[#allocation157_spill] sm:$0xff] }
 0x1eb   : > { %v3194_v62 = vmul.f32 %v3178_v6, %v3178_v6  ;;  %v2790_v60 = vmin.f32 %v2789_v23, %v6428_v63  ;;  %v3180_v38 = vsub.f32 %v1007_v56, %v6248_v18  ;;  %v2746_v28 = vmul.f32 %v2730_v45, %v2730_v45  ;;  %v7474_v45 = vld [vmem:[#allocation152_spill] sm:$0xff] }
 0x1ec   : > { %v3205_v37 = vadd.f32 %v6356_v16, %v3136_v7  ;;  %v2999_v15 = vmin.f32 %v6383_v30, %v6385_v4  ;;  %v3139_v32 = vadd.f32 %v7464_v29, %v7463_v26  ;;  %v3015_v44 = vmin.f32 %v3014_v54, %v6433_v20  ;;  %v7469_v4 = vld [vmem:[#allocation98_spill] sm:$0xff]  ;;  %v7477_v26 = vld [vmem:[#allocation111_spill] sm:$0xff] }
 0x1ed   : > { %v2693_v1 = vadd.f32 %v7466_v52, %v7465_v40  ;;  %v2918_v55 = vadd.f32 %v7468_v14, %v7467_v5  ;;  %v2729_v58 = vsub.f32 %v1003_v33, %v6233_v10  ;;  %v6455_v19 = vmul.f32 %v3177_v3, %v3177_v3  ;;  %v7473_v3 = vld [vmem:[#allocation88_spill] sm:$0xff]  ;;  %v7478_v29 = vld [vmem:[#allocation67_spill] sm:$0xff] }
 0x1ee   : > { %v2971_v6 = vmul.f32 %v2955_v24, %v2955_v24  ;;  %v3221_v16 = vmin.f32 %v2996_v53, %v3205_v37  ;;  %v6458_v21 = vadd.f32 %v6367_v9, %v3139_v32  ;;  %v6460_v30 = vmul.f32 %v3180_v38, %v3180_v38  ;;  %v1011_v9 = vpop.permute.xlu1 %1010  ;;  %v7475_v38 = vld [vmem:[#allocation110_spill] sm:$0xff]  ;;  %v7480_v40 = vld [vmem:[#allocation156_spill] sm:$0xff] }
 0x1ef   : > { %v2692_v12 = vadd.f32 %v7470_v41, %v7469_v4  ;;  %v2745_v47 = vmul.f32 %v2729_v58, %v2729_v58  ;;  %v2954_v56 = vsub.f32 %v1003_v33, %v6238_v36  ;;  %v6465_v27 = vadd.f32 %v2746_v28, %v2693_v1  ;;  %v7476_v28 = vld [vmem:[#allocation56_spill] sm:$0xff]  ;;  %v1023_v4 = vpop.permute.xlu0 %1022  ;;  %v7482_v41 = vld [vmem:[#allocation161_spill] sm:$0xff] }
 0x1f0   : > { %3387 = vmin.xlane.f32.xlu0 %v3221_v16  ;;  %v3236_v51 = vmin.f32 %v6370_v57, %v3205_v37  ;;  %v3224_v11 = vmin.f32 %v2999_v15, %v6458_v21  ;;  %v2791_v23 = vmin.f32 %v2790_v60, %v6415_v31  ;;  %v2917_v61 = vadd.f32 %v7472_v49, %v7471_v39 }
 0x1f1   : > { %v6470_v46 = vadd.f32 %v2745_v47, %v2692_v12  ;;  %v2970_v48 = vmul.f32 %v2954_v56, %v2954_v56  ;;  %v3016_v35 = vmin.f32 %v3015_v44, %v6440_v8  ;;  %v2732_v17 = vsub.f32 %v1015_v13, %v6233_v10 }
 0x1f2   : > { %3393 = vmin.xlane.f32.xlu1 %v3224_v11  ;;  %v2957_v54 = vsub.f32 %v1015_v13, %v6238_v36  ;;  %v2998_v57 = vmin.f32 %v6380_v43, %v6389_v34  ;;  %v3138_v24 = vadd.f32 %v7474_v45, %v7473_v3  ;;  %v6481_v53 = vadd.f32 %v2971_v6, %v2918_v55  ;;  %v6500_v58 = vpop.permute.xlu1 %1018  ;;  %v7484_v11 = vld [vmem:[#allocation162_spill] sm:$0xff] }
 0x1f3   : > { %v6483_v25 = vadd.f32 %v2970_v48, %v2917_v61  ;;  %v3179_v22 = vsub.f32 %v1003_v33, %v6248_v18  ;;  %v3182_v7 = vsub.f32 %v1015_v13, %v6248_v18  ;;  %v2792_v60 = vmin.f32 %v2791_v23, %v6470_v46  ;;  %v7479_v33 = vld [vmem:[#allocation103_spill] sm:$0xff]  ;;  %v7485_v3 = vld [vmem:[#allocation94_spill] sm:$0xff] }
 0x1f4   : > { %v2695_v37 = vadd.f32 %v7476_v28, %v7475_v38  ;;  %v3207_v15 = vadd.f32 %v6401_v2, %v3138_v24  ;;  %v3237_v43 = vmin.f32 %v3236_v51, %v6412_v42  ;;  %v2920_v32 = vadd.f32 %v7478_v29, %v7477_v26  ;;  %v7483_v51 = vld [vmem:[#allocation105_spill] sm:$0xff]  ;;  %v7486_v45 = vld [vmem:[#allocation154_spill] sm:$0xff]  ;;  %v7488_v38 = vld [vmem:[#allocation136_spill] sm:$0xff] }
 0x1f5   : > { %v3017_v34 = vmin.f32 %v3016_v35, %v6483_v25  ;;  %v3001_v44 = vmin.f32 %v6415_v31, %v6440_v8  ;;  %v3141_v52 = vadd.f32 %v7480_v40, %v7479_v33  ;;  %v2748_v1 = vmul.f32 %v2732_v17, %v2732_v17  ;;  %v7481_v8 = vld [vmem:[#allocation104_spill] sm:$0xff]  ;;  %v7490_v26 = vld [vmem:[#allocation71_spill] sm:$0xff] }
 0x1f6   : > { %v2973_v5 = vmul.f32 %v2957_v54, %v2957_v54  ;;  %v3223_v14 = vmin.f32 %v2998_v57, %v3207_v15  ;;  %v2731_v55 = vsub.f32 %v1011_v9, %v6233_v10  ;;  %v6502_v2 = vmul.f32 %v3179_v22, %v3179_v22  ;;  %v7492_v33 = vld [vmem:[#allocation160_spill] sm:$0xff] }
 0x1f7   : > { %v6504_v42 = vmul.f32 %v3182_v7, %v3182_v7  ;;  %v3210_v6 = vadd.f32 %v3194_v62, %v3141_v52  ;;  %v2956_v16 = vsub.f32 %v1011_v9, %v6238_v36  ;;  %v3238_v31 = vmin.f32 %v3237_v43, %v3207_v15  ;;  %v6532_v15 = vpop.permute.xlu1 %1026 }
 0x1f8   : > { %3391 = vmin.xlane.f32.xlu0 %v3223_v14  ;;  %v2694_v12 = vadd.f32 %v7482_v41, %v7481_v8  ;;  %v2747_v47 = vmul.f32 %v2731_v55, %v2731_v55  ;;  %v2793_v56 = vmin.f32 %v2792_v60, %v6465_v27  ;;  %v2919_v23 = vadd.f32 %v7484_v11, %v7483_v51  ;;  %v7487_v60 = vld [vmem:[#allocation115_spill] sm:$0xff]  ;;  %v7493_v14 = vld [vmem:[#allocation108_spill] sm:$0xff] }
 0x1f9   : > { %v3226_v13 = vmin.f32 %v3001_v44, %v3210_v6  ;;  %v2972_v39 = vmul.f32 %v2956_v16, %v2956_v16  ;;  %v3018_v49 = vmin.f32 %v3017_v34, %v6481_v53  ;;  %v6513_v61 = vadd.f32 %v2748_v1, %v2695_v37  ;;  %v7489_v34 = vld [vmem:[#allocation116_spill] sm:$0xff]  ;;  %v7491_v44 = vld [vmem:[#allocation107_spill] sm:$0xff] }
 0x1fa   : > { %v6515_v62 = vadd.f32 %v2973_v5, %v2920_v32  ;;  %v6517_v48 = vadd.f32 %v2747_v47, %v2694_v12  ;;  %v2734_v35 = vsub.f32 %v1023_v4, %v6233_v10  ;;  %v2959_v54 = vsub.f32 %v1023_v4, %v6238_v36  ;;  %v7494_v55 = vld [vmem:[#allocation164_spill] sm:$0xff]  ;;  %v7495_v12 = vld [vmem:[#allocation109_spill] sm:$0xff] }
 0x1fb   : > { %3397 = vmin.xlane.f32.xlu1 %v3226_v13  ;;  %v6520_v17 = vadd.f32 %v2972_v39, %v2919_v23  ;;  %v3000_v57 = vmin.f32 %v6428_v63, %v6433_v20  ;;  %v3140_v24 = vadd.f32 %v7486_v45, %v7485_v3  ;;  %v3181_v7 = vsub.f32 %v1011_v9, %v6248_v18  ;;  %v7496_v47 = vld [vmem:[#allocation165_spill] sm:$0xff]  ;;  %v6557_v39 = vpop.permute.xlu1 %1034 }
 0x1fc   : > { %v2794_v22 = vmin.f32 %v2793_v56, %v6517_v48  ;;  %v2697_v28 = vadd.f32 %v7488_v38, %v7487_v60  ;;  %v3239_v37 = vmin.f32 %v3238_v31, %v6458_v21  ;;  %v2922_v29 = vadd.f32 %v7490_v26, %v7489_v34  ;;  %v1031_v31 = vpop.permute.xlu0 %1030 }
 0x1fd   : > { %v3019_v43 = vmin.f32 %v3018_v49, %v6520_v17  ;;  %v3184_v63 = vsub.f32 %v1023_v4, %v6248_v18  ;;  %v3209_v20 = vadd.f32 %v6455_v19, %v3140_v24  ;;  %v2750_v32 = vmul.f32 %v2734_v35, %v2734_v35  ;;  %v7497_v24 = vld [vmem:[#allocation100_spill] sm:$0xff] }
 0x1fe   : > { %v3003_v9 = vmin.f32 %v6465_v27, %v6481_v53  ;;  %v3143_v40 = vadd.f32 %v7492_v33, %v7491_v44  ;;  %v2733_v21 = vsub.f32 %v6500_v58, %v6233_v10  ;;  %v2975_v52 = vmul.f32 %v2959_v54, %v2959_v54  ;;  %v7502_v44 = vld [vmem:[#allocation170_spill] sm:$0xff] }
 0x1ff   : > { %v3225_v1 = vmin.f32 %v3000_v57, %v3209_v20  ;;  %v3240_v5 = vmin.f32 %v3239_v37, %v3209_v20  ;;  %v2696_v16 = vadd.f32 %v7494_v55, %v7493_v14  ;;  %v2795_v8 = vmin.f32 %v2794_v22, %v6513_v61  ;;  %v7498_v22 = vld [vmem:[#allocation158_spill] sm:$0xff]  ;;  %v6580_v20 = vpop.xlane.xlu1 %3323 }
 0x200   : > { %v3212_v4 = vadd.f32 %v6460_v30, %v3143_v40  ;;  %v2749_v19 = vmul.f32 %v2733_v21, %v2733_v21  ;;  %v2958_v27 = vsub.f32 %v6500_v58, %v6238_v36  ;;  %v3197_v53 = vmul.f32 %v3181_v7, %v3181_v7  ;;  %v6567_v38 = vpop.xlane.xlu0 %3321 }
 0x201   : > { %v3200_v41 = vmul.f32 %v3184_v63, %v3184_v63  ;;  %3395 = vmin.xlane.f32.xlu0 %v3225_v1  ;;  %v2921_v56 = vadd.f32 %v7496_v47, %v7495_v12  ;;  %v3020_v13 = vmin.f32 %v3019_v43, %v6515_v62  ;;  %v2736_v30 = vsub.f32 %v1031_v31, %v6233_v10 }
 0x202   : > { %v3228_v51 = vmin.f32 %v3003_v9, %v3212_v4  ;;  %v6554_v11 = vadd.f32 %v2749_v19, %v2696_v16  ;;  %v2974_v23 = vmul.f32 %v2958_v27, %v2958_v27  ;;  %v2766_v49 = vadd.f32 %v2750_v32, %v2697_v28  ;;  %v7501_v9 = vld [vmem:[#allocation10_spill] sm:$0xff]  ;;  %v7505_v19 = vld [vmem:[#allocation5_spill] sm:$0xff] }
 0x203   : > { %v2991_v35 = vadd.f32 %v2975_v52, %v2922_v29  ;;  %v2961_v54 = vsub.f32 %v1031_v31, %v6238_v36  ;;  %v3002_v57 = vmin.f32 %v6470_v46, %v6483_v25  ;;  %v3142_v7 = vadd.f32 %v7498_v22, %v7497_v24  ;;  %v7499_v46 = vld [vmem:[#allocation112_spill] sm:$0xff] }
 0x204   : > { %3401 = vmin.xlane.f32.xlu1 %v3228_v51  ;;  %v2796_v3 = vmin.f32 %v2795_v8, %v6554_v11  ;;  %v6563_v45 = vadd.f32 %v2974_v23, %v2921_v56  ;;  %v3241_v60 = vmin.f32 %v3240_v5, %v3210_v6  ;;  %v3183_v28 = vsub.f32 %v6500_v58, %v6248_v18  ;;  %v7500_v25 = vld [vmem:[#allocation68_spill] sm:$0xff]  ;;  %v7504_v5 = vld [vmem:[#allocation171_spill] sm:$0xff]  ;;  %v6595_v47 = vpop.xlane.xlu0 %3325  ;;  %v7507_v23 = vld [vmem:[#allocation117_spill] sm:$0xff] }
 0x205   : > { %v3186_v37 = vsub.f32 %v1031_v31, %v6248_v18  ;;  %v3005_v43 = vmin.f32 %v6513_v61, %v6515_v62  ;;  %v3145_v34 = vadd.f32 %v7500_v25, %v7499_v46  ;;  %v2752_v29 = vmul.f32 %v2736_v30, %v2736_v30  ;;  %v7506_v8 = vld [vmem:[#allocation163_spill] sm:$0xff]  ;;  %v7508_v30 = vld [vmem:[#allocation169_spill] sm:$0xff] }
 0x206   : > { %v3021_v26 = vmin.f32 %v3020_v13, %v6563_v45  ;;  %v3211_v63 = vadd.f32 %v6502_v2, %v3142_v7  ;;  %v2735_v6 = vsub.f32 %v6532_v15, %v6233_v10  ;;  %v2977_v32 = vmul.f32 %v2961_v54, %v2961_v54  ;;  %v7503_v2 = vld [vmem:[#allocation113_spill] sm:$0xff] }
 0x207   : > { %v3214_v58 = vadd.f32 %v6504_v42, %v3145_v34  ;;  %v2698_v33 = vadd.f32 %v7502_v44, %v7501_v9  ;;  %v2960_v61 = vsub.f32 %v6532_v15, %v6238_v36  ;;  %v2797_v52 = vmin.f32 %v2796_v3, %v2766_v49  ;;  %v7514_v44 = vld [vmem:[#allocation13_spill] sm:$0xff] }
 0x208   : > { %v3227_v62 = vmin.f32 %v3002_v57, %v3211_v63  ;;  %v3242_v40 = vmin.f32 %v3241_v60, %v3211_v63  ;;  %v2751_v21 = vmul.f32 %v2735_v6, %v2735_v6  ;;  %v2923_v14 = vadd.f32 %v7504_v5, %v7503_v2  ;;  %v7509_v57 = vld [vmem:[#allocation119_spill] sm:$0xff]  ;;  %v7512_v63 = vld [vmem:[#allocation174_spill] sm:$0xff] }
 0x209   : > { %v3230_v1 = vmin.f32 %v3005_v43, %v3214_v58  ;;  %v2976_v55 = vmul.f32 %v2960_v61, %v2960_v61  ;;  %v3022_v16 = vmin.f32 %v3021_v26, %v2991_v35  ;;  %v3004_v42 = vmin.f32 %v6517_v48, %v6520_v17  ;;  %v6601_v48 = vpop.xlane.xlu1 %3329  ;;  %v7515_v61 = vld [vmem:[#allocation6_spill] sm:$0xff] }
 0x20a   : > { %3399 = vmin.xlane.f32.xlu0 %v3227_v62  ;;  %v6589_v31 = vadd.f32 %v2751_v21, %v2698_v33  ;;  %v3144_v27 = vadd.f32 %v7506_v8, %v7505_v19  ;;  %v3243_v12 = vmin.f32 %v3242_v40, %v3212_v4  ;;  %v3199_v56 = vmul.f32 %v3183_v28, %v3183_v28  ;;  %v7516_v62 = vld [vmem:[#allocation166_spill] sm:$0xff] }
 0x20b   : > { %3405 = vmin.xlane.f32.xlu1 %v3230_v1  ;;  %v2992_v13 = vadd.f32 %v2976_v55, %v2923_v14  ;;  %v3007_v51 = vmin.f32 %v2766_v49, %v2991_v35  ;;  %v3147_v54 = vadd.f32 %v7508_v30, %v7507_v23  ;;  %v2768_v3 = vadd.f32 %v2752_v29, %v7509_v57  ;;  %v7510_v49 = vld [vmem:[#allocation9_spill] sm:$0xff]  ;;  %v7511_v29 = vld [vmem:[#allocation120_spill] sm:$0xff] }
 0x20c   : > { %v3202_v24 = vmul.f32 %v3186_v37, %v3186_v37  ;;  %v2798_v22 = vmin.f32 %v2797_v52, %v6589_v31  ;;  %v3213_v7 = vadd.f32 %v3197_v53, %v3144_v27  ;;  %v2737_v4 = vsub.f32 %v6557_v39, %v6233_v10  ;;  %v7517_v52 = vld [vmem:[#allocation173_spill] sm:$0xff]  ;;  %v7519_v27 = vld [vmem:[#allocation114_spill] sm:$0xff] }
 0x20d   : > { %v3023_v17 = vmin.f32 %v3022_v16, %v2992_v13  ;;  %v3216_v60 = vadd.f32 %v3200_v41, %v3147_v54  ;;  %v2962_v28 = vsub.f32 %v6557_v39, %v6238_v36  ;;  %v2993_v35 = vadd.f32 %v2977_v32, %v7510_v49  ;;  %v6616_v32 = vpop.xlane.xlu0 %3327 }
 0x20e   : > { %v3185_v43 = vsub.f32 %v6532_v15, %v6248_v18  ;;  %v3229_v46 = vmin.f32 %v3004_v42, %v3213_v7  ;;  %v3244_v37 = vmin.f32 %v3243_v12, %v3213_v7  ;;  %v2753_v34 = vmul.f32 %v2737_v4, %v2737_v4  ;;  %v7513_v15 = vld [vmem:[#allocation7_spill] sm:$0xff] }
 0x20f   : > { %v3232_v25 = vmin.f32 %v3007_v51, %v3216_v60  ;;  %v2799_v53 = vmin.f32 %v2798_v22, %v2768_v3  ;;  %v2978_v26 = vmul.f32 %v2962_v28, %v2962_v28  ;;  %v3149_v41 = vadd.f32 %v7512_v63, %v7511_v29 }
 0x210   : > { %3403 = vmin.xlane.f32.xlu0 %v3229_v46  ;;  %v3024_v6 = vmin.f32 %v3023_v17, %v2993_v35  ;;  %v3187_v10 = vsub.f32 %v6557_v39, %v6248_v18  ;;  %v3006_v36 = vmin.f32 %v6554_v11, %v6563_v45  ;;  %v2769_v9 = vadd.f32 %v2753_v34, %v7513_v15  ;;  %v6624_v39 = vpop.xlane.xlu1 %3333  ;;  %v7518_v11 = vld [vmem:[#allocation118_spill] sm:$0xff] }
 0x211   : > { %3409 = vmin.xlane.f32.xlu1 %v3232_v25  ;;  %v2994_v33 = vadd.f32 %v2978_v26, %v7514_v44  ;;  %v3146_v40 = vadd.f32 %v7516_v62, %v7515_v61  ;;  %v3245_v21 = vmin.f32 %v3244_v37, %v3214_v58  ;;  %v3134_v1 = vmul.f32 %v7517_v52, %v7517_v52  ;;  %v7520_v58 = vld [vmem:[#allocation172_spill] sm:$0xff] }
 0x212   : > { %v3201_v2 = vmul.f32 %v3185_v43, %v3185_v43  ;;  %v3009_v5 = vmin.f32 %v2768_v3, %v2993_v35  ;;  %v3218_v18 = vadd.f32 %v3202_v24, %v3149_v41  ;;  %v3081_v45 = vmul.f32 %v7518_v11, %v7518_v11  ;;  %v6634_v24 = vpop.xlane.xlu0 %3331 }
 0x213   : > { %v2800_v14 = vmin.f32 %v2799_v53, %v2769_v9  ;;  %v3025_v55 = vmin.f32 %v3024_v6, %v2994_v33  ;;  %v3215_v16 = vadd.f32 %v3199_v56, %v3146_v40  ;;  %v3203_v42 = vmul.f32 %v3187_v10, %v3187_v10 }
 0x214   : > { %v3234_v19 = vmin.f32 %v3009_v5, %v3218_v18  ;;  %v3008_v8 = vmin.f32 %v6589_v31, %v2992_v13  ;;  %v3148_v12 = vadd.f32 %v7520_v58, %v7519_v27  ;;  %v3150_v57 = vadd.f32 %v3134_v1, %v3081_v45 }
 0x215   : > { %v2802_v51 = vmin.f32 %v6313_v50, %v2800_v14  ;;  %v3027_v23 = vmin.f32 %v6320_v59, %v3025_v55  ;;  %v3231_v30 = vmin.f32 %v3006_v36, %v3215_v16  ;;  %v3246_v54 = vmin.f32 %v3245_v21, %v3215_v16  ;;  %v6637_v50 = vpop.xlane.xlu1 %3337 }
 0x216   : > { %3413 = vmin.xlane.f32.xlu1 %v3234_v19  ;;  %v3217_v3 = vadd.f32 %v3201_v2, %v3148_v12  ;;  %4099 = vrsqrt.f32 %v6580_v20  ;;  %v3010_v13 = vmin.f32 %v2769_v9, %v2994_v33  ;;  %v3219_v28 = vadd.f32 %v3203_v42, %v3150_v57 }
 0x217   : > { %v3808_v56 = vrot.slane %v2802_v51, 4  ;;  %v3814_v22 = vrot.slane %v3027_v23, 4  ;;  %3407 = vmin.xlane.f32.xlu0 %v3231_v30  ;;  %v3247_v31 = vmin.f32 %v3246_v54, %v3216_v60  ;;  %4101 = vrsqrt.f32 %v6567_v38 }
 0x218   : > { %v3233_v7 = vmin.f32 %v3008_v8, %v3217_v3  ;;  %4103 = vrsqrt.f32 %v6601_v48  ;;  %v3235_v43 = vmin.f32 %v3010_v13, %v3219_v28  ;;  %v4256_v37 = vmov 1966171168   ;;  %v6643_v34 = vpop.xlane.xlu0 %3335 }
 0x219   : > { %v3809_v59 = vmin.f32 %v2802_v51, %v3808_v56  ;;  %v3815_v17 = vmin.f32 %v3027_v23, %v3814_v22  ;;  %v3248_v4 = vmin.f32 %v3247_v31, %v3217_v3  ;;  %v6640_v25 = vunpack.c.l.s4 %v4256_v37 }
 0x21a   : > { %v3854_v60 = vlaneseq  ;;  %4105 = vrsqrt.f32 %v6595_v47  ;;  %v6646_v63 = vpop.xlane.xlu1 %3341  ;;  %vm3426_vm1 = vcmp.eq.f32.partialorder %v6580_v20, inf  ;;  %vm3428_vm2 = vcmp.eq.f32.partialorder %v6580_v20, 0.0 }
 0x21b   : > { %v3810_v49 = vrot.slane %v3809_v59, 2  ;;  %v3816_v35 = vrot.slane %v3815_v17, 2  ;;  %3411 = vmin.xlane.f32.xlu0 %v3233_v7  ;;  %v3249_v46 = vmin.f32 %v3248_v4, %v3218_v18  ;;  %4107 = vrsqrt.f32 %v6624_v39 }
 0x21c   : > { %4109 = vrsqrt.f32 %v6616_v32  ;;  %v3853_v36 = vunpack.c.0.s8 %v6640_v25  ;;  %v6652_v15 = vshrl.u32 %v3854_v60, 7  ;;  %vm3419_vm3 = vcmp.eq.f32.partialorder %v6567_v38, inf }
 0x21d   : > { %v3811_v53 = vmin.f32 %v3809_v59, %v3810_v49  ;;  %v3817_v26 = vmin.f32 %v3815_v17, %v3816_v35  ;;  %v3250_v29 = vmin.f32 %v3249_v46, %v3219_v28  ;;  %4111 = vrsqrt.f32 %v6637_v50 }
 0x21e   : > { %4113 = vrsqrt.f32 %v6634_v24  ;;  %vm3421_vm4 = vcmp.eq.f32.partialorder %v6567_v38, 0.0  ;;  %v3422_v40 = vand.u32 2147483648, %v6567_v38  ;;  %vm3447_vm5 = vcmp.eq.f32.partialorder %v6601_v48, inf }
 0x21f   : > { %v3812_v41 = vrot.slane %v3811_v53, 1  ;;  %v3818_v6 = vrot.slane %v3817_v26, 1  ;;  %3415 = vmin.xlane.f32.xlu0 %v3235_v43  ;;  %v3252_v10 = vmin.f32 %v6423_v0, %v3250_v29  ;;  %v3429_v0 = vand.u32 2147483648, %v6580_v20  ;;  %v6663_v61 = vpop.xlane.xlu0 %3339 }
 0x220   : > { %vm3449_vm6 = vcmp.eq.f32.partialorder %v6601_v48, 0.0  ;;  %v3450_v21 = vand.u32 2147483648, %v6601_v48  ;;  %vm3433_vm7 = vcmp.eq.f32.partialorder %v6595_v47, inf  ;;  %vm3435_vm8 = vcmp.eq.f32.partialorder %v6595_v47, 0.0 }
 0x221   : > { %v6655_v9 = vmin.f32 %v3811_v53, %v3812_v41  ;;  %v6657_v44 = vmin.f32 %v3817_v26, %v3818_v6  ;;  %v3820_v33 = vrot.slane %v3252_v10, 4  ;;  %v6673_v52 = vpop.xlane.xlu1 %3345  ;;  %v3436_v11 = vand.u32 2147483648, %v6595_v47 }
 0x222   : > { %vm3461_vm9 = vcmp.eq.f32.partialorder %v6624_v39, inf  ;;  %vm3463_vm10 = vcmp.eq.f32.partialorder %v6624_v39, 0.0  ;;  %v3464_v16 = vand.u32 2147483648, %v6624_v39  ;;  %vm3440_vm11 = vcmp.eq.f32.partialorder %v6616_v32, inf }
 0x223   : > { %v4100_v62 = vpop.eup %4099  ;;  %4115 = vrsqrt.f32 %v6655_v9  ;;  %v3821_v2 = vmin.f32 %v3252_v10, %v3820_v33  ;;  %vm3442_vm12 = vcmp.eq.f32.partialorder %v6616_v32, 0.0  ;;  %vm3475_vm13 = vcmp.eq.f32.partialorder %v6637_v50, inf }
 0x224   : > { %4117 = vrsqrt.f32 %v6657_v44  ;;  %v4102_v1 = vpop.eup %4101  ;;  %v3425_v5 = vmul.f32 %v4100_v62, %v6580_v20  ;;  %vm3477_vm14 = vcmp.eq.f32.partialorder %v6637_v50, 0.0  ;;  %v3478_v56 = vand.u32 2147483648, %v6637_v50 }
 0x225   : > { %v3418_v18 = vmul.f32 %v4102_v1, %v6567_v38  ;;  %4119 = vrsqrt.f32 %v6646_v63  ;;  %v4104_v45 = vpop.eup %4103  ;;  %v3822_v14 = vrot.slane %v3821_v2, 2  ;;  %vm3454_vm15 = vcmp.eq.f32.partialorder %v6634_v24, inf }
 0x226   : > { %v3427_v55 = vsel %vm3426_vm1, %v6580_v20, %v3425_v5  ;;  %4121 = vrsqrt.f32 %v6643_v34  ;;  %v3446_v8 = vmul.f32 %v4104_v45, %v6601_v48  ;;  %v6702_v27 = vpop.xlane.xlu0 %3343  ;;  %v3443_v20 = vand.u32 2147483648, %v6616_v32 }
 0x227   : > { %v3430_v42 = vsel %vm3428_vm2, %v3429_v0, %v3427_v55  ;;  %v3420_v19 = vsel %vm3419_vm3, %v6567_v38, %v3418_v18  ;;  %v4106_v58 = vpop.eup %4105  ;;  %v3823_v12 = vmin.f32 %v3821_v2, %v3822_v14  ;;  %4123 = vrsqrt.f32 %v6673_v52 }
 0x228   : > { %3755 = vst.msk [vmem:[%s6683_s26 + $0x8] sm:$0xff] %vm3753_vm0, %v3430_v42  ;;  %v3423_v51 = vsel %vm3421_vm4, %v3422_v40, %v3420_v19  ;;  %v3448_v23 = vsel %vm3447_vm5, %v6601_v48, %v3446_v8  ;;  %v3432_v30 = vmul.f32 %v4106_v58, %v6595_v47  ;;  %v6718_v54 = vpop.xlane.xlu1 %3349  ;;  %v4108_v38 = vpop.eup %4107  ;;  %4125 = vrsqrt.f32 %v6663_v61 }
 0x229   : > { %3754 = vst.msk [vmem:[%s6683_s26] sm:$0xff] %vm3753_vm0, %v3423_v51  ;;  %v3824_v57 = vrot.slane %v3823_v12, 1  ;;  %v3451_v3 = vsel %vm3449_vm6, %v3450_v21, %v3448_v23  ;;  %v4110_v22 = vpop.eup %4109  ;;  %v3460_v13 = vmul.f32 %v4108_v38, %v6624_v39  ;;  %vm3828_vm1 = vcmp.eq.f32.partialorder %v6655_v9, inf }
 0x22a   : > { %3758 = vst.msk [vmem:[%s6683_s26 + $0x20] sm:$0xff] %vm3753_vm0, %v3451_v3  ;;  %v3434_v31 = vsel %vm3433_vm7, %v6595_v47, %v3432_v30  ;;  %v4112_v48 = vpop.eup %4111  ;;  %v3439_v17 = vmul.f32 %v4110_v22, %v6616_v32  ;;  %vm3830_vm2 = vcmp.eq.f32.partialorder %v6655_v9, 0.0  ;;  %4127 = vrsqrt.f32 %v6718_v54 }
 0x22b   : > { %v6733_v7 = vmin.f32 %v3823_v12, %v3824_v57  ;;  %v3437_v59 = vsel %vm3435_vm8, %v3436_v11, %v3434_v31  ;;  %v3462_v4 = vsel %vm3461_vm9, %v6624_v39, %v3460_v13  ;;  %v3474_v28 = vmul.f32 %v4112_v48, %v6637_v50  ;;  %v4114_v35 = vpop.eup %4113 }
 0x22c   : > { %3756 = vst.msk [vmem:[%s6683_s26 + $0x10] sm:$0xff] %vm3753_vm0, %v3437_v59  ;;  %v6746_v49 = vpop.xlane.xlu0 %3347  ;;  %v3831_v47 = vand.u32 2147483648, %v6655_v9  ;;  %vm3835_vm3 = vcmp.eq.f32.partialorder %v6657_v44, inf  ;;  %vm3837_vm4 = vcmp.eq.f32.partialorder %v6657_v44, 0.0  ;;  %v3465_v46 = vsel %vm3463_vm10, %v3464_v16, %v3462_v4 }
 0x22d   : > { %4129 = vrsqrt.f32 %v6733_v7  ;;  %v3441_v37 = vsel %vm3440_vm11, %v6616_v32, %v3439_v17  ;;  %v3476_v53 = vsel %vm3475_vm13, %v6637_v50, %v3474_v28  ;;  %v3453_v26 = vmul.f32 %v4114_v35, %v6634_v24  ;;  %3760 = vst.msk [vmem:[%s6683_s26 + $0x30] sm:$0xff] %vm3753_vm0, %v3465_v46 }
 0x22e   : > { %v6761_v29 = vpop.xlane.xlu1 %3353  ;;  %v3444_v39 = vsel %vm3442_vm12, %v3443_v20, %v3441_v37  ;;  %v3479_v10 = vsel %vm3477_vm14, %v3478_v56, %v3476_v53  ;;  %v3457_v33 = vand.u32 2147483648, %v6634_v24  ;;  %v3838_v62 = vand.u32 2147483648, %v6657_v44 }
 0x22f   : > { %3757 = vst.msk [vmem:[%s6683_s26 + $0x18] sm:$0xff] %vm3753_vm0, %v3444_v39  ;;  %3762 = vst.msk [vmem:[%s6683_s26 + $0x40] sm:$0xff] %vm3753_vm0, %v3479_v10  ;;  %v3455_v40 = vsel %vm3454_vm15, %v6634_v24, %v3453_v26  ;;  %vm3456_vm5 = vcmp.eq.f32.partialorder %v6634_v24, 0.0  ;;  %vm3489_vm6 = vcmp.eq.f32.partialorder %v6646_v63, inf  ;;  %4131 = vrsqrt.f32 %v6702_v27 }
 0x230   : > { %v4116_v43 = vpop.eup %4115  ;;  %v3458_v21 = vsel %vm3456_vm5, %v3457_v33, %v3455_v40  ;;  %vm3491_vm7 = vcmp.eq.f32.partialorder %v6646_v63, 0.0  ;;  %v3492_v45 = vand.u32 2147483648, %v6646_v63  ;;  %4133 = vrsqrt.f32 %v6761_v29 }
 0x231   : > { %v4118_v41 = vpop.eup %4117  ;;  %v3827_v6 = vmul.f32 %v4116_v43, %v6655_v9  ;;  %3759 = vst.msk [vmem:[%s6683_s26 + $0x28] sm:$0xff] %vm3753_vm0, %v3458_v21  ;;  %vm3468_vm8 = vcmp.eq.f32.partialorder %v6643_v34, inf  ;;  %v3471_v16 = vand.u32 2147483648, %v6643_v34  ;;  %vm3470_vm9 = vcmp.eq.f32.partialorder %v6643_v34, 0.0 }
 0x232   : > { %v3834_v0 = vmul.f32 %v4118_v41, %v6657_v44  ;;  %v4120_v32 = vpop.eup %4119  ;;  %4135 = vrsqrt.f32 %v6746_v49  ;;  %v6816_v51 = vsub.s32 %v3853_v36, %v6652_v15  ;;  %vm3503_vm10 = vcmp.eq.f32.partialorder %v6673_v52, inf }
 0x233   : > { %v3829_v50 = vsel %vm3828_vm1, %v6655_v9, %v3827_v6  ;;  %v4122_v1 = vpop.eup %4121  ;;  %v3488_v24 = vmul.f32 %v4120_v32, %v6646_v63  ;;  %v6795_v18 = vpop.xlane.xlu0 %3351  ;;  %vm3505_vm11 = vcmp.eq.f32.partialorder %v6673_v52, 0.0  ;;  %vm3482_vm12 = vcmp.eq.f32.partialorder %v6663_v61, inf }
 0x234   : > { %v3832_v2 = vsel %vm3830_vm2, %v3831_v47, %v3829_v50  ;;  %v3836_v5 = vsel %vm3835_vm3, %v6657_v44, %v3834_v0  ;;  %v3467_v9 = vmul.f32 %v4122_v1, %v6643_v34  ;;  %v4124_v19 = vpop.eup %4123  ;;  %vm3484_vm13 = vcmp.eq.f32.partialorder %v6663_v61, 0.0 }
 0x235   : > { %v3839_v11 = vsel %vm3837_vm4, %v3838_v62, %v3836_v5  ;;  %v3490_v55 = vsel %vm3489_vm6, %v6646_v63, %v3488_v24  ;;  %v6805_v42 = vpop.xlane.xlu1 %3357  ;;  %v3502_v12 = vmul.f32 %v4124_v19, %v6673_v52  ;;  %v4126_v63 = vpop.eup %4125  ;;  %v3485_v30 = vand.u32 2147483648, %v6663_v61 }
 0x236   : > { %v3850_v14 = vcombine.low %v3832_v2, %v3839_v11  ;;  %v3493_v8 = vsel %vm3491_vm7, %v3492_v45, %v3490_v55  ;;  %v3469_v44 = vsel %vm3468_vm8, %v6643_v34, %v3467_v9  ;;  %v3506_v34 = vand.u32 2147483648, %v6673_v52 }
 0x237   : > { %3764 = vst.msk [vmem:[%s6683_s26 + $0x50] sm:$0xff] %vm3753_vm0, %v3493_v8  ;;  %v3472_v58 = vsel %vm3470_vm9, %v3471_v16, %v3469_v44  ;;  %4137 = vrsqrt.f32 %v6805_v42  ;;  %v3504_v20 = vsel %vm3503_vm10, %v6673_v52, %v3502_v12  ;;  %v3481_v23 = vmul.f32 %v4126_v63, %v6663_v61  ;;  %v4128_v36 = vpop.eup %4127 }
 0x238   : > { %3761 = vst.msk [vmem:[%s6683_s26 + $0x38] sm:$0xff] %vm3753_vm0, %v3472_v58  ;;  %v3507_v15 = vsel %vm3505_vm11, %v3506_v34, %v3504_v20  ;;  %4139 = vrsqrt.f32 %v6795_v18  ;;  %vm3842_vm14 = vcmp.eq.f32.partialorder %v6733_v7, inf  ;;  %v3516_v57 = vmul.f32 %v4128_v36, %v6718_v54 }
 0x239   : > { %v6827_v25 = vpop.xlane.xlu0 %3355  ;;  %3766 = vst.msk [vmem:[%s6683_s26 + $0x60] sm:$0xff] %vm3753_vm0, %v3507_v15  ;;  %v3483_v52 = vsel %vm3482_vm12, %v6663_v61, %v3481_v23  ;;  %vm3517_vm15 = vcmp.eq.f32.partialorder %v6718_v54, inf  ;;  %v3520_v22 = vand.u32 2147483648, %v6718_v54  ;;  %v3845_v13 = vand.u32 2147483648, %v6733_v7 }
 0x23a   : > { %v4130_v38 = vpop.eup %4129  ;;  %4141 = vrsqrt.f32 %v6827_v25  ;;  %v3486_v56 = vsel %vm3484_vm13, %v3485_v30, %v3483_v52  ;;  %v3518_v61 = vsel %vm3517_vm15, %v6718_v54, %v3516_v57  ;;  %vm3519_vm1 = vcmp.eq.f32.partialorder %v6718_v54, 0.0 }
 0x23b   : > { %v3841_v3 = vmul.f32 %v4130_v38, %v6733_v7  ;;  %3763 = vst.msk [vmem:[%s6683_s26 + $0x48] sm:$0xff] %vm3753_vm0, %v3486_v56  ;;  %v3857_v48 = vrot.slane %v3850_v14, %v6816_v51  ;;  %vm3844_vm2 = vcmp.eq.f32.partialorder %v6733_v7, 0.0  ;;  %v3521_v17 = vsel %vm3519_vm1, %v3520_v22, %v3518_v61 }
 0x23c   : > { %v6841_v31 = vpop.xlane.xlu1 %3361  ;;  %v4132_v4 = vpop.eup %4131  ;;  %3768 = vst.msk [vmem:[%s6683_s26 + $0x70] sm:$0xff] %vm3753_vm0, %v3521_v17  ;;  %vm6862_vm3 = vcmp.lt.s32.totalorder %v3854_v60, 384  ;;  %vm3496_vm4 = vcmp.eq.f32.partialorder %v6702_v27, inf  ;;  %vm3498_vm5 = vcmp.eq.f32.partialorder %v6702_v27, 0.0  ;;  %vm3531_vm6 = vcmp.eq.f32.partialorder %v6761_v29, inf }
 0x23d   : > { %4143 = vrsqrt.f32 %v6841_v31  ;;  %v3843_v59 = vsel %vm3842_vm14, %v6733_v7, %v3841_v3  ;;  %v3495_v54 = vmul.f32 %v4132_v4, %v6702_v27  ;;  %v4134_v43 = vpop.eup %4133  ;;  %v3499_v7 = vand.u32 2147483648, %v6702_v27 }
 0x23e   : > { %v3846_v28 = vsel %vm3844_vm2, %v3845_v13, %v3843_v59  ;;  %v3530_v26 = vmul.f32 %v4134_v43, %v6761_v29  ;;  %vm3533_vm7 = vcmp.eq.f32.partialorder %v6761_v29, 0.0  ;;  %v3534_v6 = vand.u32 2147483648, %v6761_v29 }
 0x23f   : > { %v3864_v35 = vrot.slane %v3846_v28, %v6816_v51  ;;  %v3497_v53 = vsel %vm3496_vm4, %v6702_v27, %v3495_v54  ;;  %v4136_v41 = vpop.eup %4135  ;;  %vm3510_vm8 = vcmp.eq.f32.partialorder %v6746_v49, inf  ;;  %v3513_v40 = vand.u32 2147483648, %v6746_v49 }
 0x240   : > { %v6859_v47 = vpop.xlane.xlu0 %3359  ;;  %v3500_v60 = vsel %vm3498_vm5, %v3499_v7, %v3497_v53  ;;  %v3532_v27 = vsel %vm3531_vm6, %v6761_v29, %v3530_v26  ;;  %v3509_v33 = vmul.f32 %v4136_v41, %v6746_v49  ;;  %vm3512_vm9 = vcmp.eq.f32.partialorder %v6746_v49, 0.0 }
 0x241   : > { %4145 = vrsqrt.f32 %v6859_v47  ;;  %v3865_v37 = vcombine.low %v3857_v48, %v3864_v35  ;;  %3765 = vst.msk [vmem:[%s6683_s26 + $0x58] sm:$0xff] %vm3753_vm0, %v3500_v60  ;;  %v3535_v62 = vsel %vm3533_vm7, %v3534_v6, %v3532_v27  ;;  %vm3545_vm10 = vcmp.eq.f32.partialorder %v6805_v42, inf }
 0x242   : > { %3770 = vst.msk [vmem:[%s6683_s26 + $0x80] sm:$0xff] %vm3753_vm0, %v3535_v62  ;;  %v3511_v32 = vsel %vm3510_vm8, %v6746_v49, %v3509_v33  ;;  %vm3547_vm11 = vcmp.eq.f32.partialorder %v6805_v42, 0.0  ;;  %v3548_v1 = vand.u32 2147483648, %v6805_v42  ;;  %vm3524_vm12 = vcmp.eq.f32.partialorder %v6795_v18, inf }
 0x243   : > { %v6878_v39 = vpop.xlane.xlu1 %3365  ;;  %v3872_v10 = vrot.slane %v3865_v37, %v6816_v51  ;;  %v3514_v21 = vsel %vm3512_vm9, %v3513_v40, %v3511_v32  ;;  %vm3526_vm13 = vcmp.eq.f32.partialorder %v6795_v18, 0.0  ;;  %v3527_v45 = vand.u32 2147483648, %v6795_v18 }
 0x244   : > { %4147 = vrsqrt.f32 %v6878_v39  ;;  %v4138_v0 = vpop.eup %4137  ;;  %3767 = vst.msk [vmem:[%s6683_s26 + $0x68] sm:$0xff] %vm3753_vm0, %v3514_v21  ;;  %vm3538_vm14 = vcmp.eq.f32.partialorder %v6827_v25, inf  ;;  %vm3540_vm15 = vcmp.eq.f32.partialorder %v6827_v25, 0.0  ;;  %v3541_v16 = vand.u32 2147483648, %v6827_v25 }
 0x245   : > { %3879 = vst.msk [vmem:[%s263_s30] sm:$0x7] %vm6862_vm3, %v3872_v10  ;;  %v3544_v29 = vmul.f32 %v4138_v0, %v6805_v42  ;;  %v4140_v50 = vpop.eup %4139  ;;  %vm3559_vm1 = vcmp.eq.f32.partialorder %v6841_v31, inf  ;;  %vm3561_vm2 = vcmp.eq.f32.partialorder %v6841_v31, 0.0  ;;  %vm3552_vm3 = vcmp.eq.f32.partialorder %v6859_v47, inf }
 0x246   : > { %v3523_v49 = vmul.f32 %v4140_v50, %v6795_v18  ;;  %v3555_v23 = vand.u32 2147483648, %v6859_v47  ;;  %vm3554_vm4 = vcmp.eq.f32.partialorder %v6859_v47, 0.0  ;;  %vm3573_vm5 = vcmp.eq.f32.partialorder %v6878_v39, inf }
 0x247   : > { %v6898_v2 = vpop.xlane.xlu0 %3363  ;;  %v4142_v5 = vpop.eup %4141  ;;  %v3546_v24 = vsel %vm3545_vm10, %v6805_v42, %v3544_v29  ;;  %v3576_v52 = vand.u32 2147483648, %v6878_v39  ;;  %vm3575_vm6 = vcmp.eq.f32.partialorder %v6878_v39, 0.0 }
 0x248   : > { %4149 = vrsqrt.f32 %v6898_v2  ;;  %v3549_v11 = vsel %vm3547_vm11, %v3548_v1, %v3546_v24  ;;  %v3537_v9 = vmul.f32 %v4142_v5, %v6827_v25  ;;  %v3525_v55 = vsel %vm3524_vm12, %v6795_v18, %v3523_v49 }
 0x249   : > { %3772 = vst.msk [vmem:[%s6683_s26 + $0x90] sm:$0xff] %vm3753_vm0, %v3549_v11  ;;  %v3528_v19 = vsel %vm3526_vm13, %v3527_v45, %v3525_v55  ;;  %v3562_v18 = vand.u32 2147483648, %v6841_v31  ;;  %vm3566_vm7 = vcmp.eq.f32.partialorder %v6898_v2, inf  ;;  %v3569_v13 = vand.u32 2147483648, %v6898_v2 }
 0x24a   : > { %v4144_v14 = vpop.eup %4143  ;;  %v3370_v42 = vpop.xlane.xlu1 %3369  ;;  %v3539_v44 = vsel %vm3538_vm14, %v6827_v25, %v3537_v9  ;;  %3769 = vst.msk [vmem:[%s6683_s26 + $0x78] sm:$0xff] %vm3753_vm0, %v3528_v19  ;;  %vm3568_vm8 = vcmp.eq.f32.partialorder %v6898_v2, 0.0 }
 0x24b   : > { %v3558_v8 = vmul.f32 %v4144_v14, %v6841_v31  ;;  %4151 = vrsqrt.f32 %v3370_v42  ;;  %v3542_v58 = vsel %vm3540_vm15, %v3541_v16, %v3539_v44  ;;  %vm3587_vm9 = vcmp.eq.f32.partialorder %v3370_v42, inf }
 0x24c   : > { %3771 = vst.msk [vmem:[%s6683_s26 + $0x88] sm:$0xff] %vm3753_vm0, %v3542_v58  ;;  %v3590_v28 = vand.u32 2147483648, %v3370_v42  ;;  %vm3589_vm10 = vcmp.eq.f32.partialorder %v3370_v42, 0.0 }
 0x24d   : > { %v3560_v12 = vsel %vm3559_vm1, %v6841_v31, %v3558_v8 }
 0x24e   : > { %v4146_v63 = vpop.eup %4145  ;;  %v3563_v51 = vsel %vm3561_vm2, %v3562_v18, %v3560_v12  ;;  %v3368_v34 = vpop.xlane.xlu0 %3367 }
 0x24f   : > { %3774 = vst.msk [vmem:[%s6683_s26 + $0xa0] sm:$0xff] %vm3753_vm0, %v3563_v51  ;;  %v3551_v20 = vmul.f32 %v4146_v63, %v6859_v47  ;;  %4153 = vrsqrt.f32 %v3368_v34  ;;  %vm3580_vm11 = vcmp.eq.f32.partialorder %v3368_v34, inf  ;;  %v3583_v46 = vand.u32 2147483648, %v3368_v34 }
 0x250   : > { %vm3582_vm12 = vcmp.eq.f32.partialorder %v3368_v34, 0.0 }
 0x251   : > { %v4148_v25 = vpop.eup %4147  ;;  %v3553_v36 = vsel %vm3552_vm3, %v6859_v47, %v3551_v20  ;;  %v3374_v15 = vpop.xlane.xlu1 %3373 }
 0x252   : > { %v3572_v30 = vmul.f32 %v4148_v25, %v6878_v39  ;;  %v3556_v38 = vsel %vm3554_vm4, %v3555_v23, %v3553_v36  ;;  %4155 = vrsqrt.f32 %v3374_v15  ;;  %vm3601_vm13 = vcmp.eq.f32.partialorder %v3374_v15, inf }
 0x253   : > { %3773 = vst.msk [vmem:[%s6683_s26 + $0x98] sm:$0xff] %vm3753_vm0, %v3556_v38  ;;  %v3604_v60 = vand.u32 2147483648, %v3374_v15  ;;  %vm3603_vm14 = vcmp.eq.f32.partialorder %v3374_v15, 0.0 }
 0x254   : > { %v3574_v57 = vsel %vm3573_vm5, %v6878_v39, %v3572_v30 }
 0x255   : > { %v4150_v3 = vpop.eup %4149  ;;  %v3577_v56 = vsel %vm3575_vm6, %v3576_v52, %v3574_v57  ;;  %v3372_v22 = vpop.xlane.xlu0 %3371 }
 0x256   : > { %3776 = vst.msk [vmem:[%s6683_s26 + $0xb0] sm:$0xff] %vm3753_vm0, %v3577_v56  ;;  %v3565_v31 = vmul.f32 %v4150_v3, %v6898_v2  ;;  %4157 = vrsqrt.f32 %v3372_v22  ;;  %vm3594_vm15 = vcmp.eq.f32.partialorder %v3372_v22, inf  ;;  %v3597_v0 = vand.u32 2147483648, %v3372_v22 }
 0x257   : > { %vm3596_vm1 = vcmp.eq.f32.partialorder %v3372_v22, 0.0 }
 0x258   : > { %v4152_v61 = vpop.eup %4151  ;;  %v3567_v48 = vsel %vm3566_vm7, %v6898_v2, %v3565_v31  ;;  %v3378_v59 = vpop.xlane.xlu1 %3377 }
 0x259   : > { %v3586_v17 = vmul.f32 %v4152_v61, %v3370_v42  ;;  %v3570_v4 = vsel %vm3568_vm8, %v3569_v13, %v3567_v48  ;;  %4159 = vrsqrt.f32 %v3378_v59  ;;  %vm3615_vm2 = vcmp.eq.f32.partialorder %v3378_v59, inf }
 0x25a   : > { %3775 = vst.msk [vmem:[%s6683_s26 + $0xa8] sm:$0xff] %vm3753_vm0, %v3570_v4  ;;  %v3618_v21 = vand.u32 2147483648, %v3378_v59  ;;  %vm3617_vm3 = vcmp.eq.f32.partialorder %v3378_v59, 0.0 }
 0x25b   : > { %v3588_v35 = vsel %vm3587_vm9, %v3370_v42, %v3586_v17 }
 0x25c   : > { %v4154_v54 = vpop.eup %4153  ;;  %v3591_v47 = vsel %vm3589_vm10, %v3590_v28, %v3588_v35 }
 0x25d   : > { %3778 = vst.msk [vmem:[%s6683_s26 + $0xc0] sm:$0xff] %vm3753_vm0, %v3591_v47  ;;  %v3579_v43 = vmul.f32 %v4154_v54, %v3368_v34 }
 0x25e   : > { %v3376_v7 = vpop.xlane.xlu0 %3375 }
 0x25f   : > { %v4156_v37 = vpop.eup %4155  ;;  %v3581_v53 = vsel %vm3580_vm11, %v3368_v34, %v3579_v43  ;;  %4161 = vrsqrt.f32 %v3376_v7  ;;  %vm3608_vm4 = vcmp.eq.f32.partialorder %v3376_v7, inf  ;;  %v3611_v11 = vand.u32 2147483648, %v3376_v7 }
 0x260   : > { %v3600_v26 = vmul.f32 %v4156_v37, %v3374_v15  ;;  %v3584_v41 = vsel %vm3582_vm12, %v3583_v46, %v3581_v53  ;;  %vm3610_vm5 = vcmp.eq.f32.partialorder %v3376_v7, 0.0 }
 0x261   : > { %3777 = vst.msk [vmem:[%s6683_s26 + $0xb8] sm:$0xff] %vm3753_vm0, %v3584_v41  ;;  %v3382_v6 = vpop.xlane.xlu1 %3381 }
 0x262   : > { %v3602_v39 = vsel %vm3601_vm13, %v3374_v15, %v3600_v26  ;;  %4163 = vrsqrt.f32 %v3382_v6  ;;  %vm3629_vm6 = vcmp.eq.f32.partialorder %v3382_v6, inf  ;;  %v3632_v42 = vand.u32 2147483648, %v3382_v6 }
 0x263   : > { %v4158_v10 = vpop.eup %4157  ;;  %v3605_v27 = vsel %vm3603_vm14, %v3604_v60, %v3602_v39  ;;  %vm3631_vm7 = vcmp.eq.f32.partialorder %v3382_v6, 0.0 }
 0x264   : > { %3780 = vst.msk [vmem:[%s6683_s26 + $0xd0] sm:$0xff] %vm3753_vm0, %v3605_v27  ;;  %v3593_v33 = vmul.f32 %v4158_v10, %v3372_v22 }
 0x266   : > { %v4160_v62 = vpop.eup %4159  ;;  %v3595_v40 = vsel %vm3594_vm15, %v3372_v22, %v3593_v33 }
 0x267   : > { %v3614_v32 = vmul.f32 %v4160_v62, %v3378_v59  ;;  %v3598_v29 = vsel %vm3596_vm1, %v3597_v0, %v3595_v40 }
 0x268   : > { %v3380_v50 = vpop.xlane.xlu0 %3379  ;;  %3779 = vst.msk [vmem:[%s6683_s26 + $0xc8] sm:$0xff] %vm3753_vm0, %v3598_v29 }
 0x269   : > { %4165 = vrsqrt.f32 %v3380_v50  ;;  %v3616_v1 = vsel %vm3615_vm2, %v3378_v59, %v3614_v32  ;;  %vm3622_vm8 = vcmp.eq.f32.partialorder %v3380_v50, inf  ;;  %v3625_v12 = vand.u32 2147483648, %v3380_v50 }
 0x26a   : > { %v3619_v2 = vsel %vm3617_vm3, %v3618_v21, %v3616_v1  ;;  %vm3624_vm9 = vcmp.eq.f32.partialorder %v3380_v50, 0.0 }
 0x26b   : > { %v3386_v5 = vpop.xlane.xlu1 %3385  ;;  %3782 = vst.msk [vmem:[%s6683_s26 + $0xe0] sm:$0xff] %vm3753_vm0, %v3619_v2 }
 0x26c   : > { %4167 = vrsqrt.f32 %v3386_v5  ;;  %v4162_v24 = vpop.eup %4161  ;;  %vm3643_vm10 = vcmp.eq.f32.partialorder %v3386_v5, inf  ;;  %v3646_v25 = vand.u32 2147483648, %v3386_v5  ;;  %vm3645_vm11 = vcmp.eq.f32.partialorder %v3386_v5, 0.0 }
 0x26d   : > { %v3607_v49 = vmul.f32 %v4162_v24, %v3376_v7 }
 0x26f   : > { %v4164_v45 = vpop.eup %4163  ;;  %v3609_v9 = vsel %vm3608_vm4, %v3376_v7, %v3607_v49 }
 0x270   : > { %v3628_v14 = vmul.f32 %v4164_v45, %v3382_v6  ;;  %v3612_v55 = vsel %vm3610_vm5, %v3611_v11, %v3609_v9 }
 0x271   : > { %v3384_v16 = vpop.xlane.xlu0 %3383  ;;  %3781 = vst.msk [vmem:[%s6683_s26 + $0xd8] sm:$0xff] %vm3753_vm0, %v3612_v55 }
 0x272   : > { %4169 = vrsqrt.f32 %v3384_v16  ;;  %v3630_v19 = vsel %vm3629_vm6, %v3382_v6, %v3628_v14  ;;  %vm3636_vm12 = vcmp.eq.f32.partialorder %v3384_v16, inf  ;;  %v3639_v3 = vand.u32 2147483648, %v3384_v16 }
 0x273   : > { %v3390_v8 = vpop.xlane.xlu1 %3389  ;;  %v3633_v44 = vsel %vm3631_vm7, %v3632_v42, %v3630_v19  ;;  %vm3638_vm13 = vcmp.eq.f32.partialorder %v3384_v16, 0.0 }
 0x274   : > { %4171 = vrsqrt.f32 %v3390_v8  ;;  %3784 = vst.msk [vmem:[%s6683_s26 + $0xf0] sm:$0xff] %vm3753_vm0, %v3633_v44  ;;  %vm3657_vm14 = vcmp.eq.f32.partialorder %v3390_v8, inf  ;;  %v3660_v13 = vand.u32 2147483648, %v3390_v8  ;;  %vm3659_vm15 = vcmp.eq.f32.partialorder %v3390_v8, 0.0 }
 0x276   : > { %v4166_v18 = vpop.eup %4165 }
 0x277   : > { %v3621_v58 = vmul.f32 %v4166_v18, %v3380_v50 }
 0x279   : > { %v4168_v63 = vpop.eup %4167  ;;  %v3623_v51 = vsel %vm3622_vm8, %v3380_v50, %v3621_v58  ;;  %v3388_v34 = vpop.xlane.xlu0 %3387 }
 0x27a   : > { %v3642_v20 = vmul.f32 %v4168_v63, %v3386_v5  ;;  %v3626_v23 = vsel %vm3624_vm9, %v3625_v12, %v3623_v51  ;;  %4173 = vrsqrt.f32 %v3388_v34  ;;  %vm3650_vm1 = vcmp.eq.f32.partialorder %v3388_v34, inf }
 0x27b   : > { %3783 = vst.msk [vmem:[%s6683_s26 + $0xe8] sm:$0xff] %vm3753_vm0, %v3626_v23  ;;  %v3394_v36 = vpop.xlane.xlu1 %3393  ;;  %v3653_v54 = vand.u32 2147483648, %v3388_v34  ;;  %vm3652_vm2 = vcmp.eq.f32.partialorder %v3388_v34, 0.0 }
 0x27c   : > { %v3644_v15 = vsel %vm3643_vm10, %v3386_v5, %v3642_v20  ;;  %4175 = vrsqrt.f32 %v3394_v36  ;;  %vm3671_vm3 = vcmp.eq.f32.partialorder %v3394_v36, inf  ;;  %v3674_v7 = vand.u32 2147483648, %v3394_v36 }
 0x27d   : > { %v3647_v30 = vsel %vm3645_vm11, %v3646_v25, %v3644_v15  ;;  %vm3673_vm4 = vcmp.eq.f32.partialorder %v3394_v36, 0.0 }
 0x27e   : > { %3786 = vst.msk [vmem:[%s6683_s26 + $0x100] sm:$0xff] %vm3753_vm0, %v3647_v30 }
 0x27f   : > { %v4170_v38 = vpop.eup %4169 }
 0x280   : > { %v3635_v52 = vmul.f32 %v4170_v38, %v3384_v16 }
 0x281   : > { %v4172_v57 = vpop.eup %4171  ;;  %v3392_v56 = vpop.xlane.xlu0 %3391 }
 0x282   : > { %v3656_v22 = vmul.f32 %v4172_v57, %v3390_v8  ;;  %v3637_v31 = vsel %vm3636_vm12, %v3384_v16, %v3635_v52  ;;  %4177 = vrsqrt.f32 %v3392_v56  ;;  %vm3664_vm5 = vcmp.eq.f32.partialorder %v3392_v56, inf }
 0x283   : > { %v3640_v61 = vsel %vm3638_vm13, %v3639_v3, %v3637_v31  ;;  %v3667_v39 = vand.u32 2147483648, %v3392_v56  ;;  %vm3666_vm6 = vcmp.eq.f32.partialorder %v3392_v56, 0.0 }
 0x284   : > { %v3658_v48 = vsel %vm3657_vm14, %v3390_v8, %v3656_v22  ;;  %3785 = vst.msk [vmem:[%s6683_s26 + $0xf8] sm:$0xff] %vm3753_vm0, %v3640_v61  ;;  %v3398_v59 = vpop.xlane.xlu1 %3397 }
 0x285   : > { %v3661_v17 = vsel %vm3659_vm15, %v3660_v13, %v3658_v48  ;;  %4179 = vrsqrt.f32 %v3398_v59  ;;  %vm3685_vm7 = vcmp.eq.f32.partialorder %v3398_v59, inf  ;;  %v3688_v40 = vand.u32 2147483648, %v3398_v59 }
 0x286   : > { %3788 = vst.msk [vmem:[%s6683_s26 + $0x110] sm:$0xff] %vm3753_vm0, %v3661_v17  ;;  %vm3687_vm8 = vcmp.eq.f32.partialorder %v3398_v59, 0.0 }
 0x287   : > { %v4174_v4 = vpop.eup %4173 }
 0x288   : > { %v3649_v28 = vmul.f32 %v4174_v4, %v3388_v34 }
 0x289   : > { %v4176_v35 = vpop.eup %4175 }
 0x28a   : > { %v3670_v47 = vmul.f32 %v4176_v35, %v3394_v36  ;;  %v3651_v43 = vsel %vm3650_vm1, %v3388_v34, %v3649_v28  ;;  %v3396_v46 = vpop.xlane.xlu0 %3395 }
 0x28b   : > { %v3654_v37 = vsel %vm3652_vm2, %v3653_v54, %v3651_v43  ;;  %4181 = vrsqrt.f32 %v3396_v46  ;;  %vm3678_vm9 = vcmp.eq.f32.partialorder %v3396_v46, inf  ;;  %v3681_v5 = vand.u32 2147483648, %v3396_v46 }
 0x28c   : > { %v3672_v53 = vsel %vm3671_vm3, %v3394_v36, %v3670_v47  ;;  %3787 = vst.msk [vmem:[%s6683_s26 + $0x108] sm:$0xff] %vm3753_vm0, %v3654_v37  ;;  %vm3680_vm10 = vcmp.eq.f32.partialorder %v3396_v46, 0.0 }
 0x28d   : > { %v3675_v26 = vsel %vm3673_vm4, %v3674_v7, %v3672_v53  ;;  %v3402_v41 = vpop.xlane.xlu1 %3401 }
 0x28e   : > { %3790 = vst.msk [vmem:[%s6683_s26 + $0x120] sm:$0xff] %vm3753_vm0, %v3675_v26  ;;  %4183 = vrsqrt.f32 %v3402_v41  ;;  %vm3699_vm11 = vcmp.eq.f32.partialorder %v3402_v41, inf  ;;  %v3702_v14 = vand.u32 2147483648, %v3402_v41  ;;  %vm3701_vm12 = vcmp.eq.f32.partialorder %v3402_v41, 0.0 }
 0x28f   : > { %v4178_v60 = vpop.eup %4177 }
 0x290   : > { %v3663_v6 = vmul.f32 %v4178_v60, %v3392_v56 }
 0x292   : > { %v4180_v10 = vpop.eup %4179  ;;  %v3665_v27 = vsel %vm3664_vm5, %v3392_v56, %v3663_v6 }
 0x293   : > { %v3684_v33 = vmul.f32 %v4180_v10, %v3398_v59  ;;  %v3668_v0 = vsel %vm3666_vm6, %v3667_v39, %v3665_v27  ;;  %v3400_v62 = vpop.xlane.xlu0 %3399 }
 0x294   : > { %3789 = vst.msk [vmem:[%s6683_s26 + $0x118] sm:$0xff] %vm3753_vm0, %v3668_v0  ;;  %v3406_v32 = vpop.xlane.xlu1 %3405  ;;  %4185 = vrsqrt.f32 %v3400_v62  ;;  %vm3692_vm13 = vcmp.eq.f32.partialorder %v3400_v62, inf  ;;  %v3695_v12 = vand.u32 2147483648, %v3400_v62  ;;  %vm3694_vm15 = vcmp.eq.f32.partialorder %v3400_v62, 0.0 }
 0x295   : > { %v3686_v29 = vsel %vm3685_vm7, %v3398_v59, %v3684_v33  ;;  %4187 = vrsqrt.f32 %v3406_v32  ;;  %vm3713_vm14 = vcmp.eq.f32.partialorder %v3406_v32, inf  ;;  %v3716_v63 = vand.u32 2147483648, %v3406_v32 }
 0x296   : > { %v3689_v50 = vsel %vm3687_vm8, %v3688_v40, %v3686_v29  ;;  %vm3715_vm1 = vcmp.eq.f32.partialorder %v3406_v32, 0.0 }
 0x297   : > { %3792 = vst.msk [vmem:[%s6683_s26 + $0x130] sm:$0xff] %vm3753_vm0, %v3689_v50 }
 0x298   : > { %v4182_v21 = vpop.eup %4181 }
 0x299   : > { %v3677_v1 = vmul.f32 %v4182_v21, %v3396_v46  ;;  %v3404_v2 = vpop.xlane.xlu0 %3403 }
 0x29a   : > { %v3410_v24 = vpop.xlane.xlu1 %3409  ;;  %4189 = vrsqrt.f32 %v3404_v2  ;;  %vm3706_vm2 = vcmp.eq.f32.partialorder %v3404_v2, inf  ;;  %v3709_v57 = vand.u32 2147483648, %v3404_v2  ;;  %vm3708_vm4 = vcmp.eq.f32.partialorder %v3404_v2, 0.0 }
 0x29b   : > { %v4184_v49 = vpop.eup %4183  ;;  %v3679_v11 = vsel %vm3678_vm9, %v3396_v46, %v3677_v1  ;;  %4191 = vrsqrt.f32 %v3410_v24  ;;  %vm3727_vm3 = vcmp.eq.f32.partialorder %v3410_v24, inf  ;;  %v3730_v3 = vand.u32 2147483648, %v3410_v24 }
 0x29c   : > { %v3698_v45 = vmul.f32 %v4184_v49, %v3402_v41  ;;  %v3682_v9 = vsel %vm3680_vm10, %v3681_v5, %v3679_v11  ;;  %vm3729_vm5 = vcmp.eq.f32.partialorder %v3410_v24, 0.0 }
 0x29d   : > { %3791 = vst.msk [vmem:[%s6683_s26 + $0x128] sm:$0xff] %vm3753_vm0, %v3682_v9 }
 0x29e   : > { %v3700_v55 = vsel %vm3699_vm11, %v3402_v41, %v3698_v45 }
 0x29f   : > { %v3703_v16 = vsel %vm3701_vm12, %v3702_v14, %v3700_v55  ;;  %v3414_v42 = vpop.xlane.xlu1 %3413 }
 0x2a0   : > { %3794 = vst.msk [vmem:[%s6683_s26 + $0x140] sm:$0xff] %vm3753_vm0, %v3703_v16  ;;  %4193 = vrsqrt.f32 %v3414_v42  ;;  %v3408_v19 = vpop.xlane.xlu0 %3407  ;;  %vm3741_vm6 = vcmp.eq.f32.partialorder %v3414_v42, inf  ;;  %v3744_v17 = vand.u32 2147483648, %v3414_v42  ;;  %vm3743_vm7 = vcmp.eq.f32.partialorder %v3414_v42, 0.0 }
 0x2a1   : > { %v4186_v8 = vpop.eup %4185  ;;  %4195 = vrsqrt.f32 %v3408_v19  ;;  %vm3720_vm8 = vcmp.eq.f32.partialorder %v3408_v19, inf  ;;  %v3723_v35 = vand.u32 2147483648, %v3408_v19  ;;  %vm3722_vm9 = vcmp.eq.f32.partialorder %v3408_v19, 0.0 }
 0x2a2   : > { %v4188_v44 = vpop.eup %4187  ;;  %v3691_v18 = vmul.f32 %v4186_v8, %v3400_v62 }
 0x2a3   : > { %v3712_v58 = vmul.f32 %v4188_v44, %v3406_v32 }
 0x2a4   : > { %v3693_v51 = vsel %vm3692_vm13, %v3400_v62, %v3691_v18  ;;  %v3412_v34 = vpop.xlane.xlu0 %3411 }
 0x2a5   : > { %v3714_v20 = vsel %vm3713_vm14, %v3406_v32, %v3712_v58  ;;  %v3696_v23 = vsel %vm3694_vm15, %v3695_v12, %v3693_v51  ;;  %4197 = vrsqrt.f32 %v3412_v34  ;;  %vm3734_vm10 = vcmp.eq.f32.partialorder %v3412_v34, inf }
 0x2a6   : > { %v3717_v25 = vsel %vm3715_vm1, %v3716_v63, %v3714_v20  ;;  %3793 = vst.msk [vmem:[%s6683_s26 + $0x138] sm:$0xff] %vm3753_vm0, %v3696_v23  ;;  %v3737_v37 = vand.u32 2147483648, %v3412_v34  ;;  %vm3736_vm11 = vcmp.eq.f32.partialorder %v3412_v34, 0.0 }
 0x2a7   : > { %v4190_v36 = vpop.eup %4189  ;;  %3796 = vst.msk [vmem:[%s6683_s26 + $0x150] sm:$0xff] %vm3753_vm0, %v3717_v25 }
 0x2a8   : > { %v4192_v15 = vpop.eup %4191  ;;  %v3705_v30 = vmul.f32 %v4190_v36, %v3404_v2  ;;  %v3416_v38 = vpop.xlane.xlu0 %3415 }
 0x2a9   : > { %v3726_v52 = vmul.f32 %v4192_v15, %v3410_v24  ;;  %4199 = vrsqrt.f32 %v3416_v38  ;;  %vm3748_vm12 = vcmp.eq.f32.partialorder %v3416_v38, inf  ;;  %v3751_v6 = vand.u32 2147483648, %v3416_v38 }
 0x2aa   : > { %v3707_v56 = vsel %vm3706_vm2, %v3404_v2, %v3705_v30  ;;  %vm3750_vm13 = vcmp.eq.f32.partialorder %v3416_v38, 0.0 }
 0x2ab   : > { %v3728_v22 = vsel %vm3727_vm3, %v3410_v24, %v3726_v52  ;;  %v3710_v31 = vsel %vm3708_vm4, %v3709_v57, %v3707_v56 }
 0x2ac   : > { %v3731_v13 = vsel %vm3729_vm5, %v3730_v3, %v3728_v22  ;;  %3795 = vst.msk [vmem:[%s6683_s26 + $0x148] sm:$0xff] %vm3753_vm0, %v3710_v31 }
 0x2ad   : > { %v4194_v61 = vpop.eup %4193  ;;  %3798 = vst.msk [vmem:[%s6683_s26 + $0x160] sm:$0xff] %vm3753_vm0, %v3731_v13 }
 0x2ae   : > { %v4196_v48 = vpop.eup %4195  ;;  %v3740_v59 = vmul.f32 %v4194_v61, %v3414_v42 }
 0x2af   : > { %v3719_v4 = vmul.f32 %v4196_v48, %v3408_v19 }
 0x2b0   : > { %v3742_v28 = vsel %vm3741_vm6, %v3414_v42, %v3740_v59 }
 0x2b1   : > { %v3745_v54 = vsel %vm3743_vm7, %v3744_v17, %v3742_v28  ;;  %v3721_v47 = vsel %vm3720_vm8, %v3408_v19, %v3719_v4 }
 0x2b2   : > { %v4198_v43 = vpop.eup %4197  ;;  %3800 = vst.msk [vmem:[%s6683_s26 + $0x170] sm:$0xff] %vm3753_vm0, %v3745_v54  ;;  %v3724_v46 = vsel %vm3722_vm9, %v3723_v35, %v3721_v47 }
 0x2b3   : > { %3797 = vst.msk [vmem:[%s6683_s26 + $0x158] sm:$0xff] %vm3753_vm0, %v3724_v46  ;;  %v3733_v7 = vmul.f32 %v4198_v43, %v3412_v34 }
 0x2b5   : > { %v3735_v53 = vsel %vm3734_vm10, %v3412_v34, %v3733_v7 }
 0x2b6   : > { %v4200_v26 = vpop.eup %4199  ;;  %v3738_v41 = vsel %vm3736_vm11, %v3737_v37, %v3735_v53 }
 0x2b7   : > { %3799 = vst.msk [vmem:[%s6683_s26 + $0x168] sm:$0xff] %vm3753_vm0, %v3738_v41  ;;  %v3747_v60 = vmul.f32 %v4200_v26, %v3416_v38 }
 0x2b9   : > { %v3749_v39 = vsel %vm3748_vm12, %v3416_v38, %v3747_v60 }
 0x2ba   : > { %v3752_v10 = vsel %vm3750_vm13, %v3751_v6, %v3749_v39 }
 0x2bb   : > { %3801 = vst.msk [vmem:[%s6683_s26 + $0x178] sm:$0xff] %vm3753_vm0, %v3752_v10 }
 0x2bc PF: > { %s14_s14 = sadd.s32 1, %s4251_s14   ;;  %s7523_s12 = smov %s4247_s13 }
 0x2bd   : > { %p11_p5 = scmp.ge.s32.totalorder %s14_s14, 4   ;;  %s7524_s13 = smov %s7526_s15 }
 0x2bf   :  { %13 = sbr.rel (!%p11_p5) target bundleno = 2 (0x2), region = 96 }

</bundles_post_ra>
